<compile_context>
chip_gen: v7x
topology: tpu7x:2x2x1
jax: 0.10.0
libtpu: 0.0.40
codegen_flags: <defaults>
</compile_context>

<pallas_src>
import functools

import jax
import jax.numpy as jnp
from jax.experimental import pallas as pl
from jax.experimental.pallas import tpu as pltpu

EPS = 1e-5


# --------------------------------------------------------------------------
# Fused kernel: conv3x3+BN1+ReLU -> conv3x3+BN2, plus 1x1+BNi identity branch,
# residual add and the final ReLU.  One grid step == `batch_tile` images.
# --------------------------------------------------------------------------
def _double_conv_kernel(H, W, Cin, Cout, batch_tile, cdt,
                        x_ref, w1_ref, s1_ref, t1_ref, w2_ref, s2_ref, t2_ref,
                        o_ref, lhs1_ref, lhs2_ref):
    BH = batch_tile * H
    WCi = W * Cin
    WCo = W * Cout

    # ---- stage conv1 LHS: three ky-shifted copies side-by-side along K ----
    #   lhs1[:, 0:WCi]        holds x[h-1]  (ky = 0)
    #   lhs1[:, WCi:2*WCi]    holds x[h]    (ky = 1)
    #   lhs1[:, 2*WCi:3*WCi]  holds x[h+1]  (ky = 2)
    xv = x_ref[...].reshape(BH, WCi).astype(cdt)
    lhs1_ref[:, WCi:2 * WCi] = xv
    lhs1_ref[1:BH, 0:WCi] = xv[0:BH - 1, :]
    lhs1_ref[0:BH - 1, 2 * WCi:3 * WCi] = xv[1:BH, :]
    # Zero ONLY the ky-halo rows (top row of each image in the ky=0 slab,
    # bottom row in the ky=2 slab); everything else was overwritten above.
    zrow1 = jnp.zeros((1, WCi), cdt)
    for b in range(batch_tile):
        lhs1_ref[b * H:b * H + 1, 0:WCi] = zrow1
        lhs1_ref[(b + 1) * H - 1:(b + 1) * H, 2 * WCi:3 * WCi] = zrow1

    prec = jax.lax.Precision.HIGHEST if cdt == jnp.float32 else None

    # ---- conv1 (+ folded 1x1 identity columns): ONE matmul, K = 3*W*Cin ----
    y = jnp.dot(lhs1_ref[...], w1_ref[...],
                preferred_element_type=jnp.float32, precision=prec)
    y = y * s1_ref[...] + t1_ref[...]                 # folded [BN1 | BNi] (f32)
    y1 = jnp.maximum(y[:, :WCo], 0.0).astype(cdt)     # main branch: BN1 + ReLU
    idb = y[:, WCo:]                                  # identity: 1x1 conv + BNi

    # ---- stage conv2 LHS (y1 never leaves VMEM) ----
    lhs2_ref[:, WCo:2 * WCo] = y1
    lhs2_ref[1:BH, 0:WCo] = y1[0:BH - 1, :]
    lhs2_ref[0:BH - 1, 2 * WCo:3 * WCo] = y1[1:BH, :]
    zrow2 = jnp.zeros((1, WCo), cdt)
    for b in range(batch_tile):
        lhs2_ref[b * H:b * H + 1, 0:WCo] = zrow2
        lhs2_ref[(b + 1) * H - 1:(b + 1) * H, 2 * WCo:3 * WCo] = zrow2

    # ---- conv2: ONE matmul, K = 3*W*Cout; BN2 + residual + ReLU epilogue ----
    acc2 = jnp.dot(lhs2_ref[...], w2_ref[...],
                   preferred_element_type=jnp.float32, precision=prec)
    out = jnp.maximum(acc2 * s2_ref[...] + t2_ref[...] + idb, 0.0)
    o_ref[...] = out.reshape(batch_tile, H, WCo)      # lane-dense (>=128) store


# --------------------------------------------------------------------------
# Host-side weight preparation
# --------------------------------------------------------------------------
def _banded_weights(w_oihw, W):
    """Conv weight (Cout, Cin, KH, KW) -> (KH, W*Cin, W*Cout) band matrices.

    M[ky][wp*Cin+ci, w*Cout+co] = w[co, ci, ky, wp-w+pad] for |wp-w| <= pad,
    with out-of-range taps dropped -> 'same' zero padding along W is folded
    into the band, so the matmul LHS needs no left/right halo columns.
    """
    Cout, Cin, KH, KW = w_oihw.shape
    wt = jnp.transpose(w_oihw, (2, 3, 1, 0)).astype(jnp.float32)  # (KH,KW,Cin,Cout)
    pad = (KW - 1) // 2
    rows = []
    for ky in range(KH):
        m = jnp.zeros((W * Cin, W * Cout), jnp.float32)
        for kx in range(KW):
            sel = jnp.eye(W, W, k=pad - kx, dtype=jnp.float32)  # wp == w + kx - pad
            m = m + jnp.kron(sel, wt[ky, kx])
        rows.append(m)
    return jnp.stack(rows)                                       # (KH, W*Cin, W*Cout)


def _fold_bn(gamma, beta, mean, var, conv_bias):
    """Fold eval-mode BN (and the conv bias) into per-channel scale / bias."""
    s = (gamma / jnp.sqrt(var + EPS)).astype(jnp.float32)
    t = (beta - mean * s + conv_bias * s).astype(jnp.float32)
    return s, t


def _pick_batch_tile(N, H, target_rows=256):
    """Largest divisor of N with batch_tile*H <= ~256 MXU rows (v6e/v7x)."""
    cap = max(1, target_rows // max(H, 1))
    best = 1
    for b in range(1, min(N, cap) + 1):
        if N % b == 0:
            best = b
    return best


# --------------------------------------------------------------------------
# Wrapper: NHWC in, NHWC out (no transposes on the kernel path).
# --------------------------------------------------------------------------
def double_conv_nhwc(x_nhwc, p, *, use_bf16=False, batch_tile=None):
    N, H, W, Cin = x_nhwc.shape
    Cout = p["w1"].shape[0]
    cdt = jnp.bfloat16 if use_bf16 else jnp.float32
    WCi, WCo = W * Cin, W * Cout

    if batch_tile is None:
        batch_tile = _pick_batch_tile(N, H)
    assert N % batch_tile == 0

    x2d = x_nhwc.astype(jnp.float32).reshape(N, H, WCi)   # free, lane-dense

    # Banded weights: the three ky slabs stacked along K (one matmul per conv),
    # kx 'same' padding folded into the band.
    w1big = _banded_weights(p["w1"], W).reshape(3 * WCi, WCo)
    wi = jnp.transpose(p["wi"][:, :, 0, 0]).astype(jnp.float32)        # (Cin, Cout)
    mi = jnp.kron(jnp.eye(W, dtype=jnp.float32), wi)                   # ky=1 slab only
    mi3 = jnp.concatenate([jnp.zeros_like(mi), mi, jnp.zeros_like(mi)], axis=0)
    w1big = jnp.concatenate([w1big, mi3], axis=1).astype(cdt)          # (3*WCi, 2*WCo)
    w2big = _banded_weights(p["w2"], W).reshape(3 * WCo, WCo).astype(cdt)

    # Folded BN scale/bias, tiled to the lane-dense [w*Cout + co] column layout.
    s1, t1 = _fold_bn(p["bn1_g"], p["bn1_b"], p["bn1_m"], p["bn1_v"], p["b1"])
    s2, t2 = _fold_bn(p["bn2_g"], p["bn2_b"], p["bn2_m"], p["bn2_v"], p["b2"])
    si, ti = _fold_bn(p["bni_g"], p["bni_b"], p["bni_m"], p["bni_v"], p["bi"])
    s1c = jnp.concatenate([jnp.tile(s1, W), jnp.tile(si, W)]).reshape(1, 2 * WCo)
    t1c = jnp.concatenate([jnp.tile(t1, W), jnp.tile(ti, W)]).reshape(1, 2 * WCo)
    s2t = jnp.tile(s2, W).reshape(1, WCo)
    t2t = jnp.tile(t2, W).reshape(1, WCo)

    kernel = functools.partial(_double_conv_kernel, H, W, Cin, Cout,
                               batch_tile, cdt)

    itemsize = 2 if use_bf16 else 4
    flops = 2 * N * H * (3 * WCi * 2 * WCo + 3 * WCo * WCo)
    bytes_accessed = (4 * N * H * (WCi + WCo)
                      + itemsize * (3 * WCi * 2 * WCo + 3 * WCo * WCo)
                      + 4 * 6 * WCo)

    out2d = pl.pallas_call(
        kernel,
        grid=(N // batch_tile,),
        in_specs=[
            pl.BlockSpec((batch_tile, H, WCi), lambda n: (n, 0, 0)),
            pl.BlockSpec((3 * WCi, 2 * WCo), lambda n: (0, 0)),
            pl.BlockSpec((1, 2 * WCo), lambda n: (0, 0)),
            pl.BlockSpec((1, 2 * WCo), lambda n: (0, 0)),
            pl.BlockSpec((3 * WCo, WCo), lambda n: (0, 0)),
            pl.BlockSpec((1, WCo), lambda n: (0, 0)),
            pl.BlockSpec((1, WCo), lambda n: (0, 0)),
        ],
        out_specs=pl.BlockSpec((batch_tile, H, WCo), lambda n: (n, 0, 0)),
        out_shape=jax.ShapeDtypeStruct((N, H, WCo), jnp.float32),
        scratch_shapes=[
            pltpu.VMEM((batch_tile * H, 3 * WCi), cdt),   # merged-K conv1 LHS
            pltpu.VMEM((batch_tile * H, 3 * WCo), cdt),   # merged-K conv2 LHS
        ],
        compiler_params=pltpu.CompilerParams(
            dimension_semantics=("parallel",),
            vmem_limit_bytes=32 * 1024 * 1024),
        cost_estimate=pl.CostEstimate(flops=flops, transcendentals=0,
                                      bytes_accessed=bytes_accessed),
    )(x2d, w1big, s1c, t1c, w2big, s2t, t2t)

    return out2d.reshape(N, H, W, Cout)


# --------------------------------------------------------------------------
# Pure-JAX reference (NCHW, same as the PyTorch module in eval mode)
# --------------------------------------------------------------------------
def _ref_double_conv(x, p):
    dn = ("NCHW", "OIHW", "NCHW")

    def conv(x, w, b, pad):
        y = jax.lax.conv_general_dilated(
            x, w, (1, 1), [(pad, pad), (pad, pad)],
            dimension_numbers=dn, precision=jax.lax.Precision.HIGHEST)
        return y + b[None, :, None, None]

    def bn(y, g, b, m, v):
        return (g[None, :, None, None] * (y - m[None, :, None, None])
                / jnp.sqrt(v[None, :, None, None] + EPS)
                + b[None, :, None, None])

    y = conv(x, p["w1"], p["b1"], 1)
    y = jnp.maximum(bn(y, p["bn1_g"], p["bn1_b"], p["bn1_m"], p["bn1_v"]), 0.0)
    y = conv(y, p["w2"], p["b2"], 1)
    y = bn(y, p["bn2_g"], p["bn2_b"], p["bn2_m"], p["bn2_v"])
    idb = conv(x, p["wi"], p["bi"], 0)
    idb = bn(idb, p["bni_g"], p["bni_b"], p["bni_m"], p["bni_v"])
    return jnp.maximum(y + idb, 0.0)


if __name__ == "__main__":
    N, Cin, Cout, H, W = 2, 4, 8, 16, 16
    key = jax.random.PRNGKey(0)
    ks = jax.random.split(key, 20)

    def bn_params(k):
        k1, k2, k3, k4 = jax.random.split(k, 4)
        return (1.0 + 0.1 * jax.random.normal(k1, (Cout,), jnp.float32),
                0.1 * jax.random.normal(k2, (Cout,), jnp.float32),
                0.1 * jax.random.normal(k3, (Cout,), jnp.float32),
                jnp.abs(1.0 + 0.1 * jax.random.normal(k4, (Cout,), jnp.float32)))

    g1, b1_, m1, v1 = bn_params(ks[0])
    g2, b2_, m2, v2 = bn_params(ks[1])
    gi, bi_, mi, vi = bn_params(ks[2])

    params = {
        "w1": 0.2 * jax.random.normal(ks[3], (Cout, Cin, 3, 3), jnp.float32),
        "b1": 0.1 * jax.random.normal(ks[4], (Cout,), jnp.float32),
        "bn1_g": g1, "bn1_b": b1_, "bn1_m": m1, "bn1_v": v1,
        "w2": 0.2 * jax.random.normal(ks[5], (Cout, Cout, 3, 3), jnp.float32),
        "b2": 0.1 * jax.random.normal(ks[6], (Cout,), jnp.float32),
        "bn2_g": g2, "bn2_b": b2_, "bn2_m": m2, "bn2_v": v2,
        "wi": 0.2 * jax.random.normal(ks[7], (Cout, Cin, 1, 1), jnp.float32),
        "bi": 0.1 * jax.random.normal(ks[8], (Cout,), jnp.float32),
        "bni_g": gi, "bni_b": bi_, "bni_m": mi, "bni_v": vi,
    }

    x_nchw = jax.random.normal(ks[9], (N, Cin, H, W), jnp.float32)

    # Layout conversion happens ONCE in the harness (mirrors the PyTorch NCHW
    # boundary); the kernel path itself is NHWC / lane-dense with no transposes.
    x_nhwc = jnp.transpose(x_nchw, (0, 2, 3, 1))

    out_nhwc = jax.jit(double_conv_nhwc)(x_nhwc, params)
    jax.block_until_ready(out_nhwc)

    ref_nhwc = jnp.transpose(_ref_double_conv(x_nchw, params), (0, 2, 3, 1))
    assert out_nhwc.shape == (N, H, W, Cout)
    assert jnp.allclose(out_nhwc, ref_nhwc, atol=2e-3, rtol=2e-3), (
        f"f32 max abs diff {jnp.max(jnp.abs(out_nhwc - ref_nhwc))}")

    # bf16 MXU-operand path (recommended default on v6e / v7x); looser check.
    out_bf16 = jax.jit(lambda a, q: double_conv_nhwc(a, q, use_bf16=True))(
        x_nhwc, params)
    jax.block_until_ready(out_bf16)
    assert float(jnp.max(jnp.abs(out_bf16 - ref_nhwc))) < 0.25

    print("KERNEL_OK")
</pallas_src>

<mosaic_0001>
module attributes {stable_mosaic.version = 11 : i64} {
  func.func @_double_conv_kernel(%arg0: i32, %arg1: memref<2x16x64xf32, #tpu.memory_space<vmem>>, %arg2: memref<192x256xf32, #tpu.memory_space<vmem>>, %arg3: memref<1x256xf32, #tpu.memory_space<vmem>>, %arg4: memref<1x256xf32, #tpu.memory_space<vmem>>, %arg5: memref<384x128xf32, #tpu.memory_space<vmem>>, %arg6: memref<1x128xf32, #tpu.memory_space<vmem>>, %arg7: memref<1x128xf32, #tpu.memory_space<vmem>>, %arg8: memref<2x16x128xf32, #tpu.memory_space<vmem>>, %arg9: memref<32x192xf32, #tpu.memory_space<vmem>>, %arg10: memref<32x384xf32, #tpu.memory_space<vmem>>) attributes {dimension_semantics = [#tpu.dimension_semantics<parallel>], iteration_bounds = array<i64: 1>, scalar_prefetch = 0 : i64, scratch_operands = 2 : i64, tpu.core_type = #tpu.core_type<tc>, window_params = [{transform_indices = @transform_0, window_bounds = array<i64: 2, 16, 64>}, {pipeline_mode = #tpu.pipeline_mode<synchronous>, transform_indices = @transform_1, window_bounds = array<i64: 192, 256>}, {pipeline_mode = #tpu.pipeline_mode<synchronous>, transform_indices = @transform_2, window_bounds = array<i64: 1, 256>}, {pipeline_mode = #tpu.pipeline_mode<synchronous>, transform_indices = @transform_3, window_bounds = array<i64: 1, 256>}, {pipeline_mode = #tpu.pipeline_mode<synchronous>, transform_indices = @transform_4, window_bounds = array<i64: 384, 128>}, {pipeline_mode = #tpu.pipeline_mode<synchronous>, transform_indices = @transform_5, window_bounds = array<i64: 1, 128>}, {pipeline_mode = #tpu.pipeline_mode<synchronous>, transform_indices = @transform_6, window_bounds = array<i64: 1, 128>}, {transform_indices = @transform_7, window_bounds = array<i64: 2, 16, 128>}]} {
    %c0 = arith.constant 0 : index
    %c0_0 = arith.constant 0 : index
    %c0_1 = arith.constant 0 : index
    %0 = vector.load %arg1[%c0, %c0_0, %c0_1] : memref<2x16x64xf32, #tpu.memory_space<vmem>>, vector<2x16x64xf32>
    %1 = vector.shape_cast %0 : vector<2x16x64xf32> to vector<32x64xf32>
    %c0_2 = arith.constant 0 : index
    %c64 = arith.constant 64 : index
    %2 = vector.load %arg9[%c0_2, %c64] : memref<32x192xf32, #tpu.memory_space<vmem>>, vector<32x64xf32>
    tpu.vector_store %arg9[%c0_2, %c64], %1 {strides = array<i32>} : memref<32x192xf32, #tpu.memory_space<vmem>>, vector<32x64xf32>,
    %3 = vector.extract_strided_slice %1 {offsets = [0, 0], sizes = [31, 64], strides = [1, 1]} : vector<32x64xf32> to vector<31x64xf32>
    %c1 = arith.constant 1 : index
    %c0_3 = arith.constant 0 : index
    %4 = vector.load %arg9[%c1, %c0_3] : memref<32x192xf32, #tpu.memory_space<vmem>>, vector<31x64xf32>
    tpu.vector_store %arg9[%c1, %c0_3], %3 {strides = array<i32>} : memref<32x192xf32, #tpu.memory_space<vmem>>, vector<31x64xf32>,
    %5 = vector.extract_strided_slice %1 {offsets = [1, 0], sizes = [31, 64], strides = [1, 1]} : vector<32x64xf32> to vector<31x64xf32>
    %c0_4 = arith.constant 0 : index
    %c128 = arith.constant 128 : index
    %6 = vector.load %arg9[%c0_4, %c128] : memref<32x192xf32, #tpu.memory_space<vmem>>, vector<31x64xf32>
    tpu.vector_store %arg9[%c0_4, %c128], %5 {strides = array<i32>} : memref<32x192xf32, #tpu.memory_space<vmem>>, vector<31x64xf32>,
    %cst = arith.constant 0.000000e+00 : f32
    %7 = vector.broadcast %cst : f32 to vector<1x64xf32>
    %c0_5 = arith.constant 0 : index
    %c0_6 = arith.constant 0 : index
    %8 = vector.load %arg9[%c0_5, %c0_6] : memref<32x192xf32, #tpu.memory_space<vmem>>, vector<1x64xf32>
    tpu.vector_store %arg9[%c0_5, %c0_6], %7 {strides = array<i32>} : memref<32x192xf32, #tpu.memory_space<vmem>>, vector<1x64xf32>,
    %c15 = arith.constant 15 : index
    %c128_7 = arith.constant 128 : index
    %9 = vector.load %arg9[%c15, %c128_7] : memref<32x192xf32, #tpu.memory_space<vmem>>, vector<1x64xf32>
    tpu.vector_store %arg9[%c15, %c128_7], %7 {strides = array<i32>} : memref<32x192xf32, #tpu.memory_space<vmem>>, vector<1x64xf32>,
    %c16 = arith.constant 16 : index
    %c0_8 = arith.constant 0 : index
    %10 = vector.load %arg9[%c16, %c0_8] : memref<32x192xf32, #tpu.memory_space<vmem>>, vector<1x64xf32>
    tpu.vector_store %arg9[%c16, %c0_8], %7 {strides = array<i32>} : memref<32x192xf32, #tpu.memory_space<vmem>>, vector<1x64xf32>,
    %c31 = arith.constant 31 : index
    %c128_9 = arith.constant 128 : index
    %11 = vector.load %arg9[%c31, %c128_9] : memref<32x192xf32, #tpu.memory_space<vmem>>, vector<1x64xf32>
    tpu.vector_store %arg9[%c31, %c128_9], %7 {strides = array<i32>} : memref<32x192xf32, #tpu.memory_space<vmem>>, vector<1x64xf32>,
    %c0_10 = arith.constant 0 : index
    %c0_11 = arith.constant 0 : index
    %12 = vector.load %arg9[%c0_10, %c0_11] : memref<32x192xf32, #tpu.memory_space<vmem>>, vector<32x192xf32>
    %c0_12 = arith.constant 0 : index
    %c0_13 = arith.constant 0 : index
    %13 = vector.load %arg2[%c0_12, %c0_13] : memref<192x256xf32, #tpu.memory_space<vmem>>, vector<192x256xf32>
    %cst_14 = arith.constant dense<0.000000e+00> : vector<32x256xf32>
    %14 = tpu.matmul %12, %13, %cst_14 {dimension_numbers = #tpu.dot_dimension_numbers<[1], [0], [0], [1], [0, 0, 1, 1], [], []>, precision = #tpu.contract_precision<fp32>} : vector<32x192xf32>, vector<192x256xf32>, vector<32x256xf32> -> vector<32x256xf32>
    %c0_15 = arith.constant 0 : index
    %c0_16 = arith.constant 0 : index
    %15 = vector.load %arg3[%c0_15, %c0_16] : memref<1x256xf32, #tpu.memory_space<vmem>>, vector<1x256xf32>
    %16 = vector.broadcast %15 : vector<1x256xf32> to vector<32x256xf32>
    %17 = arith.mulf %14, %16 : vector<32x256xf32>
    %c0_17 = arith.constant 0 : index
    %c0_18 = arith.constant 0 : index
    %18 = vector.load %arg4[%c0_17, %c0_18] : memref<1x256xf32, #tpu.memory_space<vmem>>, vector<1x256xf32>
    %19 = vector.broadcast %18 : vector<1x256xf32> to vector<32x256xf32>
    %20 = arith.addf %17, %19 : vector<32x256xf32>
    %21 = vector.extract_strided_slice %20 {offsets = [0, 0], sizes = [32, 128], strides = [1, 1]} : vector<32x256xf32> to vector<32x128xf32>
    %cst_19 = arith.constant 0.000000e+00 : f32
    %22 = vector.broadcast %cst_19 : f32 to vector<32x128xf32>
    %23 = arith.maximumf %21, %22 : vector<32x128xf32>
    %24 = vector.extract_strided_slice %20 {offsets = [0, 128], sizes = [32, 128], strides = [1, 1]} : vector<32x256xf32> to vector<32x128xf32>
    %c0_20 = arith.constant 0 : index
    %c128_21 = arith.constant 128 : index
    %25 = vector.load %arg10[%c0_20, %c128_21] : memref<32x384xf32, #tpu.memory_space<vmem>>, vector<32x128xf32>
    tpu.vector_store %arg10[%c0_20, %c128_21], %23 {strides = array<i32>} : memref<32x384xf32, #tpu.memory_space<vmem>>, vector<32x128xf32>,
    %26 = vector.extract_strided_slice %23 {offsets = [0, 0], sizes = [31, 128], strides = [1, 1]} : vector<32x128xf32> to vector<31x128xf32>
    %c1_22 = arith.constant 1 : index
    %c0_23 = arith.constant 0 : index
    %27 = vector.load %arg10[%c1_22, %c0_23] : memref<32x384xf32, #tpu.memory_space<vmem>>, vector<31x128xf32>
    tpu.vector_store %arg10[%c1_22, %c0_23], %26 {strides = array<i32>} : memref<32x384xf32, #tpu.memory_space<vmem>>, vector<31x128xf32>,
    %28 = vector.extract_strided_slice %23 {offsets = [1, 0], sizes = [31, 128], strides = [1, 1]} : vector<32x128xf32> to vector<31x128xf32>
    %c0_24 = arith.constant 0 : index
    %c256 = arith.constant 256 : index
    %29 = vector.load %arg10[%c0_24, %c256] : memref<32x384xf32, #tpu.memory_space<vmem>>, vector<31x128xf32>
    tpu.vector_store %arg10[%c0_24, %c256], %28 {strides = array<i32>} : memref<32x384xf32, #tpu.memory_space<vmem>>, vector<31x128xf32>,
    %cst_25 = arith.constant 0.000000e+00 : f32
    %30 = vector.broadcast %cst_25 : f32 to vector<1x128xf32>
    %c0_26 = arith.constant 0 : index
    %c0_27 = arith.constant 0 : index
    %31 = vector.load %arg10[%c0_26, %c0_27] : memref<32x384xf32, #tpu.memory_space<vmem>>, vector<1x128xf32>
    tpu.vector_store %arg10[%c0_26, %c0_27], %30 {strides = array<i32>} : memref<32x384xf32, #tpu.memory_space<vmem>>, vector<1x128xf32>,
    %c15_28 = arith.constant 15 : index
    %c256_29 = arith.constant 256 : index
    %32 = vector.load %arg10[%c15_28, %c256_29] : memref<32x384xf32, #tpu.memory_space<vmem>>, vector<1x128xf32>
    tpu.vector_store %arg10[%c15_28, %c256_29], %30 {strides = array<i32>} : memref<32x384xf32, #tpu.memory_space<vmem>>, vector<1x128xf32>,
    %c16_30 = arith.constant 16 : index
    %c0_31 = arith.constant 0 : index
    %33 = vector.load %arg10[%c16_30, %c0_31] : memref<32x384xf32, #tpu.memory_space<vmem>>, vector<1x128xf32>
    tpu.vector_store %arg10[%c16_30, %c0_31], %30 {strides = array<i32>} : memref<32x384xf32, #tpu.memory_space<vmem>>, vector<1x128xf32>,
    %c31_32 = arith.constant 31 : index
    %c256_33 = arith.constant 256 : index
    %34 = vector.load %arg10[%c31_32, %c256_33] : memref<32x384xf32, #tpu.memory_space<vmem>>, vector<1x128xf32>
    tpu.vector_store %arg10[%c31_32, %c256_33], %30 {strides = array<i32>} : memref<32x384xf32, #tpu.memory_space<vmem>>, vector<1x128xf32>,
    %c0_34 = arith.constant 0 : index
    %c0_35 = arith.constant 0 : index
    %35 = vector.load %arg10[%c0_34, %c0_35] : memref<32x384xf32, #tpu.memory_space<vmem>>, vector<32x384xf32>
    %c0_36 = arith.constant 0 : index
    %c0_37 = arith.constant 0 : index
    %36 = vector.load %arg5[%c0_36, %c0_37] : memref<384x128xf32, #tpu.memory_space<vmem>>, vector<384x128xf32>
    %cst_38 = arith.constant dense<0.000000e+00> : vector<32x128xf32>
    %37 = tpu.matmul %35, %36, %cst_38 {dimension_numbers = #tpu.dot_dimension_numbers<[1], [0], [0], [1], [0, 0, 1, 1], [], []>, precision = #tpu.contract_precision<fp32>} : vector<32x384xf32>, vector<384x128xf32>, vector<32x128xf32> -> vector<32x128xf32>
    %c0_39 = arith.constant 0 : index
    %c0_40 = arith.constant 0 : index
    %38 = vector.load %arg6[%c0_39, %c0_40] : memref<1x128xf32, #tpu.memory_space<vmem>>, vector<1x128xf32>
    %39 = vector.broadcast %38 : vector<1x128xf32> to vector<32x128xf32>
    %40 = arith.mulf %37, %39 : vector<32x128xf32>
    %c0_41 = arith.constant 0 : index
    %c0_42 = arith.constant 0 : index
    %41 = vector.load %arg7[%c0_41, %c0_42] : memref<1x128xf32, #tpu.memory_space<vmem>>, vector<1x128xf32>
    %42 = vector.broadcast %41 : vector<1x128xf32> to vector<32x128xf32>
    %43 = arith.addf %40, %42 : vector<32x128xf32>
    %44 = arith.addf %43, %24 : vector<32x128xf32>
    %cst_43 = arith.constant 0.000000e+00 : f32
    %45 = vector.broadcast %cst_43 : f32 to vector<32x128xf32>
    %46 = arith.maximumf %44, %45 : vector<32x128xf32>
    %47 = vector.shape_cast %46 : vector<32x128xf32> to vector<2x16x128xf32>
    %c0_44 = arith.constant 0 : index
    %c0_45 = arith.constant 0 : index
    %c0_46 = arith.constant 0 : index
    %48 = vector.load %arg8[%c0_44, %c0_45, %c0_46] : memref<2x16x128xf32, #tpu.memory_space<vmem>>, vector<2x16x128xf32>
    tpu.vector_store %arg8[%c0_44, %c0_45, %c0_46], %47 {strides = array<i32>} : memref<2x16x128xf32, #tpu.memory_space<vmem>>, vector<2x16x128xf32>,
    return
  }
  func.func @transform_0(%arg0: i32) -> (i32, i32, i32) {
    %c0_i32 = arith.constant 0 : i32
    %c0_i32_0 = arith.constant 0 : i32
    %c0_i32_1 = arith.constant 0 : i32
    return %arg0, %c0_i32, %c0_i32_0 : i32, i32, i32
  }
  func.func @transform_1(%arg0: i32) -> (i32, i32) {
    %c0_i32 = arith.constant 0 : i32
    %c0_i32_0 = arith.constant 0 : i32
    %c0_i32_1 = arith.constant 0 : i32
    return %c0_i32, %c0_i32_0 : i32, i32
  }
  func.func @transform_2(%arg0: i32) -> (i32, i32) {
    %c0_i32 = arith.constant 0 : i32
    %c0_i32_0 = arith.constant 0 : i32
    %c0_i32_1 = arith.constant 0 : i32
    return %c0_i32, %c0_i32_0 : i32, i32
  }
  func.func @transform_3(%arg0: i32) -> (i32, i32) {
    %c0_i32 = arith.constant 0 : i32
    %c0_i32_0 = arith.constant 0 : i32
    %c0_i32_1 = arith.constant 0 : i32
    return %c0_i32, %c0_i32_0 : i32, i32
  }
  func.func @transform_4(%arg0: i32) -> (i32, i32) {
    %c0_i32 = arith.constant 0 : i32
    %c0_i32_0 = arith.constant 0 : i32
    %c0_i32_1 = arith.constant 0 : i32
    return %c0_i32, %c0_i32_0 : i32, i32
  }
  func.func @transform_5(%arg0: i32) -> (i32, i32) {
    %c0_i32 = arith.constant 0 : i32
    %c0_i32_0 = arith.constant 0 : i32
    %c0_i32_1 = arith.constant 0 : i32
    return %c0_i32, %c0_i32_0 : i32, i32
  }
  func.func @transform_6(%arg0: i32) -> (i32, i32) {
    %c0_i32 = arith.constant 0 : i32
    %c0_i32_0 = arith.constant 0 : i32
    %c0_i32_1 = arith.constant 0 : i32
    return %c0_i32, %c0_i32_0 : i32, i32
  }
  func.func @transform_7(%arg0: i32) -> (i32, i32, i32) {
    %c0_i32 = arith.constant 0 : i32
    %c0_i32_0 = arith.constant 0 : i32
    %c0_i32_1 = arith.constant 0 : i32
    return %arg0, %c0_i32, %c0_i32_0 : i32, i32, i32
  }
}

</mosaic_0001>

<bundles_post_ra>
// kernel: tile.33
= control target key start
LH: loop header
LB: loop body
LE: loop exit
PB: predicated region body
PF: predicated region fallthrough
CT: control target
= control target key end

     0   :  { %s28_s0 = inlined_call_operand.vmem [shape: f32[8], index: 0, kind: input, shape index: {}]   ;;  %s29_s1 = inlined_call_operand.vmem [shape: f32[16,8], index: 1, kind: output, shape index: {}]  }
   0x1   :  { %v4_v0 = vld [vmem:[%s28_s0] ss:$0 sm:$0xff] }
   0x2   :  { %5 = vst [vmem:[%s29_s1] sm:$0xff] %v4_v0  ;;  %8 = vst [vmem:[%s29_s1 + $0x8] sm:$0xff] %v4_v0 }

// kernel: tile.34
= control target key start
LH: loop header
LB: loop body
LE: loop exit
PB: predicated region body
PF: predicated region fallthrough
CT: control target
= control target key end

     0   :  { %s131_s10 = smov 120   ;;  %s132_s11 = smov 104   ;;  %vm3_vm0 = vcmask 64512   ;;  %vm9_vm1 = vcmask 1048512   ;;  %vm15_vm2 = vcmask 982912   ;;  %vm21_vm3 = vcmask 917312   ;;  %s207_s0 = inlined_call_operand.vmem [shape: f32[16,8], index: 0, kind: input, shape index: {}]   ;;  %s208_s1 = inlined_call_operand.vmem [shape: f32[128], index: 1, kind: output, shape index: {}]  }
   0x1   :  { %v101_v0 = vld [vmem:[%s207_s0 + $0xf] sm:$0x1]   ;;  %v103_v1 = vld [vmem:[%s207_s0 + $0xd] sm:$0x1]   ;;  %v102_v2 = vld [vmem:[%s207_s0 + $0xe] sm:$0x1]  }
   0x2   :  { %7 = vrot.lane.b32.xlu0 %v101_v0, %s131_s10  ;;  %19 = vrot.lane.b32.xlu1 %v103_v1, %s132_s11  ;;  %v104_v3 = vld [vmem:[%s207_s0 + $0xc] sm:$0x1]   ;;  %s133_s16 = smov 112   ;;  %s134_s17 = smov 96   ;;  %v105_v4 = vld [vmem:[%s207_s0 + $0xb] sm:$0x1]  }
   0x3   :  { %v106_v5 = vld [vmem:[%s207_s0 + $0xa] sm:$0x1]   ;;  %v2_v6 = vld [vmem:[%s207_s0] sm:$0x1]   ;;  %s135_s24 = smov 88   ;;  %s136_s25 = smov 80  }
   0x4   :  { %4 = vst.msk [vmem:[#allocation0] sm:$0x1] %vm3_vm0, %v2_v6   ;;  %v107_v7 = vld [vmem:[%s207_s0 + $0x9] sm:$0x1]   ;;  %v108_v8 = vld [vmem:[%s207_s0 + $0x8] sm:$0x1]  }
   0x5   :  { %s137_s30 = smov 72   ;;  %s138_s2 = smov 64   ;;  %v109_v9 = vld [vmem:[%s207_s0 + $0x7] sm:$0x1]   ;;  %v110_v10 = vld [vmem:[%s207_s0 + $0x6] sm:$0x1]  }
   0x6   :  { %13 = vrot.lane.b32.xlu0 %v102_v2, %s133_s16  ;;  %25 = vrot.lane.b32.xlu1 %v104_v3, %s134_s17  ;;  %s139_s7 = smov 56   ;;  %s140_s8 = smov 48   ;;  %v111_v11 = vld [vmem:[%s207_s0 + $0x5] sm:$0x1]   ;;  %v112_v12 = vld [vmem:[%s207_s0 + $0x4] sm:$0x1]  }
   0x7   :  { %s141_s13 = smov 40   ;;  %s142_s14 = smov 32   ;;  %v113_v13 = vld [vmem:[%s207_s0 + $0x3] sm:$0x1]   ;;  %v114_v14 = vld [vmem:[%s207_s0 + $0x2] sm:$0x1]  }
   0x8   :  { %s143_s19 = smov 24   ;;  %s144_s20 = smov 16   ;;  %v115_v15 = vld [vmem:[%s207_s0 + $0x1] sm:$0x1]   ;;  %vm27_vm4 = vcmask 851712   ;;  %vm33_vm5 = vcmask 786112  }
   0x9   :  { %s145_s0 = smov 8   ;;  %vm39_vm6 = vcmask 720512   ;;  %vm45_vm7 = vcmask 654912   ;;  %vm51_vm8 = vcmask 589312   ;;  %vm57_vm9 = vcmask 523712  }
   0xa   :  { %31 = vrot.lane.b32.xlu0 %v105_v4, %s135_s24  ;;  %37 = vrot.lane.b32.xlu1 %v106_v5, %s136_s25  ;;  %vm63_vm10 = vcmask 458112   ;;  %vm69_vm11 = vcmask 392512   ;;  %vm75_vm12 = vcmask 326912   ;;  %vm81_vm13 = vcmask 261312  }
   0xb   :  { %vm87_vm14 = vcmask 195712   ;;  %vm93_vm15 = vcmask 130112  }
   0xe   :  { %43 = vrot.lane.b32.xlu0 %v107_v7, %s137_s30  ;;  %49 = vrot.lane.b32.xlu1 %v108_v8, %s138_s2 }
  0x12   :  { %55 = vrot.lane.b32.xlu0 %v109_v9, %s139_s7  ;;  %61 = vrot.lane.b32.xlu1 %v110_v10, %s140_s8 }
  0x16   :  { %67 = vrot.lane.b32.xlu0 %v111_v11, %s141_s13  ;;  %73 = vrot.lane.b32.xlu1 %v112_v12, %s142_s14 }
  0x1a   :  { %79 = vrot.lane.b32.xlu0 %v113_v13, %s143_s19  ;;  %85 = vrot.lane.b32.xlu1 %v114_v14, %s144_s20 }
  0x1e   :  { %91 = vrot.lane.b32.xlu0 %v115_v15, %s145_s0 }
  0x74   :  { %v8_v16 = vpop.permute.xlu0 %7   ;;  %v20_v17 = vpop.permute.xlu1 %19  }
  0x75   :  { %10 = vst.msk [vmem:[#allocation0] sm:$0x1] %vm9_vm1, %v8_v16  }
  0x78   :  { %v14_v18 = vpop.permute.xlu0 %13   ;;  %v26_v19 = vpop.permute.xlu1 %25  }
  0x79   :  { %16 = vst.msk [vmem:[#allocation0] sm:$0x1] %vm15_vm2, %v14_v18  }
  0x7a   :  { %22 = vst.msk [vmem:[#allocation0] sm:$0x1] %vm21_vm3, %v20_v17  }
  0x7b   :  { %28 = vst.msk [vmem:[#allocation0] sm:$0x1] %vm27_vm4, %v26_v19  }
  0x7c   :  { %v32_v20 = vpop.permute.xlu0 %31   ;;  %v38_v21 = vpop.permute.xlu1 %37  }
  0x7d   :  { %34 = vst.msk [vmem:[#allocation0] sm:$0x1] %vm33_vm5, %v32_v20  }
  0x7e   :  { %40 = vst.msk [vmem:[#allocation0] sm:$0x1] %vm39_vm6, %v38_v21  }
  0x80   :  { %v44_v22 = vpop.permute.xlu0 %43   ;;  %v50_v23 = vpop.permute.xlu1 %49  }
  0x81   :  { %46 = vst.msk [vmem:[#allocation0] sm:$0x1] %vm45_vm7, %v44_v22  }
  0x82   :  { %52 = vst.msk [vmem:[#allocation0] sm:$0x1] %vm51_vm8, %v50_v23  }
  0x84   :  { %v56_v24 = vpop.permute.xlu0 %55   ;;  %v62_v25 = vpop.permute.xlu1 %61  }
  0x85   :  { %58 = vst.msk [vmem:[#allocation0] sm:$0x1] %vm57_vm9, %v56_v24  }
  0x86   :  { %64 = vst.msk [vmem:[#allocation0] sm:$0x1] %vm63_vm10, %v62_v25  }
  0x88   :  { %v68_v26 = vpop.permute.xlu0 %67   ;;  %v74_v27 = vpop.permute.xlu1 %73  }
  0x89   :  { %70 = vst.msk [vmem:[#allocation0] sm:$0x1] %vm69_vm11, %v68_v26  }
  0x8a   :  { %76 = vst.msk [vmem:[#allocation0] sm:$0x1] %vm75_vm12, %v74_v27  }
  0x8c   :  { %v80_v28 = vpop.permute.xlu0 %79   ;;  %v86_v29 = vpop.permute.xlu1 %85  }
  0x8d   :  { %82 = vst.msk [vmem:[#allocation0] sm:$0x1] %vm81_vm13, %v80_v28  }
  0x8e   :  { %88 = vst.msk [vmem:[#allocation0] sm:$0x1] %vm87_vm14, %v86_v29  }
  0x90   :  { %v92_v30 = vpop.permute.xlu0 %91  }
  0x91   :  { %94 = vst.msk [vmem:[#allocation0] sm:$0x1] %vm93_vm15, %v92_v30  }
  0x98   :  { %v98_v31 = vld [vmem:[#allocation0] sm:$0x1] }
  0x99   :  { %100 = vst [vmem:[%s208_s1] sm:$0x1] %v98_v31 }

// kernel: tile.54
= control target key start
LH: loop header
LB: loop body
LE: loop exit
PB: predicated region body
PF: predicated region fallthrough
CT: control target
= control target key end

     0   :  { %s131_s10 = smov 120   ;;  %s132_s11 = smov 104   ;;  %vm3_vm0 = vcmask 64512   ;;  %vm9_vm1 = vcmask 1048512   ;;  %vm15_vm2 = vcmask 982912   ;;  %vm21_vm3 = vcmask 917312   ;;  %s207_s0 = inlined_call_operand.vmem [shape: f32[16,8], index: 0, kind: input, shape index: {}]   ;;  %s208_s1 = inlined_call_operand.vmem [shape: f32[1,128], index: 1, kind: output, shape index: {}]  }
   0x1   :  { %v101_v0 = vld [vmem:[%s207_s0 + $0xf] sm:$0x1]   ;;  %v103_v1 = vld [vmem:[%s207_s0 + $0xd] sm:$0x1]   ;;  %v102_v2 = vld [vmem:[%s207_s0 + $0xe] sm:$0x1]  }
   0x2   :  { %7 = vrot.lane.b32.xlu0 %v101_v0, %s131_s10  ;;  %19 = vrot.lane.b32.xlu1 %v103_v1, %s132_s11  ;;  %v104_v3 = vld [vmem:[%s207_s0 + $0xc] sm:$0x1]   ;;  %s133_s16 = smov 112   ;;  %s134_s17 = smov 96   ;;  %v105_v4 = vld [vmem:[%s207_s0 + $0xb] sm:$0x1]  }
   0x3   :  { %v106_v5 = vld [vmem:[%s207_s0 + $0xa] sm:$0x1]   ;;  %v2_v6 = vld [vmem:[%s207_s0] sm:$0x1]   ;;  %s135_s24 = smov 88   ;;  %s136_s25 = smov 80  }
   0x4   :  { %4 = vst.msk [vmem:[#allocation0] sm:$0x1] %vm3_vm0, %v2_v6   ;;  %v107_v7 = vld [vmem:[%s207_s0 + $0x9] sm:$0x1]   ;;  %v108_v8 = vld [vmem:[%s207_s0 + $0x8] sm:$0x1]  }
   0x5   :  { %s137_s30 = smov 72   ;;  %s138_s2 = smov 64   ;;  %v109_v9 = vld [vmem:[%s207_s0 + $0x7] sm:$0x1]   ;;  %v110_v10 = vld [vmem:[%s207_s0 + $0x6] sm:$0x1]  }
   0x6   :  { %13 = vrot.lane.b32.xlu0 %v102_v2, %s133_s16  ;;  %25 = vrot.lane.b32.xlu1 %v104_v3, %s134_s17  ;;  %s139_s7 = smov 56   ;;  %s140_s8 = smov 48   ;;  %v111_v11 = vld [vmem:[%s207_s0 + $0x5] sm:$0x1]   ;;  %v112_v12 = vld [vmem:[%s207_s0 + $0x4] sm:$0x1]  }
   0x7   :  { %s141_s13 = smov 40   ;;  %s142_s14 = smov 32   ;;  %v113_v13 = vld [vmem:[%s207_s0 + $0x3] sm:$0x1]   ;;  %v114_v14 = vld [vmem:[%s207_s0 + $0x2] sm:$0x1]  }
   0x8   :  { %s143_s19 = smov 24   ;;  %s144_s20 = smov 16   ;;  %v115_v15 = vld [vmem:[%s207_s0 + $0x1] sm:$0x1]   ;;  %vm27_vm4 = vcmask 851712   ;;  %vm33_vm5 = vcmask 786112  }
   0x9   :  { %s145_s0 = smov 8   ;;  %vm39_vm6 = vcmask 720512   ;;  %vm45_vm7 = vcmask 654912   ;;  %vm51_vm8 = vcmask 589312   ;;  %vm57_vm9 = vcmask 523712  }
   0xa   :  { %31 = vrot.lane.b32.xlu0 %v105_v4, %s135_s24  ;;  %37 = vrot.lane.b32.xlu1 %v106_v5, %s136_s25  ;;  %vm63_vm10 = vcmask 458112   ;;  %vm69_vm11 = vcmask 392512   ;;  %vm75_vm12 = vcmask 326912   ;;  %vm81_vm13 = vcmask 261312  }
   0xb   :  { %vm87_vm14 = vcmask 195712   ;;  %vm93_vm15 = vcmask 130112  }
   0xe   :  { %43 = vrot.lane.b32.xlu0 %v107_v7, %s137_s30  ;;  %49 = vrot.lane.b32.xlu1 %v108_v8, %s138_s2 }
  0x12   :  { %55 = vrot.lane.b32.xlu0 %v109_v9, %s139_s7  ;;  %61 = vrot.lane.b32.xlu1 %v110_v10, %s140_s8 }
  0x16   :  { %67 = vrot.lane.b32.xlu0 %v111_v11, %s141_s13  ;;  %73 = vrot.lane.b32.xlu1 %v112_v12, %s142_s14 }
  0x1a   :  { %79 = vrot.lane.b32.xlu0 %v113_v13, %s143_s19  ;;  %85 = vrot.lane.b32.xlu1 %v114_v14, %s144_s20 }
  0x1e   :  { %91 = vrot.lane.b32.xlu0 %v115_v15, %s145_s0 }
  0x74   :  { %v8_v16 = vpop.permute.xlu0 %7   ;;  %v20_v17 = vpop.permute.xlu1 %19  }
  0x75   :  { %10 = vst.msk [vmem:[#allocation0] sm:$0x1] %vm9_vm1, %v8_v16  }
  0x78   :  { %v14_v18 = vpop.permute.xlu0 %13   ;;  %v26_v19 = vpop.permute.xlu1 %25  }
  0x79   :  { %16 = vst.msk [vmem:[#allocation0] sm:$0x1] %vm15_vm2, %v14_v18  }
  0x7a   :  { %22 = vst.msk [vmem:[#allocation0] sm:$0x1] %vm21_vm3, %v20_v17  }
  0x7b   :  { %28 = vst.msk [vmem:[#allocation0] sm:$0x1] %vm27_vm4, %v26_v19  }
  0x7c   :  { %v32_v20 = vpop.permute.xlu0 %31   ;;  %v38_v21 = vpop.permute.xlu1 %37  }
  0x7d   :  { %34 = vst.msk [vmem:[#allocation0] sm:$0x1] %vm33_vm5, %v32_v20  }
  0x7e   :  { %40 = vst.msk [vmem:[#allocation0] sm:$0x1] %vm39_vm6, %v38_v21  }
  0x80   :  { %v44_v22 = vpop.permute.xlu0 %43   ;;  %v50_v23 = vpop.permute.xlu1 %49  }
  0x81   :  { %46 = vst.msk [vmem:[#allocation0] sm:$0x1] %vm45_vm7, %v44_v22  }
  0x82   :  { %52 = vst.msk [vmem:[#allocation0] sm:$0x1] %vm51_vm8, %v50_v23  }
  0x84   :  { %v56_v24 = vpop.permute.xlu0 %55   ;;  %v62_v25 = vpop.permute.xlu1 %61  }
  0x85   :  { %58 = vst.msk [vmem:[#allocation0] sm:$0x1] %vm57_vm9, %v56_v24  }
  0x86   :  { %64 = vst.msk [vmem:[#allocation0] sm:$0x1] %vm63_vm10, %v62_v25  }
  0x88   :  { %v68_v26 = vpop.permute.xlu0 %67   ;;  %v74_v27 = vpop.permute.xlu1 %73  }
  0x89   :  { %70 = vst.msk [vmem:[#allocation0] sm:$0x1] %vm69_vm11, %v68_v26  }
  0x8a   :  { %76 = vst.msk [vmem:[#allocation0] sm:$0x1] %vm75_vm12, %v74_v27  }
  0x8c   :  { %v80_v28 = vpop.permute.xlu0 %79   ;;  %v86_v29 = vpop.permute.xlu1 %85  }
  0x8d   :  { %82 = vst.msk [vmem:[#allocation0] sm:$0x1] %vm81_vm13, %v80_v28  }
  0x8e   :  { %88 = vst.msk [vmem:[#allocation0] sm:$0x1] %vm87_vm14, %v86_v29  }
  0x90   :  { %v92_v30 = vpop.permute.xlu0 %91  }
  0x91   :  { %94 = vst.msk [vmem:[#allocation0] sm:$0x1] %vm93_vm15, %v92_v30  }
  0x98   :  { %v98_v31 = vld [vmem:[#allocation0] sm:$0x1] }
  0x99   :  { %100 = vst [vmem:[%s208_s1] sm:$0x1] %v98_v31 }

// kernel: double_conv_nhwc.1
= control target key start
LH: loop header
LB: loop body
LE: loop exit
PB: predicated region body
PF: predicated region fallthrough
CT: control target
= control target key end

     0   :  { %vm65_vm0 = vcmask 523264   ;;  %vm69_vm1 = vcmask 1046528   ;;  %vm84_vm2 = vcmask 522240   ;;  %vm86_vm3 = vcmask 516096   ;;  %s4773_s30 = smov 64   ;;  %s7236_s0 = inlined_call_operand.vmem [shape: f32[2,16,64], index: 0, kind: input, shape index: {}]   ;;  %s7237_s1 = inlined_call_operand.vmem [shape: f32[192,256], index: 1, kind: input, shape index: {}]   ;;  %s7238_s4 = inlined_call_operand.vmem [shape: f32[384,128], index: 4, kind: input, shape index: {}]   ;;  %s7239_s2 = inlined_call_operand.vmem [shape: f32[1,256], index: 2, kind: input, shape index: {}]   ;;  %s7240_s3 = inlined_call_operand.vmem [shape: f32[1,256], index: 3, kind: input, shape index: {}]   ;;  %s7241_s5 = inlined_call_operand.vmem [shape: f32[1,128], index: 5, kind: input, shape index: {}]   ;;  %s7242_s6 = inlined_call_operand.vmem [shape: f32[1,128], index: 6, kind: input, shape index: {}]   ;;  %s7243_s7 = inlined_call_operand.vmem [shape: f32[2,16,128], index: 7, kind: output, shape index: {}]  }
   0x1   :  { %v4818_v0 = vld [vmem:[%s7236_s0] sm:$0xff]  ;;  %v4823_v1 = vld [vmem:[%s7236_s0 + $0x8] sm:$0xff]  ;;  %v4828_v2 = vld [vmem:[%s7236_s0 + $0x10] sm:$0xff]  ;;  %v7244_v9 = vmov 0.0   ;;  %vm51_vm4 = vcmask 1040384   ;;  %vm46_vm5 = vcmask 1048064  }
   0x2   :  { %7559 = vst [vmem:[#allocation4_spill] sm:$0xff] %v4818_v0  ;;  %34 = vrot.lane.b32.xlu0 %v4818_v0, %s4773_s30  ;;  %v70_v4 = vrot.slane %v4818_v0, 1  ;;  %v71_v6 = vrot.slane %v4823_v1, 1  ;;  %38 = vrot.lane.b32.xlu1 %v4828_v2, %s4773_s30  ;;  %v4841_v7 = vld [vmem:[%s7236_s0 + $0x18] sm:$0xff]  ;;  %v100_v8 = vld [vmem:[%s7237_s1 + $0x8] sm:$0xff]  ;;  %v73_v11 = vrot.slane %v4828_v2, 1 }
   0x3   :  { %90 = vst.msk [vmem:[#allocation2 + $0x3f] sm:$0x1] %vm86_vm3, %v7244_v9  ;;  %1503 = vst [vmem:[#allocation3] sm:$0x1] %v7244_v9  ;;  %v75_v13 = vrot.slane %v4841_v7, 1  ;;  %v102_v14 = vld [vmem:[%s7237_s1 + $0x18] sm:$0xff] }
   0x4   :  { %1506 = vst [vmem:[#allocation3 + $0x5f] sm:$0x1] %v7244_v9  ;;  %v99_v15 = vld [vmem:[%s7237_s1] sm:$0xff]  ;;  %v72_v16 = vsel %vm69_vm1, %v70_v4, %v71_v6  ;;  %v159_v17 = vand.u32 4294901760, %v100_v8  ;;  %v163_v18 = vand.u32 4294901760, %v102_v14  ;;  %v101_v19 = vld [vmem:[%s7237_s1 + $0x10] sm:$0xff]  ;;  %v74_v23 = vsel %vm69_vm1, %v71_v6, %v73_v11 }
   0x5   :  { %v161_v20 = vand.u32 4294901760, %v99_v15  ;;  %v104_v21 = vld [vmem:[%s7237_s1 + $0x28] sm:$0xff]  ;;  %v106_v22 = vld [vmem:[%s7237_s1 + $0x38] sm:$0xff]  ;;  %81 = vst.msk [vmem:[#allocation2 + $0x8] sm:$0xff] %vm65_vm0, %v72_v16  ;;  %v76_v24 = vsel %vm69_vm1, %v73_v11, %v75_v13  ;;  %v165_v25 = vand.u32 4294901760, %v101_v19  ;;  %v103_v27 = vld [vmem:[%s7237_s1 + $0x20] sm:$0xff] }
   0x6   :  { %85 = vst.msk [vmem:[#allocation2 + $0x38] sm:$0x7f] %vm84_vm2, %v75_v13  ;;  %v167_v26 = vand.u32 4294901760, %v104_v21  ;;  %v105_v28 = vld [vmem:[%s7237_s1 + $0x30] sm:$0xff]  ;;  %v108_v29 = vld [vmem:[%s7237_s1 + $0x48] sm:$0xff]  ;;  %36 = vrot.lane.b32.xlu0 %v4823_v1, %s4773_s30  ;;  %40 = vrot.lane.b32.xlu1 %v4841_v7, %s4773_s30  ;;  %v4889_v30 = vpack.c.bf16 %v163_v18, %v159_v17  ;;  %v4891_v31 = vsub.f32 %v100_v8, %v159_v17  ;;  %v171_v33 = vand.u32 4294901760, %v106_v22 }
   0x7   :  { %82 = vst.msk [vmem:[#allocation2 + $0x18] sm:$0xff] %vm65_vm0, %v74_v23  ;;  %83 = vst.msk [vmem:[#allocation2 + $0x28] sm:$0xff] %vm65_vm0, %v76_v24  ;;  %v4893_v32 = vsub.f32 %v102_v14, %v163_v18  ;;  %v110_v34 = vld [vmem:[%s7237_s1 + $0x58] sm:$0xff]  ;;  %v107_v35 = vld [vmem:[%s7237_s1 + $0x40] sm:$0xff]  ;;  %v4901_v36 = vpack.c.bf16 %v165_v25, %v161_v20  ;;  %v4903_v37 = vsub.f32 %v99_v15, %v161_v20  ;;  %v169_v44 = vand.u32 4294901760, %v103_v27 }
   0x8   :  { %7560 = vst [vmem:[#allocation5_spill] sm:$0xff] %v4889_v30  ;;  %v4905_v38 = vsub.f32 %v101_v19, %v165_v25  ;;  %v4907_v39 = vsub.f32 %v104_v21, %v167_v26  ;;  %v109_v40 = vld [vmem:[%s7237_s1 + $0x50] sm:$0xff]  ;;  %v112_v41 = vld [vmem:[%s7237_s1 + $0x68] sm:$0xff]  ;;  %88 = vst.msk [vmem:[#allocation2 + $0x1f] sm:$0x1] %vm86_vm3, %v7244_v9  ;;  %4020 = vmatprep.subr.bf16.mxu0 %v4889_v30  ;;  %v4918_v42 = vpack.c.bf16 %v171_v33, %v167_v26  ;;  %vm63_vm6 = vcmask 523265  }
   0x9   :  { %7561 = vst [vmem:[#allocation6_spill] sm:$0xff] %v4901_v36  ;;  %v4920_v43 = vsub.f32 %v106_v22, %v171_v33  ;;  %v173_v45 = vand.u32 4294901760, %v105_v28  ;;  %4022 = vmatpush1.bf16.msra.mxu0 %v4901_v36  ;;  %v175_v46 = vand.u32 4294901760, %v108_v29  ;;  %v179_v47 = vand.u32 4294901760, %v110_v34  ;;  %v114_v50 = vld [vmem:[%s7237_s1 + $0x78] sm:$0xff]  ;;  %v111_v51 = vld [vmem:[%s7237_s1 + $0x60] sm:$0xff] }
   0xa   :  { %7562 = vst [vmem:[#allocation7_spill] sm:$0xff] %v4905_v38  ;;  %7563 = vst [vmem:[#allocation8_spill] sm:$0xff] %v4918_v42  ;;  %v177_v48 = vand.u32 4294901760, %v107_v35  ;;  %v181_v49 = vand.u32 4294901760, %v109_v40  ;;  %4024 = vmatprep.subr.bf16.mxu0 %v4918_v42  ;;  %v4932_v53 = vsub.f32 %v103_v27, %v169_v44  ;;  %v183_v55 = vand.u32 4294901760, %v112_v41  ;;  %v113_v56 = vld [vmem:[%s7237_s1 + $0x70] sm:$0xff] }
   0xb   :  { %7564 = vst [vmem:[#allocation9_spill] sm:$0xff] %v4920_v43  ;;  %v4930_v52 = vpack.c.bf16 %v173_v45, %v169_v44  ;;  %v4934_v54 = vsub.f32 %v105_v28, %v173_v45  ;;  %v116_v57 = vld [vmem:[%s7237_s1 + $0x88] sm:$0xff]  ;;  %v118_v58 = vld [vmem:[%s7237_s1 + $0x98] sm:$0xff]  ;;  %v4945_v59 = vpack.c.bf16 %v179_v47, %v175_v46  ;;  %v4947_v60 = vsub.f32 %v108_v29, %v175_v46  ;;  %v115_v63 = vld [vmem:[%s7237_s1 + $0x80] sm:$0xff] }
   0xc   :  { %v4949_v61 = vsub.f32 %v110_v34, %v179_v47  ;;  %v4951_v62 = vpack.c.bf16 %v181_v49, %v177_v48  ;;  %v117_v4 = vld [vmem:[%s7237_s1 + $0x90] sm:$0xff]  ;;  %v4959_v6 = vsub.f32 %v107_v35, %v177_v48  ;;  %v4961_v8 = vsub.f32 %v109_v40, %v181_v49  ;;  %v120_v18 = vld [vmem:[%s7237_s1 + $0xa8] sm:$0xff]  ;;  %v122_v23 = vld [vmem:[%s7237_s1 + $0xb8] sm:$0xff] }
   0xd   :  { %7565 = vst [vmem:[#allocation10_spill] sm:$0xff] %v4930_v52  ;;  %7566 = vst [vmem:[#allocation11_spill] sm:$0xff] %v4945_v59  ;;  %v187_v11 = vand.u32 4294901760, %v114_v50  ;;  %v4963_v13 = vsub.f32 %v112_v41, %v183_v55  ;;  %4026 = vmatpush1.bf16.msra.mxu0 %v4930_v52  ;;  %v185_v14 = vand.u32 4294901760, %v111_v51  ;;  %v189_v15 = vand.u32 4294901760, %v113_v56  ;;  %v119_v24 = vld [vmem:[%s7237_s1 + $0xa0] sm:$0xff] }
   0xe   :  { %7567 = vst [vmem:[#allocation12_spill] sm:$0xff] %v4951_v62  ;;  %v191_v16 = vand.u32 4294901760, %v116_v57  ;;  %v195_v17 = vand.u32 4294901760, %v118_v58  ;;  %4028 = vmatprep.subr.bf16.mxu0 %v4945_v59  ;;  %v193_v21 = vand.u32 4294901760, %v115_v63  ;;  %v197_v22 = vand.u32 4294901760, %v117_v4  ;;  %v121_v25 = vld [vmem:[%s7237_s1 + $0xb0] sm:$0xff] }
   0xf   :  { %v4970_v19 = vpack.c.bf16 %v187_v11, %v183_v55  ;;  %v4972_v20 = vsub.f32 %v114_v50, %v187_v11  ;;  %v4983_v26 = vpack.c.bf16 %v189_v15, %v185_v14  ;;  %v4985_v27 = vsub.f32 %v111_v51, %v185_v14  ;;  %v124_v33 = vld [vmem:[%s7237_s1 + $0xc8] sm:$0xff]  ;;  %v126_v34 = vld [vmem:[%s7237_s1 + $0xd8] sm:$0xff]  ;;  %v123_v35 = vld [vmem:[%s7237_s1 + $0xc0] sm:$0xff] }
  0x10   :  { %v4987_v28 = vsub.f32 %v113_v56, %v189_v15  ;;  %v4989_v29 = vpack.c.bf16 %v195_v17, %v191_v16  ;;  %v5000_v40 = vsub.f32 %v116_v57, %v191_v16  ;;  %v5002_v41 = vsub.f32 %v118_v58, %v195_v17  ;;  %v125_v50 = vld [vmem:[%s7237_s1 + $0xd0] sm:$0xff]  ;;  %v128_v58 = vld [vmem:[%s7237_s1 + $0xe8] sm:$0xff]  ;;  %v127_v16 = vld [vmem:[%s7237_s1 + $0xe0] sm:$0xff] }
  0x11   :  { %7568 = vst [vmem:[#allocation13_spill] sm:$0xff] %v4970_v19  ;;  %7569 = vst [vmem:[#allocation14_spill] sm:$0xff] %v4983_v26  ;;  %v5004_v44 = vpack.c.bf16 %v197_v22, %v193_v21  ;;  %v5006_v45 = vsub.f32 %v115_v63, %v193_v21  ;;  %4030 = vmatpush1.bf16.msra.mxu0 %v4951_v62  ;;  %v5009_v46 = vsub.f32 %v117_v4, %v197_v22  ;;  %v130_v63 = vld [vmem:[%s7237_s1 + $0xf8] sm:$0xff]  ;;  %v129_v17 = vld [vmem:[%s7237_s1 + $0xf0] sm:$0xff] }
  0x12   :  { %7570 = vst [vmem:[#allocation15_spill] sm:$0xff] %v4989_v29  ;;  %v199_v47 = vand.u32 4294901760, %v120_v18  ;;  %v203_v48 = vand.u32 4294901760, %v122_v23  ;;  %v201_v49 = vand.u32 4294901760, %v119_v24  ;;  %4032 = vmatprep.subr.bf16.mxu0 %v4970_v19  ;;  %v205_v51 = vand.u32 4294901760, %v121_v25  ;;  %v132_v21 = vld [vmem:[%s7237_s1 + $0x108] sm:$0xff] }
  0x13   :  { %7571 = vst [vmem:[#allocation16_spill] sm:$0xff] %v5004_v44  ;;  %v207_v55 = vand.u32 4294901760, %v124_v33  ;;  %v211_v56 = vand.u32 4294901760, %v126_v34  ;;  %v209_v57 = vand.u32 4294901760, %v123_v35  ;;  %v213_v9 = vand.u32 4294901760, %v125_v50  ;;  %v135_v19 = vld [vmem:[%s7237_s1 + $0x120] sm:$0xff] }
  0x14   :  { %v5021_v4 = vpack.c.bf16 %v203_v48, %v199_v47  ;;  %v5023_v11 = vsub.f32 %v120_v18, %v199_v47  ;;  %v5025_v14 = vsub.f32 %v122_v23, %v203_v48  ;;  %v5027_v15 = vsub.f32 %v119_v24, %v201_v49  ;;  %v134_v47 = vld [vmem:[%s7237_s1 + $0x118] sm:$0xff]  ;;  %v140_v59 = vld [vmem:[%s7237_s1 + $0x148] sm:$0xff] }
  0x15   :  { %v5038_v22 = vpack.c.bf16 %v205_v51, %v201_v49  ;;  %v5040_v18 = vsub.f32 %v121_v25, %v205_v51  ;;  %v5042_v23 = vpack.c.bf16 %v211_v56, %v207_v55  ;;  %v5044_v24 = vsub.f32 %v124_v33, %v207_v55  ;;  %4034 = vmatpush1.bf16.msra.mxu0 %v4983_v26  ;;  %v131_v33 = vld [vmem:[%s7237_s1 + $0x100] sm:$0xff]  ;;  %v133_v55 = vld [vmem:[%s7237_s1 + $0x110] sm:$0xff]  ;;  %v138_v26 = vld [vmem:[%s7237_s1 + $0x138] sm:$0xff] }
  0x16   :  { %7572 = vst [vmem:[#allocation17_spill] sm:$0xff] %v5021_v4  ;;  %v5050_v48 = vsub.f32 %v126_v34, %v211_v56  ;;  %v5052_v12 = vsub.f32 %v123_v35, %v209_v57  ;;  %v215_v10 = vand.u32 4294901760, %v128_v58  ;;  %4036 = vmatprep.subr.bf16.mxu0 %v4989_v29  ;;  %v219_v25 = vand.u32 4294901760, %v130_v63  ;;  %v136_v29 = vld [vmem:[%s7237_s1 + $0x128] sm:$0xff]  ;;  %v142_v52 = vld [vmem:[%s7237_s1 + $0x158] sm:$0xff] }
  0x17   :  { %7573 = vst [vmem:[#allocation18_spill] sm:$0xff] %v5038_v22  ;;  %7574 = vst [vmem:[#allocation19_spill] sm:$0xff] %v5042_v23  ;;  %v217_v49 = vand.u32 4294901760, %v127_v16  ;;  %v221_v51 = vand.u32 4294901760, %v129_v17  ;;  %v223_v3 = vand.u32 4294901760, %v132_v21  ;;  %v5061_v34 = vpack.c.bf16 %v213_v9, %v209_v57 }
  0x18   :  { %v5063_v56 = vsub.f32 %v125_v50, %v213_v9  ;;  %v5065_v35 = vsub.f32 %v128_v58, %v215_v10  ;;  %v227_v5 = vand.u32 4294901760, %v134_v47  ;;  %v5076_v62 = vpack.c.bf16 %v219_v25, %v215_v10  ;;  %v137_v58 = vld [vmem:[%s7237_s1 + $0x130] sm:$0xff] }
  0x19   :  { %7575 = vst [vmem:[#allocation20_spill] sm:$0xff] %v5061_v34  ;;  %v5078_v57 = vsub.f32 %v130_v63, %v219_v25  ;;  %v5080_v9 = vpack.c.bf16 %v221_v51, %v217_v49  ;;  %v5082_v50 = vsub.f32 %v127_v16, %v217_v49  ;;  %4038 = vmatpush1.bf16.msra.mxu0 %v5004_v44  ;;  %v225_v49 = vand.u32 4294901760, %v131_v33  ;;  %v146_v44 = vld [vmem:[%s7237_s1 + $0x178] sm:$0xff] }
  0x1a   :  { %7576 = vst [vmem:[#allocation21_spill] sm:$0xff] %v5063_v56  ;;  %7577 = vst [vmem:[#allocation22_spill] sm:$0xff] %v5065_v35  ;;  %v5094_v10 = vsub.f32 %v129_v17, %v221_v51  ;;  %v5096_v63 = vpack.c.bf16 %v227_v5, %v223_v3  ;;  %v5098_v16 = vsub.f32 %v132_v21, %v223_v3  ;;  %4040 = vmatprep.subr.bf16.mxu0 %v5021_v4  ;;  %v139_v17 = vld [vmem:[%s7237_s1 + $0x140] sm:$0xff]  ;;  %v144_v4 = vld [vmem:[%s7237_s1 + $0x168] sm:$0xff] }
  0x1b   :  { %7578 = vst [vmem:[#allocation23_spill] sm:$0xff] %v5076_v62  ;;  %7579 = vst [vmem:[#allocation24_spill] sm:$0xff] %v5078_v57  ;;  %v5100_v25 = vsub.f32 %v134_v47, %v227_v5  ;;  %v229_v42 = vand.u32 4294901760, %v133_v55  ;;  %v231_v36 = vand.u32 4294901760, %v136_v29  ;;  %v235_v30 = vand.u32 4294901760, %v138_v26  ;;  %v141_v47 = vld [vmem:[%s7237_s1 + $0x150] sm:$0xff] }
  0x1c   :  { %7580 = vst [vmem:[#allocation25_spill] sm:$0xff] %v5080_v9  ;;  %7581 = vst [vmem:[#allocation26_spill] sm:$0xff] %v5082_v50  ;;  %v233_v50 = vand.u32 4294901760, %v135_v19  ;;  %v237_v57 = vand.u32 4294901760, %v137_v58  ;;  %v239_v35 = vand.u32 4294901760, %v140_v59  ;;  %v243_v56 = vand.u32 4294901760, %v142_v52 }
  0x1d   :  { %7582 = vst [vmem:[#allocation27_spill] sm:$0xff] %v5094_v10  ;;  %7583 = vst [vmem:[#allocation28_spill] sm:$0xff] %v5096_v63  ;;  %v5106_v51 = vpack.c.bf16 %v229_v42, %v225_v49  ;;  %v5108_v3 = vsub.f32 %v131_v33, %v225_v49  ;;  %v5110_v5 = vsub.f32 %v133_v55, %v229_v42  ;;  %4042 = vmatpush1.bf16.msra.mxu0 %v5038_v22 }
  0x1e   :  { %7584 = vst [vmem:[#allocation29_spill] sm:$0xff] %v5098_v16  ;;  %7585 = vst [vmem:[#allocation30_spill] sm:$0xff] %v5100_v25  ;;  %v5112_v21 = vpack.c.bf16 %v235_v30, %v231_v36  ;;  %v5124_v33 = vsub.f32 %v136_v29, %v231_v36  ;;  %v5126_v42 = vsub.f32 %v138_v26, %v235_v30  ;;  %v92_v25 = vld [vmem:[#allocation2 + $0x8] sm:$0xff]  ;;  %4044 = vmatprep.subr.bf16.mxu0 %v5042_v23 }
  0x1f   :  { %7586 = vst [vmem:[#allocation31_spill] sm:$0xff] %v5106_v51  ;;  %7587 = vst [vmem:[#allocation32_spill] sm:$0xff] %v5108_v3  ;;  %v5128_v55 = vpack.c.bf16 %v237_v57, %v233_v50  ;;  %v5130_v49 = vsub.f32 %v135_v19, %v233_v50  ;;  %v145_v3 = vld [vmem:[%s7237_s1 + $0x170] sm:$0xff]  ;;  %v5139_v22 = vsub.f32 %v137_v58, %v237_v57  ;;  %v241_v19 = vand.u32 4294901760, %v139_v17 }
  0x20   :  { %7588 = vst [vmem:[#allocation33_spill] sm:$0xff] %v5110_v5  ;;  %7589 = vst [vmem:[#allocation34_spill] sm:$0xff] %v5112_v21  ;;  %v143_v5 = vld [vmem:[%s7237_s1 + $0x160] sm:$0xff]  ;;  %v5141_v36 = vpack.c.bf16 %v243_v56, %v239_v35  ;;  %v5143_v30 = vsub.f32 %v140_v59, %v239_v35  ;;  %v5145_v26 = vsub.f32 %v142_v52, %v243_v56  ;;  %v245_v29 = vand.u32 4294901760, %v141_v47 }
  0x21   :  { %7590 = vst [vmem:[#allocation35_spill] sm:$0xff] %v5124_v33  ;;  %7591 = vst [vmem:[#allocation36_spill] sm:$0xff] %v5126_v42  ;;  %v247_v50 = vand.u32 4294901760, %v144_v4  ;;  %v249_v42 = vand.u32 4294901760, %v143_v5  ;;  %v253_v33 = vand.u32 4294901760, %v145_v3  ;;  %v148_v16 = vsel %vm65_vm0, %v92_v25, 0  ;;  %4046 = vmatpush1.bf16.msra.mxu0 %v5061_v34 }
  0x22   :  { %7592 = vst [vmem:[#allocation37_spill] sm:$0xff] %v5128_v55  ;;  %7593 = vst [vmem:[#allocation38_spill] sm:$0xff] %v5130_v49  ;;  %v251_v49 = vand.u32 4294901760, %v146_v44  ;;  %v5150_v57 = vpack.c.bf16 %v245_v29, %v241_v19  ;;  %v5152_v58 = vsub.f32 %v139_v17, %v241_v19  ;;  %v5154_v59 = vsub.f32 %v141_v47, %v245_v29 }
  0x23   :  { %7594 = vst [vmem:[#allocation39_spill] sm:$0xff] %v5139_v22  ;;  %7595 = vst [vmem:[#allocation40_spill] sm:$0xff] %v5141_v36  ;;  %4048 = vmatprep.subr.bf16.mxu0 %v5076_v62  ;;  %v5159_v56 = vsub.f32 %v144_v4, %v247_v50  ;;  %v5163_v23 = vpack.c.bf16 %v253_v33, %v249_v42  ;;  %v5165_v25 = vsub.f32 %v143_v5, %v249_v42 }
  0x24   :  { %7596 = vst [vmem:[#allocation41_spill] sm:$0xff] %v5143_v30  ;;  %7597 = vst [vmem:[#allocation42_spill] sm:$0xff] %v5145_v26  ;;  %v5156_v52 = vpack.c.bf16 %v251_v49, %v247_v50  ;;  %v5161_v35 = vsub.f32 %v146_v44, %v251_v49  ;;  %v5167_v10 = vsub.f32 %v145_v3, %v253_v33  ;;  %v5169_v34 = vand.u32 4294901760, %v148_v16 }
  0x25   :  { %7598 = vst [vmem:[#allocation43_spill] sm:$0xff] %v5150_v57  ;;  %7599 = vst [vmem:[#allocation44_spill] sm:$0xff] %v5152_v58  ;;  %v7608_v17 = vand.u32 4294901760, %v4891_v31  ;;  %v7286_v19 = vand.u32 4294901760, %v4893_v32  ;;  %v7291_v29 = vand.u32 4294901760, %v4903_v37  ;;  %v7296_v4 = vand.u32 4294901760, %v4905_v38  ;;  %4050 = vmatpush1.bf16.msra.mxu0 %v5080_v9 }
  0x26   :  { %7600 = vst [vmem:[#allocation45_spill] sm:$0xff] %v5154_v59  ;;  %7601 = vst [vmem:[#allocation46_spill] sm:$0xff] %v5156_v52  ;;  %v7299_v44 = vand.u32 4294901760, %v4907_v39  ;;  %v7300_v49 = vand.u32 4294901760, %v4920_v43  ;;  %v5181_v3 = vsub.f32 %v148_v16, %v5169_v34  ;;  %4052 = vmatprep.subr.bf16.mxu0 %v5096_v63  ;;  %v7610_v63 = vand.u32 4294901760, %v4932_v53 }
  0x27   :  { %7602 = vst [vmem:[#allocation47_spill] sm:$0xff] %v5159_v56  ;;  %7603 = vst [vmem:[#allocation48_spill] sm:$0xff] %v5161_v35  ;;  %v339_v47 = vsub.f32 %v4891_v31, %v7608_v17  ;;  %v351_v33 = vsub.f32 %v4893_v32, %v7286_v19  ;;  %v345_v50 = vsub.f32 %v4903_v37, %v7291_v29  ;;  %v7310_v29 = vand.u32 4294901760, %v4934_v54 }
  0x28   :  { %7604 = vst [vmem:[#allocation49_spill] sm:$0xff] %v5163_v23  ;;  %7605 = vst [vmem:[#allocation50_spill] sm:$0xff] %v5165_v25  ;;  %v357_v17 = vsub.f32 %v4905_v38, %v7296_v4  ;;  %v363_v16 = vsub.f32 %v4907_v39, %v7299_v44  ;;  %v7305_v19 = vand.u32 4294901760, %v5181_v3  ;;  %v369_v9 = vsub.f32 %v4932_v53, %v7610_v63 }
  0x29   :  { %7606 = vst [vmem:[#allocation51_spill] sm:$0xff] %v5167_v10  ;;  %7607 = vst [vmem:[#allocation52_spill] sm:$0xff] %v5169_v34  ;;  %v340_v5 = vand.u32 4294901760, %v339_v47  ;;  %v375_v47 = vsub.f32 %v4920_v43, %v7300_v49  ;;  %v352_v42 = vand.u32 4294901760, %v351_v33  ;;  %v346_v62 = vand.u32 4294901760, %v345_v50  ;;  %4054 = vmatpush1.bf16.msra.mxu0 %v5106_v51 }
  0x2a   :  { %7609 = vst [vmem:[#allocation53_spill] sm:$0xff] %v5181_v3  ;;  %v358_v34 = vand.u32 4294901760, %v357_v17  ;;  %v364_v4 = vand.u32 4294901760, %v363_v16  ;;  %v274_v44 = vsub.f32 %v5181_v3, %v7305_v19  ;;  %v370_v43 = vand.u32 4294901760, %v369_v9  ;;  %4056 = vmatprep.subr.bf16.mxu0 %v5112_v21 }
  0x2b   :  { %v376_v38 = vand.u32 4294901760, %v375_v47  ;;  %v4067_v49 = vpack.c.bf16 %v352_v42, %v340_v5  ;;  %v381_v33 = vsub.f32 %v4934_v54, %v7310_v29  ;;  %v7307_v17 = vand.u32 4294901760, %v4947_v60 }
  0x2c   :  { %v5213_v63 = vpack.c.bf16 %v358_v34, %v346_v62  ;;  %v7306_v16 = vand.u32 4294901760, %v4949_v61  ;;  %v275_v47 = vand.u32 4294901760, %v274_v44  ;;  %v7308_v19 = vand.u32 4294901760, %v4959_v6 }
  0x2d   :  { %v5215_v50 = vpack.c.bf16 %v376_v38, %v364_v4  ;;  %v382_v51 = vand.u32 4294901760, %v381_v33  ;;  %v7309_v9 = vand.u32 4294901760, %v4961_v8  ;;  %v387_v5 = vsub.f32 %v4947_v60, %v7307_v17  ;;  %4058 = vmatpush1.bf16.msra.mxu0 %v5128_v55 }
  0x2e   :  { %7611 = vst [vmem:[#allocation54_spill] sm:$0xff] %v5213_v63  ;;  %v399_v62 = vsub.f32 %v4949_v61, %v7306_v16  ;;  %v7315_v38 = vand.u32 4294901760, %v4963_v13  ;;  %v7322_v34 = vand.u32 4294901760, %v4972_v20  ;;  %276 = vmatprep.mubr.f32.mxu0 %v275_v47  ;;  %v393_v44 = vsub.f32 %v4959_v6, %v7308_v19  ;;  %4060 = vmatprep.subr.bf16.mxu0 %v5141_v36 }
  0x2f   :  { %7612 = vst [vmem:[#allocation55_spill] sm:$0xff] %v5215_v50  ;;  %v5230_v4 = vpack.c.bf16 %v382_v51, %v370_v43  ;;  %v405_v42 = vsub.f32 %v4961_v8, %v7309_v9  ;;  %v7318_v33 = vand.u32 4294901760, %v4985_v27  ;;  %v388_v16 = vand.u32 4294901760, %v387_v5  ;;  %v7641_v50 = vld [vmem:[#allocation33_spill] sm:$0xff] }
  0x30   :  { %v400_v17 = vand.u32 4294901760, %v399_v62  ;;  %v411_v47 = vsub.f32 %v4963_v13, %v7315_v38  ;;  %v423_v43 = vsub.f32 %v4972_v20, %v7322_v34  ;;  %v394_v51 = vand.u32 4294901760, %v393_v44 }
  0x31   :  { %7613 = vst [vmem:[#allocation56_spill] sm:$0xff] %v5230_v4  ;;  %v406_v19 = vand.u32 4294901760, %v405_v42  ;;  %v417_v9 = vsub.f32 %v4985_v27, %v7318_v33  ;;  %v7320_v29 = vand.u32 4294901760, %v4987_v28  ;;  %v7319_v36 = vand.u32 4294901760, %v5000_v40  ;;  %4062 = vmatpush1.bf16.msra.mxu0 %v5150_v57 }
  0x32   :  { %v5250_v55 = vpack.c.bf16 %v400_v17, %v388_v16  ;;  %v412_v5 = vand.u32 4294901760, %v411_v47  ;;  %v424_v62 = vand.u32 4294901760, %v423_v43  ;;  %v7321_v42 = vand.u32 4294901760, %v5002_v41  ;;  %4064 = vmatprep.subr.bf16.mxu0 %v5156_v52 }
  0x33   :  { %v5254_v38 = vpack.c.bf16 %v406_v19, %v394_v51  ;;  %v418_v21 = vand.u32 4294901760, %v417_v9  ;;  %v429_v44 = vsub.f32 %v4987_v28, %v7320_v29  ;;  %v435_v17 = vsub.f32 %v5000_v40, %v7319_v36 }
  0x34   :  { %7614 = vst [vmem:[#allocation57_spill] sm:$0xff] %v5250_v55  ;;  %v5261_v33 = vpack.c.bf16 %v424_v62, %v412_v5  ;;  %v7323_v16 = vand.u32 4294901760, %v5006_v45  ;;  %v447_v9 = vsub.f32 %v5002_v41, %v7321_v42  ;;  %v7617_v47 = vrot.slane %v4823_v1, 7 }
  0x35   :  { %7615 = vst [vmem:[#allocation58_spill] sm:$0xff] %v5254_v38  ;;  %v430_v19 = vand.u32 4294901760, %v429_v44  ;;  %v7618_v43 = vrot.slane %v4818_v0, 7  ;;  %v7328_v5 = vand.u32 4294901760, %v5009_v46  ;;  %v436_v62 = vand.u32 4294901760, %v435_v17  ;;  %4066 = vmatpush1.bf16.msra.mxu0 %v5163_v23 }
  0x36   :  { %7616 = vst [vmem:[#allocation59_spill] sm:$0xff] %v5261_v33  ;;  %v441_v36 = vsub.f32 %v5006_v45, %v7323_v16  ;;  %v7620_v44 = vrot.slane %v4828_v2, 7  ;;  %v7621_v29 = vmov %v7617_v47  ;;  %v7329_v34 = vand.u32 4294901760, %v5023_v11  ;;  %4068 = vmatprep.subr.bf16.mxu0 %v4067_v49 }
  0x37   :  { %v5275_v51 = vsel %vm51_vm4, %v7618_v43, %v7617_v47  ;;  %v5290_v47 = vpack.c.bf16 %v430_v19, %v418_v21  ;;  %v448_v43 = vand.u32 4294901760, %v447_v9  ;;  %v453_v17 = vsub.f32 %v5009_v46, %v7328_v5 }
  0x38   :  { %7619 = vst [vmem:[#allocation60_spill] sm:$0xff] %v5275_v51  ;;  %v5286_v42 = vsel %vm51_vm4, %v7621_v29, %v7620_v44  ;;  %v7330_v16 = vand.u32 4294901760, %v5025_v14  ;;  %v442_v52 = vand.u32 4294901760, %v441_v36  ;;  %v459_v1 = vsub.f32 %v5023_v11, %v7329_v34 }
  0x39   :  { %7622 = vst [vmem:[#allocation61_spill] sm:$0xff] %v5286_v42  ;;  %7623 = vst [vmem:[#allocation62_spill] sm:$0xff] %v5290_v47  ;;  %v7333_v29 = vand.u32 4294901760, %v5027_v15  ;;  %v7336_v44 = vand.u32 4294901760, %v5040_v18  ;;  %v5301_v23 = vpack.c.bf16 %v448_v43, %v436_v62  ;;  %v454_v21 = vand.u32 4294901760, %v453_v17  ;;  %v7653_v42 = vld [vmem:[#allocation9_spill] sm:$0xff] }
  0x3a   :  { %v471_v19 = vsub.f32 %v5025_v14, %v7330_v16  ;;  %v7337_v9 = vand.u32 4294901760, %v5044_v24  ;;  %v460_v5 = vand.u32 4294901760, %v459_v1  ;;  %v7338_v34 = vand.u32 4294901760, %v5050_v48 }
  0x3b   :  { %7624 = vst [vmem:[#allocation63_spill] sm:$0xff] %v5301_v23  ;;  %v465_v36 = vsub.f32 %v5027_v15, %v7333_v29  ;;  %v477_v49 = vsub.f32 %v5040_v18, %v7336_v44  ;;  %v5314_v62 = vpack.c.bf16 %v454_v21, %v442_v52  ;;  %v7626_v16 = vrot.slane %v4841_v7, 7  ;;  %v7631_v23 = vld [vmem:[#allocation22_spill] sm:$0xff] }
  0x3c   :  { %v472_v43 = vand.u32 4294901760, %v471_v19  ;;  %v483_v17 = vsub.f32 %v5044_v24, %v7337_v9  ;;  %v7627_v1 = vrot.slane %v4828_v2, 7  ;;  %v495_v44 = vsub.f32 %v5050_v48, %v7338_v34  ;;  %v7635_v34 = vld [vmem:[#allocation27_spill] sm:$0xff] }
  0x3d   :  { %7625 = vst [vmem:[#allocation64_spill] sm:$0xff] %v5314_v62  ;;  %v466_v29 = vand.u32 4294901760, %v465_v36  ;;  %v478_v3 = vand.u32 4294901760, %v477_v49  ;;  %v7339_v52 = vand.u32 4294901760, %v5052_v12  ;;  %v7630_v62 = vld [vmem:[#allocation21_spill] sm:$0xff]  ;;  %v7341_v7 = vand.u32 4294901760, %v7631_v23 }
  0x3e   :  { %v5324_v57 = vsel %vm51_vm4, %v7627_v1, %v7626_v16  ;;  %v5330_v21 = vpack.c.bf16 %v472_v43, %v460_v5  ;;  %v484_v19 = vand.u32 4294901760, %v483_v17  ;;  %v7340_v9 = vand.u32 4294901760, %v7630_v62  ;;  %v7633_v36 = vld [vmem:[#allocation24_spill] sm:$0xff]  ;;  %v7634_v43 = vld [vmem:[#allocation26_spill] sm:$0xff] }
  0x3f   :  { %7628 = vst [vmem:[#allocation65_spill] sm:$0xff] %v5324_v57  ;;  %v5334_v47 = vpack.c.bf16 %v478_v3, %v466_v29  ;;  %v496_v2 = vand.u32 4294901760, %v495_v44  ;;  %v489_v16 = vsub.f32 %v5052_v12, %v7339_v52  ;;  %v7342_v49 = vand.u32 4294901760, %v7633_v36 }
  0x40   :  { %7629 = vst [vmem:[#allocation66_spill] sm:$0xff] %v5330_v21  ;;  %v501_v1 = vsub.f32 %v7630_v62, %v7340_v9  ;;  %v507_v5 = vsub.f32 %v7631_v23, %v7341_v7  ;;  %v7343_v17 = vand.u32 4294901760, %v7634_v43  ;;  %v7345_v3 = vand.u32 4294901760, %v7635_v34 }
  0x41   :  { %7632 = vst [vmem:[#allocation21_spill] sm:$0xff] %v5334_v47  ;;  %v5348_v29 = vpack.c.bf16 %v496_v2, %v484_v19  ;;  %v490_v44 = vand.u32 4294901760, %v489_v16  ;;  %v519_v52 = vsub.f32 %v7633_v36, %v7342_v49  ;;  %v7637_v47 = vld [vmem:[#allocation29_spill] sm:$0xff]  ;;  %v7638_v2 = vld [vmem:[#allocation30_spill] sm:$0xff]  ;;  %v7639_v49 = vld [vmem:[#allocation32_spill] sm:$0xff]  ;;  %v7347_v63 = vand.u32 4294901760, %v7641_v50 }
  0x42   :  { %v7344_v21 = vand.u32 4294901760, %v7637_v47  ;;  %v502_v33 = vand.u32 4294901760, %v501_v1  ;;  %v508_v38 = vand.u32 4294901760, %v507_v5  ;;  %v513_v9 = vsub.f32 %v7634_v43, %v7343_v17 }
  0x43   :  { %7636 = vst [vmem:[#allocation22_spill] sm:$0xff] %v5348_v29  ;;  %v525_v7 = vsub.f32 %v7635_v34, %v7345_v3  ;;  %v520_v55 = vand.u32 4294901760, %v519_v52  ;;  %v7346_v16 = vand.u32 4294901760, %v7638_v2  ;;  %v7348_v29 = vand.u32 4294901760, %v7639_v49 }
  0x44   :  { %v531_v19 = vsub.f32 %v7637_v47, %v7344_v21  ;;  %v5365_v4 = vpack.c.bf16 %v502_v33, %v490_v44  ;;  %v514_v1 = vand.u32 4294901760, %v513_v9  ;;  %v549_v33 = vsub.f32 %v7641_v50, %v7347_v63  ;;  %v7644_v9 = vld [vmem:[#allocation35_spill] sm:$0xff] }
  0x45   :  { %v526_v5 = vand.u32 4294901760, %v525_v7  ;;  %v5368_v17 = vpack.c.bf16 %v520_v55, %v508_v38  ;;  %v543_v52 = vsub.f32 %v7638_v2, %v7346_v16  ;;  %v537_v21 = vsub.f32 %v7639_v49, %v7348_v29  ;;  %v7645_v38 = vld [vmem:[#allocation36_spill] sm:$0xff] }
  0x46   :  { %7640 = vst [vmem:[#allocation24_spill] sm:$0xff] %v5365_v4  ;;  %v532_v57 = vand.u32 4294901760, %v531_v19  ;;  %v7349_v7 = vand.u32 4294901760, %v7644_v9  ;;  %v7350_v19 = vand.u32 4294901760, %v7645_v38  ;;  %v7646_v4 = vld [vmem:[#allocation38_spill] sm:$0xff] }
  0x47   :  { %7642 = vst [vmem:[#allocation67_spill] sm:$0xff] %v5368_v17  ;;  %v5376_v3 = vpack.c.bf16 %v526_v5, %v514_v1  ;;  %v544_v44 = vand.u32 4294901760, %v543_v52  ;;  %v538_v55 = vand.u32 4294901760, %v537_v21  ;;  %v550_v17 = vand.u32 4294901760, %v549_v33 }
  0x48   :  { %v555_v16 = vsub.f32 %v7644_v9, %v7349_v7  ;;  %v7352_v51 = vand.u32 4294901760, %v7646_v4  ;;  %v7351_v1 = vand.u32 4294901760, %v5139_v22  ;;  %v567_v63 = vsub.f32 %v7645_v38, %v7350_v19 }
  0x49   :  { %7643 = vst [vmem:[#allocation68_spill] sm:$0xff] %v5376_v3  ;;  %v5388_v5 = vpack.c.bf16 %v544_v44, %v532_v57  ;;  %v5393_v29 = vpack.c.bf16 %v550_v17, %v538_v55  ;;  %v7353_v3 = vand.u32 4294901760, %v5143_v30  ;;  %v7355_v19 = vand.u32 4294901760, %v5152_v58 }
  0x4a   :  { %v556_v21 = vand.u32 4294901760, %v555_v16  ;;  %v561_v52 = vsub.f32 %v7646_v4, %v7352_v51  ;;  %v573_v33 = vsub.f32 %v5139_v22, %v7351_v1  ;;  %v568_v7 = vand.u32 4294901760, %v567_v63 }
  0x4b   :  { %7647 = vst [vmem:[#allocation69_spill] sm:$0xff] %v5388_v5  ;;  %7648 = vst [vmem:[#allocation70_spill] sm:$0xff] %v5393_v29  ;;  %v7354_v5 = vand.u32 4294901760, %v5145_v26  ;;  %v579_v16 = vsub.f32 %v5143_v30, %v7353_v3  ;;  %v7361_v3 = vand.u32 4294901760, %v5165_v25 }
  0x4c   :  { %v562_v57 = vand.u32 4294901760, %v561_v52  ;;  %v574_v44 = vand.u32 4294901760, %v573_v33  ;;  %v5404_v17 = vpack.c.bf16 %v568_v7, %v556_v21  ;;  %v585_v52 = vsub.f32 %v5152_v58, %v7355_v19 }
  0x4d   :  { %v591_v63 = vsub.f32 %v5145_v26, %v7354_v5  ;;  %v7356_v33 = vand.u32 4294901760, %v5154_v59  ;;  %v580_v1 = vand.u32 4294901760, %v579_v16  ;;  %v7360_v19 = vand.u32 4294901760, %v5167_v10 }
  0x4e   :  { %7649 = vst [vmem:[#allocation71_spill] sm:$0xff] %v5404_v17  ;;  %v5409_v55 = vpack.c.bf16 %v574_v44, %v562_v57  ;;  %v586_v7 = vand.u32 4294901760, %v585_v52  ;;  %v7357_v57 = vand.u32 4294901760, %v5159_v56  ;;  %v7358_v44 = vand.u32 4294901760, %v5161_v35  ;;  %v7652_v17 = vld [vmem:[#allocation7_spill] sm:$0xff] }
  0x4f   :  { %v592_v51 = vand.u32 4294901760, %v591_v63  ;;  %v597_v21 = vsub.f32 %v5154_v59, %v7356_v33  ;;  %v609_v52 = vsub.f32 %v5165_v25, %v7361_v3  ;;  %v7657_v3 = vmov 0.0  }
  0x50   :  { %7650 = vst [vmem:[#allocation72_spill] sm:$0xff] %v5409_v55  ;;  %v603_v16 = vsub.f32 %v5159_v56, %v7357_v57  ;;  %v615_v63 = vsub.f32 %v5161_v35, %v7358_v44 }
  0x51   :  { %v5424_v5 = vpack.c.bf16 %v592_v51, %v580_v1  ;;  %v598_v55 = vand.u32 4294901760, %v597_v21  ;;  %v621_v51 = vsub.f32 %v5167_v10, %v7360_v19  ;;  %v610_v57 = vand.u32 4294901760, %v609_v52 }
  0x52   :  { %v604_v21 = vand.u32 4294901760, %v603_v16  ;;  %v96_v16 = vld [vmem:[#allocation2 + $0x28] sm:$0xff] }
  0x53   :  { %7651 = vst [vmem:[#allocation73_spill] sm:$0xff] %v5424_v5  ;;  %v5436_v33 = vpack.c.bf16 %v598_v55, %v586_v7  ;;  %v616_v5 = vand.u32 4294901760, %v615_v63  ;;  %v622_v44 = vand.u32 4294901760, %v621_v51  ;;  %v94_v51 = vld [vmem:[#allocation2 + $0x18] sm:$0xff] }
  0x55   :  { %v5449_v7 = vpack.c.bf16 %v616_v5, %v604_v21  ;;  %v5457_v52 = vpack.c.bf16 %v622_v44, %v610_v57  ;;  %v151_v21 = vsel %vm65_vm0, %v94_v51, 0  ;;  %v7655_v44 = vmov %v4818_v0  ;;  %v7658_v5 = vld [vmem:[#allocation61_spill] sm:$0xff]  ;;  %v98_v0 = vld [vmem:[#allocation2 + $0x38] sm:$0xff] }
  0x56   :  { %v5496_v57 = vand.u32 4294901760, %v151_v21  ;;  %v7656_v55 = vrot.slane %v7655_v44, 7  ;;  %v154_v51 = vsel %vm65_vm0, %v96_v16, 0  ;;  %v7661_v44 = vld [vmem:[#allocation60_spill] sm:$0xff]  ;;  %v157_v16 = vsel %vm65_vm0, %v98_v0, 0 }
  0x58   :  { %7654 = vst [vmem:[#allocation7_spill] sm:$0xff] %v5496_v57 }
  0x74   :  { %v35_v19 = vpop.permute.xlu0 %34  ;;  %v39_v63 = vpop.permute.xlu1 %38 }
  0x75   :  { %47 = vst.msk [vmem:[#allocation2] sm:$0xff] %vm46_vm5, %v35_v19  ;;  %49 = vst.msk [vmem:[#allocation2 + $0x20] sm:$0xff] %vm46_vm5, %v39_v63  ;;  %v5512_v63 = vand.u32 4294901760, %v154_v51 }
  0x76   :  { %64 = vst.msk [vmem:[#allocation2] sm:$0xfe] %vm63_vm6, %v7656_v55  ;;  %v5510_v55 = vsub.f32 %v151_v21, %v5496_v57 }
  0x77   :  { %87 = vst.msk [vmem:[#allocation2] sm:$0x1] %vm86_vm3, %v7657_v3  ;;  %7660 = vst [vmem:[#allocation4_spill] sm:$0xff] %v5512_v63 }
  0x78   :  { %67 = vst.msk [vmem:[#allocation2 + $0x20] sm:$0xff] %vm65_vm0, %v7658_v5  ;;  %v37_v19 = vpop.permute.xlu0 %36  ;;  %v41_v29 = vpop.permute.xlu1 %40  ;;  %7659 = vst [vmem:[#allocation9_spill] sm:$0xff] %v5510_v55  ;;  %v7662_v5 = vld [vmem:[#allocation65_spill] sm:$0xff] }
  0x79   :  { %89 = vst.msk [vmem:[#allocation2 + $0x20] sm:$0x1] %vm86_vm3, %v7657_v3  ;;  %v7377_v3 = vand.u32 4294901760, %v5510_v55 }
  0x7a   :  { %48 = vst.msk [vmem:[#allocation2 + $0x10] sm:$0xff] %vm46_vm5, %v37_v19  ;;  %50 = vst.msk [vmem:[#allocation2 + $0x30] sm:$0xff] %vm46_vm5, %v41_v29  ;;  %v5521_v19 = vsub.f32 %v154_v51, %v5512_v63  ;;  %v5523_v29 = vand.u32 4294901760, %v157_v16 }
  0x7b   :  { %66 = vst.msk [vmem:[#allocation2 + $0x10] sm:$0xff] %vm65_vm0, %v7661_v44  ;;  %68 = vst.msk [vmem:[#allocation2 + $0x30] sm:$0xff] %vm65_vm0, %v7662_v5  ;;  %v290_v0 = vsub.f32 %v5510_v55, %v7377_v3 }
  0x7c   :  { %7663 = vst [vmem:[#allocation61_spill] sm:$0xff] %v5521_v19  ;;  %7664 = vst [vmem:[#allocation60_spill] sm:$0xff] %v5523_v29  ;;  %v5540_v35 = vsub.f32 %v157_v16, %v5523_v29  ;;  %v7671_v26 = vand.u32 4294901760, %v5521_v19 }
  0x7d   :  { %v291_v16 = vand.u32 4294901760, %v290_v0 }
  0x7e   :  { %v91_v1 = vld [vmem:[#allocation2] sm:$0xff]  ;;  %v306_v4 = vsub.f32 %v5521_v19, %v7671_v26  ;;  %v7396_v22 = vand.u32 4294901760, %v5540_v35  ;;  %v7673_v19 = vld [vmem:[#allocation55_spill] sm:$0xff] }
  0x7f   :  { %v5525_v21 = vand.u32 4294901760, %v91_v1 }
  0x80   :  { %v95_v25 = vld [vmem:[#allocation2 + $0x20] sm:$0xff]  ;;  %v307_v26 = vand.u32 4294901760, %v306_v4 }
  0x81   :  { %7665 = vst [vmem:[#allocation65_spill] sm:$0xff] %v5525_v21  ;;  %v5527_v10 = vand.u32 4294901760, %v95_v25  ;;  %v5530_v44 = vsub.f32 %v91_v1, %v5525_v21 }
  0x82   :  { %v93_v5 = vld [vmem:[#allocation2 + $0x10] sm:$0xff] }
  0x83   :  { %7666 = vst [vmem:[#allocation74_spill] sm:$0xff] %v5527_v10  ;;  %7667 = vst [vmem:[#allocation75_spill] sm:$0xff] %v5530_v44  ;;  %v5537_v51 = vsub.f32 %v95_v25, %v5527_v10  ;;  %v97_v58 = vld [vmem:[#allocation2 + $0x30] sm:$0xff]  ;;  %v7387_v59 = vand.u32 4294901760, %v5530_v44  ;;  %v5543_v30 = vand.u32 4294901760, %v93_v5 }
  0x84   :  { %v5545_v1 = vand.u32 4294901760, %v97_v58 }
  0x85   :  { %7668 = vst [vmem:[#allocation76_spill] sm:$0xff] %v5537_v51  ;;  %7669 = vst [vmem:[#allocation77_spill] sm:$0xff] %v5543_v30  ;;  %v280_v3 = vsub.f32 %v5530_v44, %v7387_v59  ;;  %v5551_v55 = vsub.f32 %v93_v5, %v5543_v30  ;;  %v7393_v25 = vand.u32 4294901760, %v5537_v51  ;;  %v7672_v59 = vld [vmem:[#allocation54_spill] sm:$0xff] }
  0x86   :  { %7670 = vst [vmem:[#allocation78_spill] sm:$0xff] %v5545_v1  ;;  %v5555_v56 = vsub.f32 %v97_v58, %v5545_v1 }
  0x87   :  { %v281_v9 = vand.u32 4294901760, %v280_v3  ;;  %v7392_v38 = vand.u32 4294901760, %v5551_v55  ;;  %v312_v58 = vsub.f32 %v5537_v51, %v7393_v25  ;;  %v322_v3 = vsub.f32 %v5540_v35, %v7396_v22  ;;  %v7674_v25 = vld [vmem:[#allocation56_spill] sm:$0xff]  ;;  %v7677_v22 = vld [vmem:[#allocation59_spill] sm:$0xff] }
  0x88   :  { %v7397_v0 = vand.u32 4294901760, %v5555_v56 }
  0x89   :  { %282 = vmatmul.mubr.f32.vlgmr.msra.gmra.mrb[0].mxu0 %v281_v9  ;;  %v296_v5 = vsub.f32 %v5551_v55, %v7392_v38  ;;  %v313_v44 = vand.u32 4294901760, %v312_v58  ;;  %v323_v51 = vand.u32 4294901760, %v322_v3  ;;  %v7680_v58 = vld [vmem:[#allocation63_spill] sm:$0xff]  ;;  %v7688_v3 = vld [vmem:[#allocation69_spill] sm:$0xff] }
  0x8a   :  { %4070 = vmatpush1.bf16.msra.mxu0 %v7672_v59  ;;  %292 = vmatprep.mubr.f32.mxu0 %v291_v16  ;;  %v328_v38 = vsub.f32 %v5555_v56, %v7397_v0  ;;  %v7675_v59 = vld [vmem:[#allocation57_spill] sm:$0xff]  ;;  %v7676_v16 = vld [vmem:[#allocation58_spill] sm:$0xff] }
  0x8b   :  { %4072 = vmatprep.subr.bf16.mxu0 %v7673_v19  ;;  %v297_v9 = vand.u32 4294901760, %v296_v5  ;;  %v7678_v19 = vld [vmem:[#allocation62_spill] sm:$0xff]  ;;  %v7679_v5 = vld [vmem:[#allocation52_spill] sm:$0xff] }
  0x8c   :  { %v329_v4 = vand.u32 4294901760, %v328_v38  ;;  %v7685_v38 = vld [vmem:[#allocation24_spill] sm:$0xff] }
  0x8d   :  { %298 = vmatmul.mubr.f32.gmra.mrb[2].mxu0 %v297_v9  ;;  %v7681_v9 = vld [vmem:[#allocation64_spill] sm:$0xff] }
  0x8e   :  { %4074 = vmatpush1.bf16.msra.mxu0 %v7674_v25  ;;  %308 = vmatprep.mubr.f32.mxu0 %v307_v26  ;;  %v7682_v25 = vld [vmem:[#allocation66_spill] sm:$0xff]  ;;  %v7683_v26 = vld [vmem:[#allocation21_spill] sm:$0xff] }
  0x8f   :  { %4076 = vmatprep.subr.bf16.mxu0 %v7675_v59  ;;  %v7689_v59 = vld [vmem:[#allocation70_spill] sm:$0xff] }
  0x91   :  { %314 = vmatmul.mubr.f32.gmra.mrb[4].mxu0 %v313_v44  ;;  %v7684_v44 = vld [vmem:[#allocation22_spill] sm:$0xff] }
  0x92   :  { %4078 = vmatpush1.bf16.msra.mxu0 %v7676_v16  ;;  %324 = vmatprep.mubr.f32.mxu0 %v323_v51  ;;  %v7686_v51 = vld [vmem:[#allocation67_spill] sm:$0xff]  ;;  %v7691_v16 = vld [vmem:[#allocation72_spill] sm:$0xff] }
  0x93   :  { %4080 = vmatprep.subr.bf16.mxu0 %v7677_v22  ;;  %v7687_v22 = vld [vmem:[#allocation68_spill] sm:$0xff] }
  0x95   :  { %330 = vmatmul.mubr.f32.gmra.mrb[6].mxu0 %v329_v4  ;;  %v7690_v4 = vld [vmem:[#allocation71_spill] sm:$0xff] }
  0x96   :  { %4082 = vmatpush1.bf16.msra.mxu0 %v7678_v19  ;;  %641 = vmatprep.mubr.f32.mxu0 %v7679_v5  ;;  %v7692_v19 = vld [vmem:[#allocation73_spill] sm:$0xff] }
  0x97   :  { %4084 = vmatprep.subr.bf16.mxu0 %v7680_v58  ;;  %v7693_v58 = vpack.c.bf16 %v4893_v32, %v4891_v31 }
  0x9a   :  { %4086 = vmatpush1.bf16.msra.mxu0 %v7681_v9  ;;  %v7694_v9 = vpack.c.bf16 %v7652_v17, %v4903_v37 }
  0x9b   :  { %4088 = vmatprep.subr.bf16.mxu0 %v7682_v25  ;;  %v7695_v25 = vpack.c.bf16 %v7653_v42, %v4907_v39 }
  0x9e   :  { %4090 = vmatpush1.bf16.msra.mxu0 %v7683_v26  ;;  %v7699_v26 = vpack.c.bf16 %v4972_v20, %v4963_v13 }
  0x9f   :  { %4092 = vmatprep.subr.bf16.mxu0 %v7684_v44  ;;  %v7700_v44 = vpack.c.bf16 %v4987_v28, %v4985_v27 }
  0xa2   :  { %4094 = vmatpush1.bf16.msra.mxu0 %v7685_v38  ;;  %v7701_v38 = vld [vmem:[#allocation53_spill] sm:$0xff] }
  0xa3   :  { %4096 = vmatprep.subr.bf16.mxu0 %v7686_v51  ;;  %v7702_v51 = vpack.c.bf16 %v5002_v41, %v5000_v40 }
  0xa6   :  { %4098 = vmatpush1.bf16.msra.mxu0 %v7687_v22  ;;  %v7703_v22 = vpack.c.bf16 %v5009_v46, %v5006_v45 }
  0xa7   :  { %4100 = vmatprep.subr.bf16.mxu0 %v7688_v3  ;;  %v7704_v3 = vpack.c.bf16 %v5025_v14, %v5023_v11 }
  0xaa   :  { %4102 = vmatpush1.bf16.msra.mxu0 %v7689_v59  ;;  %v7705_v59 = vpack.c.bf16 %v5040_v18, %v5027_v15 }
  0xab   :  { %4104 = vmatprep.subr.bf16.mxu0 %v7690_v4  ;;  %v7706_v4 = vpack.c.bf16 %v5050_v48, %v5044_v24 }
  0xae   :  { %4106 = vmatpush1.bf16.msra.mxu0 %v7691_v16  ;;  %v7707_v16 = vpack.c.bf16 %v7630_v62, %v5052_v12 }
  0xaf   :  { %4108 = vmatprep.subr.bf16.mxu0 %v7692_v19  ;;  %v7708_v19 = vpack.c.bf16 %v7633_v36, %v7631_v23 }
  0xb2   :  { %4110 = vmatpush1.bf16.msra.mxu0 %v5436_v33  ;;  %v7696_v33 = vpack.c.bf16 %v4934_v54, %v4932_v53 }
  0xb3   :  { %4112 = vmatprep.subr.bf16.mxu0 %v5449_v7  ;;  %v7697_v7 = vpack.c.bf16 %v4949_v61, %v4947_v60 }
  0xb6   :  { %4114 = vmatpush1.bf16.msra.mxu0 %v5457_v52  ;;  %v7698_v52 = vpack.c.bf16 %v4961_v8, %v4959_v6 }
  0xb7   :  { %4116 = vmatprep.subr.bf16.mxu0 %v7693_v58  ;;  %v7709_v58 = vpack.c.bf16 %v7635_v34, %v7634_v43 }
  0xb9   :  { %643 = vmatmul.mubr.f32.vlgmr.msra.gmra.mrb[0].mxu0 %v5525_v21  ;;  %v7740_v21 = vld [vmem:[#allocation13_spill] sm:$0xff] }
  0xba   :  { %4118 = vmatpush1.bf16.msra.mxu0 %v7694_v9  ;;  %649 = vmatprep.mubr.f32.mxu0 %v5496_v57  ;;  %v7710_v9 = vpack.c.bf16 %v7638_v2, %v7637_v47  ;;  %v7738_v57 = vld [vmem:[#allocation76_spill] sm:$0xff] }
  0xbb   :  { %4120 = vmatprep.subr.bf16.mxu0 %v7695_v25  ;;  %v7711_v25 = vpack.c.bf16 %v7641_v50, %v7639_v49 }
  0xbd   :  { %651 = vmatmul.mubr.f32.gmra.mrb[2].mxu0 %v5543_v30  ;;  %v7736_v30 = vld [vmem:[#allocation61_spill] sm:$0xff] }
  0xbe   :  { %4122 = vmatpush1.bf16.msra.mxu0 %v7696_v33  ;;  %657 = vmatprep.mubr.f32.mxu0 %v5512_v63  ;;  %v7712_v33 = vld [vmem:[#allocation36_spill] sm:$0xff]  ;;  %v7733_v63 = vld [vmem:[#allocation9_spill] sm:$0xff] }
  0xbf   :  { %4124 = vmatprep.subr.bf16.mxu0 %v7697_v7  ;;  %v7713_v7 = vld [vmem:[#allocation35_spill] sm:$0xff] }
  0xc1   :  { %659 = vmatmul.mubr.f32.gmra.mrb[4].mxu0 %v5527_v10  ;;  %v7731_v10 = vld [vmem:[#allocation75_spill] sm:$0xff] }
  0xc2   :  { %4126 = vmatpush1.bf16.msra.mxu0 %v7698_v52  ;;  %665 = vmatprep.mubr.f32.mxu0 %v5523_v29  ;;  %v7714_v52 = vpack.c.bf16 %v7712_v33, %v7713_v7  ;;  %v7775_v7 = vld [vmem:[#allocation37_spill] sm:$0xff] }
  0xc3   :  { %4128 = vmatprep.subr.bf16.mxu0 %v7699_v26  ;;  %v7715_v26 = vld [vmem:[#allocation39_spill] sm:$0xff] }
  0xc5   :  { %667 = vmatmul.mubr.f32.gmra.mrb[6].mxu0 %v5545_v1  ;;  %v7728_v1 = vld [vmem:[#allocation50_spill] sm:$0xff] }
  0xc6   :  { %4130 = vmatpush1.bf16.msra.mxu0 %v7700_v44  ;;  %835 = vmatprep.mubr.f32.mxu0 %v7701_v38  ;;  %v7716_v44 = vld [vmem:[#allocation38_spill] sm:$0xff] }
  0xc7   :  { %4132 = vmatprep.subr.bf16.mxu0 %v7702_v51  ;;  %v7717_v51 = vpack.c.bf16 %v7715_v26, %v7716_v44  ;;  %v7770_v26 = vld [vmem:[#allocation34_spill] sm:$0xff] }
  0xca   :  { %4134 = vmatpush1.bf16.msra.mxu0 %v7703_v22  ;;  %v7718_v22 = vld [vmem:[#allocation42_spill] sm:$0xff] }
  0xcb   :  { %4136 = vmatprep.subr.bf16.mxu0 %v7704_v3  ;;  %v7719_v3 = vld [vmem:[#allocation41_spill] sm:$0xff] }
  0xce   :  { %4138 = vmatpush1.bf16.msra.mxu0 %v7705_v59  ;;  %v7720_v59 = vpack.c.bf16 %v7718_v22, %v7719_v3 }
  0xcf   :  { %4140 = vmatprep.subr.bf16.mxu0 %v7706_v4  ;;  %v7721_v4 = vld [vmem:[#allocation45_spill] sm:$0xff] }
  0xd2   :  { %4142 = vmatpush1.bf16.msra.mxu0 %v7707_v16  ;;  %v7722_v16 = vld [vmem:[#allocation44_spill] sm:$0xff] }
  0xd3   :  { %4144 = vmatprep.subr.bf16.mxu0 %v7708_v19  ;;  %v7723_v19 = vpack.c.bf16 %v7721_v4, %v7722_v16  ;;  %v5767_v4 = vld [vmem:[%s7238_s4 + $0x18] sm:$0xff] }
  0xd6   :  { %4146 = vmatpush1.bf16.msra.mxu0 %v7709_v58  ;;  %v7724_v58 = vld [vmem:[#allocation48_spill] sm:$0xff] }
  0xd7   :  { %4148 = vmatprep.subr.bf16.mxu0 %v7710_v9  ;;  %v7725_v9 = vld [vmem:[#allocation47_spill] sm:$0xff] }
  0xd8   :  { %v7726_v0 = vpack.c.bf16 %v7724_v58, %v7725_v9  ;;  %v7750_v58 = vld [vmem:[#allocation25_spill] sm:$0xff]  ;;  %v5762_v9 = vld [vmem:[%s7238_s4 + $0x10] sm:$0xff] }
  0xd9   :  { %v7771_v44 = vand.u32 4294901760, %v5762_v9 }
  0xda   :  { %4150 = vmatpush1.bf16.msra.mxu0 %v7711_v25  ;;  %v7727_v25 = vld [vmem:[#allocation51_spill] sm:$0xff] }
  0xdb   :  { %4152 = vmatprep.subr.bf16.mxu0 %v7714_v52  ;;  %v7729_v29 = vpack.c.bf16 %v7727_v25, %v7728_v1  ;;  %v7730_v52 = vld [vmem:[#allocation5_spill] sm:$0xff]  ;;  %v7746_v25 = vld [vmem:[#allocation18_spill] sm:$0xff]  ;;  %v7748_v1 = vld [vmem:[#allocation20_spill] sm:$0xff] }
  0xde   :  { %4154 = vmatpush1.bf16.msra.mxu0 %v7717_v51  ;;  %v7732_v51 = vld [vmem:[#allocation6_spill] sm:$0xff] }
  0xdf   :  { %4156 = vmatprep.subr.bf16.mxu0 %v7720_v59  ;;  %v7734_v59 = vld [vmem:[#allocation8_spill] sm:$0xff] }
  0xe2   :  { %4158 = vmatpush1.bf16.msra.mxu0 %v7723_v19  ;;  %v7735_v19 = vld [vmem:[#allocation10_spill] sm:$0xff] }
  0xe3   :  { %4160 = vmatprep.subr.bf16.mxu0 %v7726_v0  ;;  %v7737_v0 = vld [vmem:[#allocation11_spill] sm:$0xff] }
  0xe6   :  { %4162 = vmatpush1.bf16.msra.mxu0 %v7729_v29  ;;  %v7739_v29 = vld [vmem:[#allocation12_spill] sm:$0xff] }
  0xe7   :  { %4164 = vmatprep.subr.bf16.mxu0 %v7730_v52  ;;  %v7744_v52 = vld [vmem:[#allocation16_spill] sm:$0xff] }
  0xe9   :  { %838 = vmatmul.mubr.f32.vlgmr.msra.gmra.mrb[0].mxu0 %v7731_v10 }
  0xea   :  { %4166 = vmatpush1.bf16.msra.mxu0 %v7732_v51  ;;  %845 = vmatprep.mubr.f32.mxu0 %v7733_v63  ;;  %v7741_v51 = vld [vmem:[#allocation14_spill] sm:$0xff] }
  0xeb   :  { %4168 = vmatprep.subr.bf16.mxu0 %v7734_v59  ;;  %v7742_v59 = vand.u32 4294901760, %v7701_v38  ;;  %v7752_v38 = vand.u32 4294901760, %v4893_v32  ;;  %v7755_v32 = vld [vmem:[#allocation28_spill] sm:$0xff] }
  0xed   :  { %848 = vmatmul.mubr.f32.gmra.mrb[2].mxu0 %v5551_v55 }
  0xee   :  { %4170 = vmatpush1.bf16.msra.mxu0 %v7735_v19  ;;  %855 = vmatprep.mubr.f32.mxu0 %v7736_v30  ;;  %v7743_v19 = vld [vmem:[#allocation15_spill] sm:$0xff] }
  0xef   :  { %4172 = vmatprep.subr.bf16.mxu0 %v7737_v0  ;;  %v7745_v0 = vld [vmem:[#allocation17_spill] sm:$0xff] }
  0xf1   :  { %858 = vmatmul.mubr.f32.gmra.mrb[4].mxu0 %v7738_v57 }
  0xf2   :  { %4174 = vmatpush1.bf16.msra.mxu0 %v7739_v29  ;;  %865 = vmatprep.mubr.f32.mxu0 %v5540_v35  ;;  %v7747_v29 = vld [vmem:[#allocation19_spill] sm:$0xff] }
  0xf3   :  { %4176 = vmatprep.subr.bf16.mxu0 %v7740_v21  ;;  %v7749_v21 = vld [vmem:[#allocation23_spill] sm:$0xff] }
  0xf5   :  { %868 = vmatmul.mubr.f32.gmra.mrb[6].mxu0 %v5555_v56 }
  0xf6   :  { %4178 = vmatpush1.bf16.msra.mxu0 %v7741_v51  ;;  %989 = vmatprep.mubr.f32.mxu0 %v7742_v59  ;;  %v7751_v51 = vand.u32 4294901760, %v4891_v31  ;;  %v5725_v31 = vld [vmem:[%s7238_s4] sm:$0xff] }
  0xf7   :  { %4180 = vmatprep.subr.bf16.mxu0 %v7743_v19 }
  0xf8   :  { %v5708_v59 = vpack.c.bf16 %v7752_v38, %v7751_v51  ;;  %v5737_v38 = vld [vmem:[%s7238_s4 + $0x8] sm:$0xff] }
  0xfa   :  { %4182 = vmatpush1.bf16.msra.mxu0 %v7744_v52  ;;  %v7753_v52 = vand.u32 4294901760, %v4903_v37  ;;  %v7756_v37 = vand.u32 4294901760, %v4907_v39  ;;  %v5748_v39 = vld [vmem:[%s7238_s4 + $0x98] sm:$0xff] }
  0xfb   :  { %4184 = vmatprep.subr.bf16.mxu0 %v7745_v0  ;;  %v7754_v0 = vand.u32 4294901760, %v7652_v17  ;;  %v7757_v17 = vand.u32 4294901760, %v7653_v42  ;;  %v7758_v42 = vand.u32 4294901760, %v4932_v53 }
  0xfd   :  { %v5714_v19 = vpack.c.bf16 %v7754_v0, %v7753_v52  ;;  %v5732_v52 = vpack.c.bf16 %v7757_v17, %v7756_v37  ;;  %v7759_v37 = vand.u32 4294901760, %v4934_v54 }
  0xfe   :  { %4186 = vmatpush1.bf16.msra.mxu0 %v7746_v25 }
  0xff   :  { %4188 = vmatprep.subr.bf16.mxu0 %v7747_v29  ;;  %v5743_v29 = vld [vmem:[%s7238_s4 + $0x90] sm:$0xff]  ;;  %v5754_v17 = vpack.c.bf16 %v7759_v37, %v7758_v42  ;;  %v7762_v42 = vand.u32 4294901760, %v5725_v31 }
 0x100   :  { %v7766_v22 = vand.u32 4294901760, %v5743_v29 }
 0x101   :  { %v5776_v37 = vsub.f32 %v5725_v31, %v7762_v42  ;;  %v7414_v42 = vand.u32 4294901760, %v5767_v4 }
 0x102   :  { %4190 = vmatpush1.bf16.msra.mxu0 %v7748_v1  ;;  %v1535_v1 = vld [vmem:[%s7238_s4 + $0x80] sm:$0xff]  ;;  %v5786_v3 = vsub.f32 %v5743_v29, %v7766_v22  ;;  %v5801_v22 = vsub.f32 %v5762_v9, %v7771_v44 }
 0x103   :  { %4192 = vmatprep.subr.bf16.mxu0 %v7749_v21  ;;  %v1616_v51 = vand.u32 4294901760, %v1535_v1  ;;  %7763 = vst [vmem:[#allocation56_spill] sm:$0xff] %v5776_v37  ;;  %v7764_v21 = vld [vmem:[#allocation31_spill] sm:$0xff]  ;;  %v7774_v50 = vand.u32 4294901760, %v5776_v37 }
 0x104   :  { %7767 = vst [vmem:[#allocation58_spill] sm:$0xff] %v5786_v3  ;;  %7772 = vst [vmem:[#allocation62_spill] sm:$0xff] %v5801_v22  ;;  %v7777_v2 = vand.u32 4294901760, %v5786_v3 }
 0x105   :  { %v5769_v53 = vsub.f32 %v1535_v1, %v1616_v51  ;;  %v7768_v1 = vand.u32 4294901760, %v5748_v39  ;;  %v1728_v33 = vsub.f32 %v5776_v37, %v7774_v50  ;;  %v5835_v50 = vld [vmem:[%s7238_s4 + $0xa0] sm:$0xff] }
 0x106   :  { %4194 = vmatpush1.bf16.msra.mxu0 %v7750_v58  ;;  %v1536_v58 = vld [vmem:[%s7238_s4 + $0x88] sm:$0xff] }
 0x107   :  { %4196 = vmatprep.subr.bf16.mxu0 %v7755_v32  ;;  %v1619_v0 = vand.u32 4294901760, %v1536_v58  ;;  %v1571_v32 = vand.u32 4294901760, %v5737_v38  ;;  %7760 = vst [vmem:[#allocation54_spill] sm:$0xff] %v5769_v53  ;;  %v7416_v25 = vand.u32 4294901760, %v5769_v53 }
 0x109   :  { %v5771_v54 = vsub.f32 %v1536_v58, %v1619_v0  ;;  %v5781_v16 = vsub.f32 %v5737_v38, %v1571_v32  ;;  %v5791_v58 = vsub.f32 %v5748_v39, %v7768_v1  ;;  %v1840_v38 = vsub.f32 %v5769_v53, %v7416_v25  ;;  %v7779_v1 = vld [vmem:[#allocation40_spill] sm:$0xff] }
 0x10a   :  { %4198 = vmatpush1.bf16.msra.mxu0 %v7764_v21  ;;  %v1854_v25 = vsub.f32 %v5786_v3, %v7777_v2 }
 0x10b   :  { %7761 = vst [vmem:[#allocation55_spill] sm:$0xff] %v5771_v54  ;;  %7765 = vst [vmem:[#allocation57_spill] sm:$0xff] %v5781_v16  ;;  %4200 = vmatprep.subr.bf16.mxu0 %v7770_v26  ;;  %v7419_v21 = vand.u32 4294901760, %v5771_v54  ;;  %v5809_v26 = vsub.f32 %v5767_v4, %v7414_v42  ;;  %v7776_v49 = vand.u32 4294901760, %v5781_v16  ;;  %v7778_v53 = vand.u32 4294901760, %v5791_v58 }
 0x10c   :  { %7769 = vst [vmem:[#allocation59_spill] sm:$0xff] %v5791_v58  ;;  %v1841_v37 = vand.u32 4294901760, %v1840_v38 }
 0x10d   :  { %7773 = vst [vmem:[#allocation52_spill] sm:$0xff] %v5809_v26  ;;  %v1847_v44 = vsub.f32 %v5771_v54, %v7419_v21  ;;  %v1735_v42 = vsub.f32 %v5781_v16, %v7776_v49  ;;  %v1861_v21 = vsub.f32 %v5791_v58, %v7778_v53  ;;  %v1729_v49 = vand.u32 4294901760, %v1728_v33  ;;  %v5844_v53 = vld [vmem:[%s7238_s4 + $0xa8] sm:$0xff]  ;;  %v5852_v33 = vld [vmem:[%s7238_s4 + $0x20] sm:$0xff] }
 0x10e   :  { %4202 = vmatpush1.bf16.msra.mxu0 %v7775_v7  ;;  %v7780_v16 = vand.u32 4294901760, %v5801_v22  ;;  %v1855_v58 = vand.u32 4294901760, %v1854_v25  ;;  %v7781_v47 = vand.u32 4294901760, %v5809_v26  ;;  %v7783_v25 = vld [vmem:[#allocation43_spill] sm:$0xff]  ;;  %v7440_v43 = vand.u32 4294901760, %v5844_v53 }
 0x10f   :  { %4204 = vmatprep.subr.bf16.mxu0 %v7779_v1  ;;  %v1848_v7 = vand.u32 4294901760, %v1847_v44  ;;  %v1736_v54 = vand.u32 4294901760, %v1735_v42  ;;  %v1862_v3 = vand.u32 4294901760, %v1861_v21  ;;  %v7437_v21 = vand.u32 4294901760, %v5835_v50 }
 0x110   :  { %v1742_v2 = vsub.f32 %v5801_v22, %v7780_v16  ;;  %v1749_v34 = vsub.f32 %v5809_v26, %v7781_v47  ;;  %v5857_v16 = vld [vmem:[%s7238_s4 + $0x28] sm:$0xff]  ;;  %v5859_v22 = vpack.c.bf16 %v1619_v0, %v1616_v51  ;;  %v5865_v47 = vld [vmem:[%s7238_s4 + $0xb0] sm:$0xff] }
 0x111   :  { %7782 = vst [vmem:[#allocation63_spill] sm:$0xff] %v5857_v16  ;;  %v4339_v38 = vpack.c.bf16 %v1848_v7, %v1841_v37  ;;  %v4341_v42 = vpack.c.bf16 %v1736_v54, %v1729_v49  ;;  %v4343_v26 = vpack.c.bf16 %v1862_v3, %v1855_v58  ;;  %v5872_v7 = vld [vmem:[%s7238_s4 + $0xb8] sm:$0xff]  ;;  %v7784_v51 = vld [vmem:[#allocation46_spill] sm:$0xff]  ;;  %v5878_v0 = vsub.f32 %v5835_v50, %v7437_v21 }
 0x112   :  { %v1743_v44 = vand.u32 4294901760, %v1742_v2  ;;  %4206 = vmatpush1.bf16.msra.mxu0 %v7783_v25  ;;  %v1750_v1 = vand.u32 4294901760, %v1749_v34  ;;  %v7786_v37 = vand.u32 4294901760, %v5725_v31  ;;  %v7439_v34 = vand.u32 4294901760, %v5852_v33  ;;  %v5889_v58 = vld [vmem:[%s7238_s4 + $0x30] sm:$0xff] }
 0x113   :  { %4208 = vmatprep.subr.bf16.mxu0 %v7784_v51  ;;  %4340 = vmatprep.subr.bf16.mxu1 %v4339_v38  ;;  %7785 = vst [vmem:[#allocation64_spill] sm:$0xff] %v5878_v0  ;;  %v7438_v3 = vand.u32 4294901760, %v5857_v16  ;;  %v5894_v2 = vsub.f32 %v5844_v53, %v7440_v43  ;;  %v7788_v31 = vand.u32 4294901760, %v5743_v29  ;;  %v7443_v21 = vand.u32 4294901760, %v5878_v0 }
 0x114   :  { %v5882_v54 = vpack.c.bf16 %v1571_v32, %v7786_v37  ;;  %4342 = vmatpush3.bf16.msra.mxu1 %v4341_v42  ;;  %v4345_v49 = vpack.c.bf16 %v1750_v1, %v1743_v44  ;;  %v7789_v32 = vand.u32 4294901760, %v5748_v39  ;;  %v7442_v37 = vand.u32 4294901760, %v5865_v47  ;;  %v5918_v39 = vld [vmem:[%s7238_s4 + $0x38] sm:$0xff] }
 0x115   :  { %7787 = vst [vmem:[#allocation66_spill] sm:$0xff] %v5894_v2  ;;  %4344 = vmatprep.subr.bf16.mxu1 %v4343_v26  ;;  %v5907_v1 = vsub.f32 %v5852_v33, %v7439_v34  ;;  %v5912_v44 = vsub.f32 %v5857_v16, %v7438_v3  ;;  %v7792_v26 = vld [vmem:[#allocation49_spill] sm:$0xff]  ;;  %v7795_v3 = vand.u32 4294901760, %v5767_v4  ;;  %v7446_v43 = vand.u32 4294901760, %v5889_v58 }
 0x116   :  { %v5900_v38 = vpack.c.bf16 %v7789_v32, %v7788_v31  ;;  %4210 = vmatpush1.bf16.msra.mxu0 %v7792_v26  ;;  %v5925_v31 = vsub.f32 %v5865_v47, %v7442_v37  ;;  %v7794_v32 = vand.u32 4294901760, %v5762_v9  ;;  %v1868_v29 = vsub.f32 %v5878_v0, %v7443_v21 }
 0x117   :  { %7790 = vst [vmem:[#allocation21_spill] sm:$0xff] %v5907_v1  ;;  %7791 = vst [vmem:[#allocation22_spill] sm:$0xff] %v5912_v44  ;;  %4212 = vmatprep.subr.bf16.mxu0 %v5708_v59  ;;  %v7796_v37 = vand.u32 4294901760, %v5872_v7  ;;  %v7797_v4 = vand.u32 4294901760, %v5894_v2  ;;  %v5953_v21 = vsub.f32 %v5889_v58, %v7446_v43  ;;  %v7798_v16 = vand.u32 4294901760, %v7731_v10 }
 0x118   :  { %7793 = vst [vmem:[#allocation24_spill] sm:$0xff] %v5925_v31  ;;  %v5931_v34 = vpack.c.bf16 %v7795_v3, %v7794_v32  ;;  %4346 = vmatpush3.bf16.msra.mxu1 %v4345_v49  ;;  %v1869_v42 = vand.u32 4294901760, %v1868_v29  ;;  %v7800_v0 = vand.u32 4294901760, %v5912_v44  ;;  %v7801_v32 = vand.u32 4294901760, %v7733_v63 }
 0x119   :  { %v5943_v9 = vsub.f32 %v5872_v7, %v7796_v37  ;;  %v1875_v3 = vsub.f32 %v5894_v2, %v7797_v4  ;;  %993 = vmatmul.mubr.f32.vlgmr.msra.gmra.mrb[0].mxu0 %v7798_v16  ;;  %v7799_v37 = vand.u32 4294901760, %v5907_v1  ;;  %v7802_v10 = vand.u32 4294901760, %v5925_v31 }
 0x11a   :  { %v1763_v4 = vsub.f32 %v5912_v44, %v7800_v0  ;;  %4214 = vmatpush1.bf16.msra.mxu0 %v5714_v19  ;;  %1001 = vmatprep.mubr.f32.mxu0 %v7801_v32  ;;  %v7804_v0 = vand.u32 4294901760, %v4947_v60  ;;  %v7805_v19 = vand.u32 4294901760, %v4949_v61  ;;  %v7806_v44 = vand.u32 4294901760, %v5953_v21 }
 0x11b   :  { %v1756_v49 = vsub.f32 %v5907_v1, %v7799_v37  ;;  %v7464_v59 = vand.u32 4294901760, %v5943_v9  ;;  %v1876_v43 = vand.u32 4294901760, %v1875_v3  ;;  %v1882_v16 = vsub.f32 %v5925_v31, %v7802_v10  ;;  %4216 = vmatprep.subr.bf16.mxu0 %v5732_v52 }
 0x11c   :  { %v7803_v37 = vand.u32 4294901760, %v5918_v39  ;;  %v4219_v63 = vpack.c.bf16 %v7805_v19, %v7804_v0  ;;  %v1764_v3 = vand.u32 4294901760, %v1763_v4  ;;  %v7807_v52 = vand.u32 4294901760, %v5551_v55 }
 0x11d   :  { %v1757_v32 = vand.u32 4294901760, %v1756_v49  ;;  %v1889_v10 = vsub.f32 %v5943_v9, %v7464_v59  ;;  %v4347_v31 = vpack.c.bf16 %v1876_v43, %v1869_v42  ;;  %v1883_v29 = vand.u32 4294901760, %v1882_v16 }
 0x11e   :  { %v5974_v1 = vsub.f32 %v5918_v39, %v7803_v37  ;;  %v1770_v37 = vsub.f32 %v5953_v21, %v7806_v44  ;;  %1005 = vmatmul.mubr.f32.gmra.mrb[2].mxu0 %v7807_v52  ;;  %v7808_v49 = vand.u32 4294901760, %v4959_v6  ;;  %v7809_v4 = vand.u32 4294901760, %v4961_v8 }
 0x11f   :  { %v4349_v60 = vpack.c.bf16 %v1764_v3, %v1757_v32  ;;  %v1890_v61 = vand.u32 4294901760, %v1889_v10  ;;  %4218 = vmatpush1.bf16.msra.mxu0 %v5754_v17  ;;  %v7810_v43 = vand.u32 4294901760, %v7736_v30  ;;  %v7811_v55 = vand.u32 4294901760, %v4963_v13  ;;  %4348 = vmatprep.subr.bf16.mxu1 %v4347_v31 }
 0x120   :  { %v7463_v2 = vand.u32 4294901760, %v5974_v1  ;;  %v4221_v0 = vpack.c.bf16 %v7809_v4, %v7808_v49  ;;  %v1771_v42 = vand.u32 4294901760, %v1770_v37  ;;  %4220 = vmatprep.subr.bf16.mxu0 %v4219_v63  ;;  %v7812_v16 = vand.u32 4294901760, %v4972_v20 }
 0x121   :  { %1013 = vmatprep.mubr.f32.mxu0 %v7810_v43  ;;  %v4351_v17 = vpack.c.bf16 %v1890_v61, %v1883_v29  ;;  %4350 = vmatpush3.bf16.msra.mxu1 %v4349_v60  ;;  %v7813_v8 = vand.u32 4294901760, %v7738_v57  ;;  %v7814_v30 = vand.u32 4294901760, %v4985_v27  ;;  %v7815_v32 = vand.u32 4294901760, %v4987_v28  ;;  %v7834_v43 = vld [vmem:[#allocation27_spill] sm:$0xff] }
 0x122   :  { %v1777_v44 = vsub.f32 %v5974_v1, %v7463_v2  ;;  %v4223_v19 = vpack.c.bf16 %v7812_v16, %v7811_v55  ;;  %v7816_v63 = vand.u32 4294901760, %v5540_v35  ;;  %v7817_v20 = vand.u32 4294901760, %v5000_v40  ;;  %v7838_v55 = vld [vmem:[#allocation30_spill] sm:$0xff] }
 0x123   :  { %1017 = vmatmul.mubr.f32.gmra.mrb[4].mxu0 %v7813_v8  ;;  %4352 = vmatprep.subr.bf16.mxu1 %v4351_v17  ;;  %v4225_v3 = vpack.c.bf16 %v7815_v32, %v7814_v30  ;;  %v7818_v31 = vand.u32 4294901760, %v5002_v41  ;;  %v7819_v57 = vand.u32 4294901760, %v5555_v56  ;;  %v7820_v27 = vand.u32 4294901760, %v5006_v45  ;;  %v7842_v17 = vld [vmem:[#allocation33_spill] sm:$0xff]  ;;  %v7846_v30 = vld [vmem:[#allocation36_spill] sm:$0xff] }
 0x124   :  { %v1778_v6 = vand.u32 4294901760, %v1777_v44  ;;  %4222 = vmatpush1.bf16.msra.mxu0 %v4221_v0  ;;  %1025 = vmatprep.mubr.f32.mxu0 %v7816_v63  ;;  %v7821_v28 = vand.u32 4294901760, %v5009_v46  ;;  %v7822_v35 = vand.u32 4294901760, %v5023_v11  ;;  %v7823_v40 = vand.u32 4294901760, %v5025_v14  ;;  %v7848_v63 = vld [vmem:[#allocation38_spill] sm:$0xff] }
 0x125   :  { %4224 = vmatprep.subr.bf16.mxu0 %v4223_v19  ;;  %v4227_v29 = vpack.c.bf16 %v7818_v31, %v7817_v20  ;;  %v7824_v41 = vand.u32 4294901760, %v5027_v15  ;;  %v7825_v56 = vand.u32 4294901760, %v5040_v18  ;;  %v7826_v45 = vand.u32 4294901760, %v5044_v24  ;;  %v7832_v18 = vld [vmem:[#allocation26_spill] sm:$0xff]  ;;  %v7850_v20 = vld [vmem:[#allocation39_spill] sm:$0xff] }
 0x126   :  { %v4353_v13 = vpack.c.bf16 %v1778_v6, %v1771_v42  ;;  %v4229_v10 = vpack.c.bf16 %v7821_v28, %v7820_v27  ;;  %v4231_v37 = vpack.c.bf16 %v7823_v40, %v7822_v35  ;;  %v7827_v46 = vand.u32 4294901760, %v5050_v48  ;;  %v7836_v48 = vld [vmem:[#allocation29_spill] sm:$0xff]  ;;  %v7854_v28 = vld [vmem:[#allocation42_spill] sm:$0xff]  ;;  %v7856_v40 = vld [vmem:[#allocation44_spill] sm:$0xff] }
 0x127   :  { %1029 = vmatmul.mubr.f32.gmra.mrb[6].mxu0 %v7819_v57  ;;  %v4233_v52 = vpack.c.bf16 %v7825_v56, %v7824_v41  ;;  %v7828_v61 = vand.u32 4294901760, %v5052_v12  ;;  %v7829_v11 = vand.u32 4294901760, %v7630_v62  ;;  %v7830_v14 = vand.u32 4294901760, %v7631_v23  ;;  %v7840_v62 = vld [vmem:[#allocation32_spill] sm:$0xff]  ;;  %v7852_v57 = vld [vmem:[#allocation41_spill] sm:$0xff] }
 0x128   :  { %4354 = vmatpush3.bf16.msra.mxu1 %v4353_v13  ;;  %4226 = vmatpush1.bf16.msra.mxu0 %v4225_v3  ;;  %v4235_v60 = vpack.c.bf16 %v7827_v46, %v7826_v45  ;;  %v7831_v15 = vand.u32 4294901760, %v7633_v36  ;;  %v7833_v0 = vand.u32 4294901760, %v7832_v18  ;;  %v7835_v24 = vand.u32 4294901760, %v7834_v43  ;;  %v7844_v36 = vld [vmem:[#allocation35_spill] sm:$0xff]  ;;  %v7858_v41 = vld [vmem:[#allocation45_spill] sm:$0xff] }
 0x129   :  { %1244 = vmatprep.mubr.f32.mxu0 %v7679_v5  ;;  %4228 = vmatprep.subr.bf16.mxu0 %v4227_v29  ;;  %v4237_v49 = vpack.c.bf16 %v7829_v11, %v7828_v61  ;;  %v7837_v44 = vand.u32 4294901760, %v7836_v48  ;;  %v7839_v12 = vand.u32 4294901760, %v7838_v55  ;;  %v7841_v19 = vand.u32 4294901760, %v7840_v62  ;;  %v7860_v45 = vld [vmem:[#allocation47_spill] sm:$0xff]  ;;  %v7869_v43 = vld [vmem:[#allocation65_spill] sm:$0xff]  ;;  %v7872_v48 = vld [vmem:[#allocation8_spill] sm:$0xff] }
 0x12a   :  { %v4239_v4 = vpack.c.bf16 %v7831_v15, %v7830_v14  ;;  %v4241_v42 = vpack.c.bf16 %v7835_v24, %v7833_v0  ;;  %v7843_v23 = vand.u32 4294901760, %v7842_v17  ;;  %v7845_v8 = vand.u32 4294901760, %v7844_v36  ;;  %v7866_v15 = vld [vmem:[#allocation51_spill] sm:$0xff]  ;;  %v7868_v0 = vld [vmem:[#allocation5_spill] sm:$0xff]  ;;  %v7870_v24 = vld [vmem:[#allocation6_spill] sm:$0xff] }
 0x12b   :  { %v4243_v16 = vpack.c.bf16 %v7839_v12, %v7837_v44  ;;  %v7847_v32 = vand.u32 4294901760, %v7846_v30  ;;  %v7849_v13 = vand.u32 4294901760, %v7848_v63  ;;  %v7851_v31 = vand.u32 4294901760, %v7850_v20  ;;  %v7873_v44 = vld [vmem:[#allocation77_spill] sm:$0xff]  ;;  %v7874_v55 = vld [vmem:[#allocation10_spill] sm:$0xff]  ;;  %v7875_v12 = vld [vmem:[#allocation4_spill] sm:$0xff] }
 0x12c   :  { %4230 = vmatpush1.bf16.msra.mxu0 %v4229_v10  ;;  %v4245_v6 = vpack.c.bf16 %v7843_v23, %v7841_v19  ;;  %v7853_v27 = vand.u32 4294901760, %v7852_v57  ;;  %v7855_v10 = vand.u32 4294901760, %v7854_v28  ;;  %v7859_v56 = vand.u32 4294901760, %v7858_v41  ;;  %v7877_v62 = vld [vmem:[#allocation74_spill] sm:$0xff]  ;;  %v7878_v19 = vld [vmem:[#allocation12_spill] sm:$0xff]  ;;  %v7880_v23 = vld [vmem:[#allocation13_spill] sm:$0xff] }
 0x12d   :  { %4232 = vmatprep.subr.bf16.mxu0 %v4231_v37  ;;  %v4247_v3 = vpack.c.bf16 %v7847_v32, %v7845_v8  ;;  %v4249_v29 = vpack.c.bf16 %v7851_v31, %v7849_v13  ;;  %v7857_v37 = vand.u32 4294901760, %v7856_v40  ;;  %v7861_v46 = vand.u32 4294901760, %v7860_v45  ;;  %v7879_v17 = vld [vmem:[#allocation60_spill] sm:$0xff]  ;;  %v7882_v36 = vld [vmem:[#allocation14_spill] sm:$0xff]  ;;  %v7883_v8 = vld [vmem:[#allocation15_spill] sm:$0xff] }
 0x12e   :  { %v4251_v35 = vpack.c.bf16 %v7855_v10, %v7853_v27  ;;  %v7884_v30 = vld [vmem:[#allocation16_spill] sm:$0xff]  ;;  %v7885_v32 = vld [vmem:[#allocation17_spill] sm:$0xff]  ;;  %v7887_v63 = vld [vmem:[#allocation19_spill] sm:$0xff]  ;;  %v1423_v45 = vlaneseq }
 0x12f   :  { %v7888_v13 = vld [vmem:[#allocation20_spill] sm:$0xff]  ;;  %v7889_v20 = vld [vmem:[#allocation23_spill] sm:$0xff]  ;;  %v7890_v31 = vld [vmem:[#allocation25_spill] sm:$0xff] }
 0x130   :  { %4234 = vmatpush1.bf16.msra.mxu0 %v4233_v52  ;;  %v4253_v52 = vpack.c.bf16 %v7859_v56, %v7857_v37  ;;  %v7892_v57 = vld [vmem:[#allocation31_spill] sm:$0xff]  ;;  %v7894_v27 = vld [vmem:[#allocation37_spill] sm:$0xff]  ;;  %v7895_v28 = vld [vmem:[#allocation40_spill] sm:$0xff] }
 0x131   :  { %4236 = vmatprep.subr.bf16.mxu0 %v4235_v60  ;;  %v7862_v60 = vld [vmem:[#allocation48_spill] sm:$0xff]  ;;  %v6142_v40 = vld [vmem:[%s7238_s4 + $0x48] sm:$0xff] }
 0x132   :  { %v7863_v61 = vand.u32 4294901760, %v7862_v60  ;;  %v1595_v41 = vand.u32 4294901760, %v6142_v40 }
 0x134   :  { %4238 = vmatpush1.bf16.msra.mxu0 %v4237_v49  ;;  %v4255_v11 = vpack.c.bf16 %v7863_v61, %v7861_v46  ;;  %v7864_v49 = vld [vmem:[#allocation50_spill] sm:$0xff]  ;;  %v6164_v60 = vsub.f32 %v6142_v40, %v1595_v41 }
 0x135   :  { %4240 = vmatprep.subr.bf16.mxu0 %v4239_v4  ;;  %v7865_v14 = vand.u32 4294901760, %v7864_v49  ;;  %v7867_v4 = vand.u32 4294901760, %v7866_v15  ;;  %v6169_v61 = vld [vmem:[%s7238_s4 + $0xd0] sm:$0xff] }
 0x136   :  { %v1646_v15 = vand.u32 4294901760, %v6169_v61 }
 0x137   :  { %v4257_v18 = vpack.c.bf16 %v7867_v4, %v7865_v14 }
 0x138   :  { %4242 = vmatpush1.bf16.msra.mxu0 %v4241_v42  ;;  %v7871_v42 = vld [vmem:[#allocation7_spill] sm:$0xff] }
 0x139   :  { %4244 = vmatprep.subr.bf16.mxu0 %v4243_v16  ;;  %v7876_v16 = vld [vmem:[#allocation11_spill] sm:$0xff] }
 0x13c   :  { %4246 = vmatpush1.bf16.msra.mxu0 %v4245_v6  ;;  %v7881_v6 = vld [vmem:[#allocation78_spill] sm:$0xff] }
 0x13d   :  { %4248 = vmatprep.subr.bf16.mxu0 %v4247_v3  ;;  %v7886_v3 = vld [vmem:[#allocation18_spill] sm:$0xff] }
 0x140   :  { %4250 = vmatpush1.bf16.msra.mxu0 %v4249_v29  ;;  %v7891_v29 = vld [vmem:[#allocation28_spill] sm:$0xff] }
 0x141   :  { %4252 = vmatprep.subr.bf16.mxu0 %v4251_v35  ;;  %v6137_v35 = vld [vmem:[%s7238_s4 + $0x40] sm:$0xff] }
 0x142   :  { %v1592_v37 = vand.u32 4294901760, %v6137_v35 }
 0x144   :  { %4254 = vmatpush1.bf16.msra.mxu0 %v4253_v52  ;;  %v6159_v46 = vsub.f32 %v6137_v35, %v1592_v37  ;;  %v1534_v35 = vld [vmem:[%s7238_s4 + $0x78] sm:$0xff] }
 0x145   :  { %4256 = vmatprep.subr.bf16.mxu0 %v4255_v11  ;;  %v6174_v11 = vld [vmem:[%s7238_s4 + $0xd8] sm:$0xff] }
 0x146   :  { %v1649_v4 = vand.u32 4294901760, %v6174_v11 }
 0x148   :  { %4258 = vmatpush1.bf16.msra.mxu0 %v4257_v18  ;;  %v6183_v18 = vld [vmem:[%s7238_s4 + $0x50] sm:$0xff] }
 0x149   :  { %4260 = vmatprep.subr.bf16.mxu0 %v7868_v0  ;;  %v6188_v0 = vld [vmem:[%s7238_s4 + $0x58] sm:$0xff] }
 0x14b   :  { %1246 = vmatmul.mubr.f32.vlgmr.msra.gmra.mrb[0].mxu0 %v7869_v43 }
 0x14c   :  { %4262 = vmatpush1.bf16.msra.mxu0 %v7870_v24  ;;  %1252 = vmatprep.mubr.f32.mxu0 %v7871_v42  ;;  %v7458_v24 = vand.u32 4294901760, %v6159_v46 }
 0x14d   :  { %4264 = vmatprep.subr.bf16.mxu0 %v7872_v48 }
 0x14f   :  { %1254 = vmatmul.mubr.f32.gmra.mrb[2].mxu0 %v7873_v44 }
 0x150   :  { %4266 = vmatpush1.bf16.msra.mxu0 %v7874_v55  ;;  %1260 = vmatprep.mubr.f32.mxu0 %v7875_v12  ;;  %v6203_v55 = vsub.f32 %v6169_v61, %v1646_v15 }
 0x151   :  { %4268 = vmatprep.subr.bf16.mxu0 %v7876_v16  ;;  %v1784_v16 = vsub.f32 %v6159_v46, %v7458_v24 }
 0x153   :  { %1262 = vmatmul.mubr.f32.gmra.mrb[4].mxu0 %v7877_v62 }
 0x154   :  { %4270 = vmatpush1.bf16.msra.mxu0 %v7878_v19  ;;  %1268 = vmatprep.mubr.f32.mxu0 %v7879_v17  ;;  %v1598_v19 = vand.u32 4294901760, %v6183_v18 }
 0x155   :  { %4272 = vmatprep.subr.bf16.mxu0 %v7880_v23  ;;  %v6221_v23 = vld [vmem:[%s7239_s2] sm:$0x3] }
 0x157   :  { %1270 = vmatmul.mubr.f32.gmra.mrb[6].mxu0 %v7881_v6 }
 0x158   :  { %4274 = vmatpush1.bf16.msra.mxu0 %v7882_v36  ;;  %1389 = vmatprep.mubr.f32.mxu0 %v7679_v5  ;;  %v7893_v5 = vld [vmem:[#allocation34_spill] sm:$0xff] }
 0x159   :  { %4276 = vmatprep.subr.bf16.mxu0 %v7883_v8 }
 0x15c   :  { %4278 = vmatpush1.bf16.msra.mxu0 %v7884_v30  ;;  %v7456_v30 = vand.u32 4294901760, %v6203_v55 }
 0x15d   :  { %4280 = vmatprep.subr.bf16.mxu0 %v7885_v32  ;;  %v1785_v32 = vand.u32 4294901760, %v1784_v16 }
 0x160   :  { %4282 = vmatpush1.bf16.msra.mxu0 %v7886_v3 }
 0x161   :  { %4284 = vmatprep.subr.bf16.mxu0 %v7887_v63 }
 0x164   :  { %4286 = vmatpush1.bf16.msra.mxu0 %v7888_v13  ;;  %v6229_v13 = vld [vmem:[%s7238_s4 + $0xe0] sm:$0xff] }
 0x165   :  { %4288 = vmatprep.subr.bf16.mxu0 %v7889_v20  ;;  %v6234_v20 = vld [vmem:[%s7240_s3] sm:$0x3] }
 0x168   :  { %4290 = vmatpush1.bf16.msra.mxu0 %v7890_v31 }
 0x169   :  { %4292 = vmatprep.subr.bf16.mxu0 %v7891_v29  ;;  %v7896_v29 = vand.u32 4294901760, %v5835_v50  ;;  %v7898_v50 = vand.u32 4294901760, %v5852_v33 }
 0x16c   :  { %4294 = vmatpush1.bf16.msra.mxu0 %v7892_v57  ;;  %v7897_v57 = vand.u32 4294901760, %v5844_v53  ;;  %v7899_v53 = vld [vmem:[#allocation63_spill] sm:$0xff] }
 0x16d   :  { %4296 = vmatprep.subr.bf16.mxu0 %v7893_v5 }
 0x16e   :  { %v6243_v5 = vpack.c.bf16 %v7897_v57, %v7896_v29 }
 0x170   :  { %4298 = vmatpush1.bf16.msra.mxu0 %v7894_v27 }
 0x171   :  { %4300 = vmatprep.subr.bf16.mxu0 %v7895_v28  ;;  %v1910_v28 = vsub.f32 %v6203_v55, %v7456_v30 }
 0x173   :  { %v1911_v33 = vand.u32 4294901760, %v1910_v28  ;;  %v7901_v28 = vand.u32 4294901760, %v5865_v47 }
 0x174   :  { %4302 = vmatpush1.bf16.msra.mxu0 %v7783_v25  ;;  %v6125_v25 = vld [vmem:[%s7238_s4 + $0xc0] sm:$0xff] }
 0x175   :  { %4304 = vmatprep.subr.bf16.mxu0 %v7784_v51  ;;  %v6130_v51 = vld [vmem:[%s7238_s4 + $0xc8] sm:$0xff] }
 0x176   :  { %v1643_v10 = vand.u32 4294901760, %v6130_v51 }
 0x178   :  { %4306 = vmatpush1.bf16.msra.mxu0 %v7792_v26  ;;  %v1640_v26 = vand.u32 4294901760, %v6125_v25  ;;  %v6154_v52 = vsub.f32 %v6130_v51, %v1643_v10 }
 0x179   :  { %4308 = vmatprep.subr.bf16.mxu0 %v5859_v22 }
 0x17a   :  { %v6149_v56 = vsub.f32 %v6125_v25, %v1640_v26  ;;  %v7459_v14 = vand.u32 4294901760, %v6154_v52  ;;  %v6349_v59 = vpack.c.bf16 %v1643_v10, %v1640_v26  ;;  %v6365_v25 = vpack.c.bf16 %v1595_v41, %v1592_v37 }
 0x17b   :  { %1391 = vmatmul.mubr.f32.vlgmr.msra.gmra.mrb[0].mxu0 %v7869_v43  ;;  %v6190_v43 = vshrl.u32 %v1423_v45, 7  ;;  %v6251_v45 = vld [vmem:[%s7238_s4 + $0xe8] sm:$0xff] }
 0x17c   :  { %1397 = vmatprep.mubr.f32.mxu0 %v7871_v42  ;;  %4310 = vmatpush3.bf16.msra.mxu0 %v5882_v54  ;;  %v7461_v49 = vand.u32 4294901760, %v6149_v56  ;;  %v7457_v42 = vand.u32 4294901760, %v6164_v60 }
 0x17d   :  { %4312 = vmatprep.subr.bf16.mxu0 %v5900_v38 }
 0x17e   :  { %v1896_v48 = vsub.f32 %v6149_v56, %v7461_v49 }
 0x17f   :  { %1399 = vmatmul.mubr.f32.gmra.mrb[2].mxu0 %v7873_v44  ;;  %v1903_v44 = vsub.f32 %v6154_v52, %v7459_v14 }
 0x180   :  { %1405 = vmatprep.mubr.f32.mxu0 %v7875_v12  ;;  %4314 = vmatpush3.bf16.msra.mxu0 %v5931_v34  ;;  %v6208_v12 = vsub.f32 %v6174_v11, %v1649_v4  ;;  %v1897_v36 = vand.u32 4294901760, %v1896_v48  ;;  %v6256_v48 = vld [vmem:[%s7238_s4 + $0x60] sm:$0xff] }
 0x181   :  { %v1904_v8 = vand.u32 4294901760, %v1903_v44  ;;  %v7900_v44 = vand.u32 4294901760, %v7899_v53  ;;  %4316 = vmatprep.subr.bf16.mxu0 %v6243_v5  ;;  %v7902_v53 = vand.u32 4294901760, %v5872_v7  ;;  %v7903_v7 = vand.u32 4294901760, %v5889_v58 }
 0x182   :  { %v7455_v63 = vand.u32 4294901760, %v6208_v12 }
 0x183   :  { %1407 = vmatmul.mubr.f32.gmra.mrb[4].mxu0 %v7877_v62  ;;  %v1791_v62 = vsub.f32 %v6164_v60, %v7457_v42  ;;  %v4355_v27 = vpack.c.bf16 %v1904_v8, %v1897_v36  ;;  %v6262_v16 = vpack.c.bf16 %v7900_v44, %v7898_v50  ;;  %v6270_v8 = vld [vmem:[%s7238_s4 + $0x68] sm:$0xff]  ;;  %v1655_v50 = vand.u32 4294901760, %v6251_v45 }
 0x184   :  { %1413 = vmatprep.mubr.f32.mxu0 %v7879_v17  ;;  %v1601_v17 = vand.u32 4294901760, %v6188_v0  ;;  %v1917_v36 = vsub.f32 %v6208_v12, %v7455_v63  ;;  %v6294_v44 = vpack.c.bf16 %v7902_v53, %v7901_v28  ;;  %v1607_v42 = vand.u32 4294901760, %v6270_v8 }
 0x185   :  { %v1792_v3 = vand.u32 4294901760, %v1791_v62  ;;  %4356 = vmatprep.subr.bf16.mxu1 %v4355_v27  ;;  %4318 = vmatpush3.bf16.msra.mxu0 %v6262_v16  ;;  %v7465_v27 = vand.u32 4294901760, %v6256_v48  ;;  %v7904_v28 = vand.u32 4294901760, %v5918_v39  ;;  %v6323_v14 = vsub.f32 %v6251_v45, %v1655_v50 }
 0x186   :  { %v1918_v57 = vand.u32 4294901760, %v1917_v36  ;;  %v6307_v36 = vld [vmem:[%s7238_s4 + $0xf8] sm:$0xff]  ;;  %4320 = vmatprep.subr.bf16.mxu0 %v6294_v44 }
 0x187   :  { %1415 = vmatmul.mubr.f32.gmra.mrb[6].mxu0 %v7881_v6  ;;  %v1429_v6 = vsub.s32 1, %v6190_v43  ;;  %v4357_v62 = vpack.c.bf16 %v1792_v3, %v1785_v32  ;;  %v6279_v32 = vsub.f32 %v6183_v18, %v1598_v19  ;;  %v6284_v3 = vsub.f32 %v6188_v0, %v1601_v17 }
 0x188   :  { %v4359_v47 = vpack.c.bf16 %v1918_v57, %v1911_v33  ;;  %v6313_v53 = vpack.c.bf16 %v7904_v28, %v7903_v7  ;;  %v6335_v33 = vsub.f32 %v6256_v48, %v7465_v27  ;;  %v6338_v57 = vsub.f32 %v6270_v8, %v1607_v42 }
 0x189   :  { %v6237_v31 = vrot.slane %v6221_v23, %v1429_v6  ;;  %v6273_v29 = vrot.slane %v6234_v20, %v1429_v6  ;;  %4358 = vmatpush3.bf16.msra.mxu1 %v4357_v62  ;;  %v1652_v6 = vand.u32 4294901760, %v6229_v13  ;;  %v7460_v63 = vand.u32 4294901760, %v6279_v32  ;;  %v6302_v62 = vld [vmem:[%s7238_s4 + $0xf0] sm:$0xff] }
 0x18a   :  { %v7462_v30 = vand.u32 4294901760, %v6284_v3  ;;  %4360 = vmatprep.subr.bf16.mxu1 %v4359_v47  ;;  %4322 = vmatpush3.bf16.msra.mxu0 %v6313_v53  ;;  %v7466_v28 = vand.u32 4294901760, %v6323_v14  ;;  %v1661_v49 = vand.u32 4294901760, %v6307_v36  ;;  %v7467_v8 = vand.u32 4294901760, %v6335_v33  ;;  %v1533_v47 = vld [vmem:[%s7238_s4 + $0x70] sm:$0xff] }
 0x18b   :  { %v6318_v24 = vsub.f32 %v6229_v13, %v1652_v6  ;;  %v1798_v58 = vsub.f32 %v6279_v32, %v7460_v63  ;;  %v1658_v63 = vand.u32 4294901760, %v6302_v62  ;;  %v7468_v51 = vand.u32 4294901760, %v6338_v57  ;;  %4324 = vmatprep.subr.bf16.mxu0 %v6349_v59 }
 0x18c   :  { %v1805_v39 = vsub.f32 %v6284_v3, %v7462_v30  ;;  %v1812_v10 = vsub.f32 %v6335_v33, %v7467_v8  ;;  %v1610_v41 = vand.u32 4294901760, %v1533_v47 }
 0x18d   :  { %v7475_v7 = vand.u32 4294901760, %v6318_v24  ;;  %v1799_v30 = vand.u32 4294901760, %v1798_v58  ;;  %v1931_v58 = vsub.f32 %v6323_v14, %v7466_v28  ;;  %v6376_v28 = vsub.f32 %v6307_v36, %v1661_v49 }
 0x18e   :  { %v1806_v2 = vand.u32 4294901760, %v1805_v39  ;;  %v6373_v39 = vsub.f32 %v6302_v62, %v1658_v63  ;;  %4326 = vmatpush3.bf16.msra.mxu0 %v6365_v25  ;;  %v6389_v62 = vpack.c.bf16 %v1649_v4, %v1646_v15  ;;  %v6406_v15 = vsub.f32 %v1533_v47, %v1610_v41 }
 0x18f   :  { %v1924_v27 = vsub.f32 %v6318_v24, %v7475_v7  ;;  %v1932_v37 = vand.u32 4294901760, %v1931_v58 }
 0x190   :  { %v4361_v26 = vpack.c.bf16 %v1806_v2, %v1799_v30  ;;  %v1819_v2 = vsub.f32 %v6338_v57, %v7468_v51  ;;  %v1813_v30 = vand.u32 4294901760, %v1812_v10  ;;  %v7474_v36 = vand.u32 4294901760, %v6373_v39  ;;  %4328 = vmatprep.subr.bf16.mxu0 %v6389_v62 }
 0x191   :  { %v1925_v40 = vand.u32 4294901760, %v1924_v27  ;;  %v7473_v27 = vand.u32 4294901760, %v6376_v28  ;;  %v6397_v51 = vpack.c.bf16 %v1601_v17, %v1598_v19  ;;  %v7472_v17 = vand.u32 4294901760, %v6406_v15 }
 0x192   :  { %4362 = vmatpush3.bf16.msra.mxu1 %v4361_v26  ;;  %v1820_v8 = vand.u32 4294901760, %v1819_v2  ;;  %v1613_v26 = vand.u32 4294901760, %v1534_v35  ;;  %v1938_v61 = vsub.f32 %v6373_v39, %v7474_v36  ;;  %v6416_v10 = vpack.c.bf16 %v1655_v50, %v1652_v6 }
 0x193   :  { %v4363_v58 = vpack.c.bf16 %v1932_v37, %v1925_v40  ;;  %v1945_v11 = vsub.f32 %v6376_v28, %v7473_v27  ;;  %4330 = vmatpush3.bf16.msra.mxu0 %v6397_v51  ;;  %v7905_v40 = vand.u32 4294901760, %v6256_v48  ;;  %v6431_v50 = vpack.c.bf16 %v1661_v49, %v1658_v63  ;;  %v7908_v48 = vld [vmem:[#allocation55_spill] sm:$0xff] }
 0x194   :  { %v4365_v4 = vpack.c.bf16 %v1820_v8, %v1813_v30  ;;  %v6409_v18 = vsub.f32 %v1534_v35, %v1613_v26  ;;  %v1939_v0 = vand.u32 4294901760, %v1938_v61  ;;  %v1826_v35 = vsub.f32 %v6406_v15, %v7472_v17  ;;  %4332 = vmatprep.subr.bf16.mxu0 %v6416_v10  ;;  %v6445_v61 = vld [vmem:[%s7238_s4 + $0x108] sm:$0xff] }
 0x195   :  { %4364 = vmatprep.subr.bf16.mxu1 %v4363_v58  ;;  %v1946_v19 = vand.u32 4294901760, %v1945_v11  ;;  %v6421_v8 = vpack.c.bf16 %v1607_v42, %v7905_v40  ;;  %7906 = vst [vmem:[#allocation67_spill] sm:$0xff] %v6431_v50  ;;  %v7907_v42 = vld [vmem:[#allocation54_spill] sm:$0xff]  ;;  %v6435_v30 = vpack.c.bf16 %v1613_v26, %v1610_v41  ;;  %v6440_v58 = vld [vmem:[%s7238_s4 + $0x100] sm:$0xff]  ;;  %7911 = vst [vmem:[#allocation70_spill] sm:$0xff] %v6445_v61  ;;  %v7469_v63 = vand.u32 4294901760, %v6445_v61 }
 0x196   :  { %4366 = vmatpush3.bf16.msra.mxu1 %v4365_v4  ;;  %v7471_v47 = vand.u32 4294901760, %v6409_v18  ;;  %v1827_v45 = vand.u32 4294901760, %v1826_v35  ;;  %v4371_v2 = vpack.c.bf16 %v7908_v48, %v7907_v42  ;;  %7910 = vst [vmem:[#allocation69_spill] sm:$0xff] %v6440_v58  ;;  %v7470_v49 = vand.u32 4294901760, %v6440_v58 }
 0x197   :  { %v4367_v37 = vpack.c.bf16 %v1946_v19, %v1939_v0  ;;  %4334 = vmatpush3.bf16.msra.mxu0 %v6421_v8  ;;  %7909 = vst [vmem:[#allocation68_spill] sm:$0xff] %v6435_v30 }
 0x198   :  { %v1833_v13 = vsub.f32 %v6409_v18, %v7471_v47  ;;  %4336 = vmatprep.subr.bf16.mxu0 %v6431_v50  ;;  %v6455_v41 = vpack.c.bf16 %v7469_v63, %v7470_v49 }
 0x199   :  { %4368 = vmatprep.subr.bf16.mxu1 %v4367_v37 }
 0x19a   :  { %v1834_v6 = vand.u32 4294901760, %v1833_v13 }
 0x19b   :  { %4338 = vmatpush3.bf16.msra.mxu0 %v6435_v30 }
 0x19c   :  { %v4369_v11 = vpack.c.bf16 %v1834_v6, %v1827_v45  ;;  %4660 = vmatprep.subr.bf16.mxu0 %v6455_v41  ;;  %v1425_v45 = vsub.s32 0, %v6190_v43 }
 0x19e   :  { %4370 = vmatpush3.bf16.msra.mxu1 %v4369_v11  ;;  %v1426_v6 = vrot.slane %v6221_v23, %v1425_v45 }
 0x19f   :  { %4372 = vmatprep.subr.bf16.mxu1 %v4371_v2  ;;  %v1446_v2 = vrot.slane %v6234_v20, %v1425_v45 }
 0x24e   :  { %v1392_v11 = vpop.f32.mrb[0].mxu0 }
 0x24f   :  { %v1433_v63 = vmul.f32 %v1426_v6, %v1392_v11  ;;  %v1394_v49 = vpop.f32.mrb[1].mxu0 }
 0x250   :  { %v1434_v47 = vmul.f32 %v6237_v31, %v1394_v49 }
 0x251   :  { %v1453_v17 = vadd.f32 %v1446_v2, %v1433_v63 }
 0x252   :  { %v6479_v27 = vadd.f32 %v6273_v29, %v1434_v47  ;;  %v1400_v36 = vpop.f32.mrb[2].mxu0 }
 0x253   :  { %v1461_v7 = vmax.f32 %v1453_v17, 0.0  ;;  %v1435_v35 = vmul.f32 %v1426_v6, %v1400_v36  ;;  %v1402_v37 = vpop.f32.mrb[3].mxu0 }
 0x254   :  { %7912 = vst [vmem:[#allocation71_spill] sm:$0xff] %v6479_v27  ;;  %v1436_v13 = vmul.f32 %v6237_v31, %v1402_v37 }
 0x255   :  { %v1473_v43 = vrot.slane %v1461_v7, 7  ;;  %v1455_v40 = vadd.f32 %v1446_v2, %v1435_v35  ;;  %v6482_v23 = vand.u32 4294901760, %v1461_v7  ;;  %v1488_v36 = vrot.slane %v1461_v7, 1 }
 0x256   :  { %v6485_v20 = vadd.f32 %v6273_v29, %v1436_v13  ;;  %v1408_v45 = vpop.f32.mrb[4].mxu0 }
 0x257   :  { %7913 = vst [vmem:[#allocation72_spill] sm:$0xff] %v6482_v23  ;;  %1484 = vst [vmem:[#allocation3] sm:$0xfe] %v1473_v43  ;;  %v1462_v49 = vmax.f32 %v1455_v40, 0.0  ;;  %v1437_v63 = vmul.f32 %v1426_v6, %v1408_v45  ;;  %v1410_v11 = vpop.f32.mrb[5].mxu0  ;;  %1949 = vmatprep.mubr.f32.mxu1 %v6482_v23  ;;  %v6489_v17 = vsub.f32 %v1461_v7, %v6482_v23  ;;  %v7917_v40 = vld [vmem:[#allocation56_spill] sm:$0xff] }
 0x258   :  { %7914 = vst [vmem:[#allocation73_spill] sm:$0xff] %v6485_v20  ;;  %v1438_v47 = vmul.f32 %v6237_v31, %v1410_v11  ;;  %v7918_v45 = vld [vmem:[#allocation57_spill] sm:$0xff] }
 0x259   :  { %v1474_v37 = vrot.slane %v1462_v49, 7  ;;  %v1489_v35 = vrot.slane %v1462_v49, 1  ;;  %v1457_v19 = vadd.f32 %v1446_v2, %v1437_v63  ;;  %v6492_v0 = vand.u32 4294901760, %v1462_v49 }
 0x25a   :  { %v6495_v13 = vadd.f32 %v6273_v29, %v1438_v47  ;;  %v1416_v4 = vpop.f32.mrb[6].mxu0  ;;  %v4373_v26 = vpack.c.bf16 %v7918_v45, %v7917_v40  ;;  %v7484_v27 = vand.u32 4294901760, %v6489_v17 }
 0x25b   :  { %7915 = vst [vmem:[#allocation53_spill] sm:$0xff] %v6492_v0  ;;  %v1475_v20 = vsel %vm51_vm4, %v1473_v43, %v1474_v37  ;;  %v6502_v7 = vsel %vm69_vm1, %v1488_v36, %v1489_v35  ;;  %v1463_v11 = vmax.f32 %v1457_v19, 0.0  ;;  %v1439_v61 = vmul.f32 %v1426_v6, %v1416_v4  ;;  %v1418_v58 = vpop.f32.mrb[7].mxu0  ;;  %v7923_v6 = vld [vmem:[#allocation58_spill] sm:$0xff] }
 0x25c   :  { %7916 = vst [vmem:[#allocation75_spill] sm:$0xff] %v6495_v13  ;;  %7919 = vst [vmem:[#allocation9_spill] sm:$0xff] %v6502_v7  ;;  %v1440_v63 = vmul.f32 %v6237_v31, %v1418_v58  ;;  %v6505_v23 = vand.u32 4294901760, %v1475_v20  ;;  %v1666_v47 = vsub.f32 %v6489_v17, %v7484_v27  ;;  %v6511_v13 = vsub.f32 %v1462_v49, %v6492_v0  ;;  %v7924_v31 = vld [vmem:[#allocation59_spill] sm:$0xff] }
 0x25d   :  { %v1476_v45 = vrot.slane %v1463_v11, 7  ;;  %v1491_v40 = vrot.slane %v1463_v11, 1  ;;  %v1459_v43 = vadd.f32 %v1446_v2, %v1439_v61  ;;  %v6513_v30 = vand.u32 4294901760, %v1463_v11 }
 0x25e   :  { %7920 = vst [vmem:[#allocation61_spill] sm:$0xff] %v6505_v23  ;;  %v6516_v19 = vadd.f32 %v6273_v29, %v1440_v63  ;;  %v1507_v4 = vld [vmem:[#allocation3] sm:$0xff]  ;;  %v4375_v58 = vpack.c.bf16 %v7924_v31, %v7923_v6  ;;  %v1667_v36 = vand.u32 4294901760, %v1666_v47  ;;  %v6521_v48 = vsub.f32 %v1475_v20, %v6505_v23  ;;  %v7929_v47 = vld [vmem:[#allocation62_spill] sm:$0xff] }
 0x25f   :  { %7921 = vst [vmem:[#allocation76_spill] sm:$0xff] %v6513_v30  ;;  %v1477_v27 = vsel %vm51_vm4, %v1474_v37, %v1476_v45  ;;  %v1492_v49 = vsel %vm69_vm1, %v1489_v35, %v1491_v40  ;;  %v1464_v42 = vmax.f32 %v1459_v43, 0.0  ;;  %v6525_v50 = vand.u32 4294901760, %v1507_v4  ;;  %v6537_v37 = vld [vmem:[%s7238_s4 + $0x110] sm:$0xff]  ;;  %v7930_v43 = vld [vmem:[#allocation52_spill] sm:$0xff] }
 0x260   :  { %7922 = vst [vmem:[#allocation43_spill] sm:$0xff] %v6516_v19  ;;  %1486 = vst [vmem:[#allocation3 + $0x30] sm:$0xff] %v1477_v27  ;;  %1668 = vmatprep.mubr.f32.mxu0 %v1667_v36  ;;  %v7926_v61 = vmov 0.0   ;;  %v6542_v27 = vld [vmem:[%s7238_s4 + $0x118] sm:$0xff]  ;;  %v6545_v35 = vsub.f32 %v1463_v11, %v6513_v30  ;;  %v7931_v36 = vld [vmem:[#allocation64_spill] sm:$0xff] }
 0x261   :  { %7925 = vst [vmem:[#allocation46_spill] sm:$0xff] %v6525_v50  ;;  %1500 = vst [vmem:[#allocation3 + $0x28] sm:$0xff] %v1492_v49  ;;  %v1478_v2 = vrot.slane %v1464_v42, 7  ;;  %v1493_v63 = vrot.slane %v1464_v42, 1  ;;  %v6531_v20 = vsub.f32 %v1507_v4, %v6525_v50  ;;  %1951 = vmatmul.mubr.f32.vlgmr.msra.gmra.mrb[0].mxu1 %v6525_v50  ;;  %v4377_v4 = vpack.c.bf16 %v7930_v43, %v7929_v47  ;;  %v7932_v49 = vld [vmem:[#allocation66_spill] sm:$0xff]  ;;  %v6580_v43 = vld [vmem:[%s7238_s4 + $0x128] sm:$0xff] }
 0x262   :  { %1504 = vst [vmem:[#allocation3 + $0x2f] sm:$0x1] %v7926_v61  ;;  %1505 = vst [vmem:[#allocation3 + $0x30] sm:$0x1] %v7926_v61  ;;  %4374 = vmatpush3.bf16.msra.mxu1 %v4373_v26  ;;  %1956 = vmatprep.mubr.f32.mxu1 %v6492_v0  ;;  %v4379_v61 = vpack.c.bf16 %v7932_v49, %v7931_v36  ;;  %v6552_v29 = vand.u32 4294901760, %v1464_v42  ;;  %v7938_v0 = vld [vmem:[#allocation22_spill] sm:$0xff] }
 0x263   :  { %7927 = vst [vmem:[#allocation49_spill] sm:$0xff] %v6537_v37  ;;  %7928 = vst [vmem:[#allocation26_spill] sm:$0xff] %v6542_v27  ;;  %v1479_v19 = vsel %vm51_vm4, %v1476_v45, %v1478_v2  ;;  %v6556_v50 = vsel %vm69_vm1, %v1491_v40, %v1493_v63  ;;  %v7491_v11 = vand.u32 4294901760, %v6531_v20  ;;  %4376 = vmatprep.subr.bf16.mxu1 %v4375_v58  ;;  %v7934_v45 = vand.u32 4294901760, %v6511_v13  ;;  %v6575_v58 = vld [vmem:[%s7238_s4 + $0x120] sm:$0xff] }
 0x264   :  { %7933 = vst [vmem:[#allocation27_spill] sm:$0xff] %v6556_v50  ;;  %1502 = vst [vmem:[#allocation3 + $0x58] sm:$0x7f] %v1493_v63  ;;  %v6570_v63 = vand.u32 4294901760, %v1479_v19  ;;  %v6586_v2 = vsub.f32 %v1464_v42, %v6552_v29  ;;  %v7939_v50 = vand.u32 4294901760, %v6521_v48  ;;  %v7940_v47 = vld [vmem:[#allocation24_spill] sm:$0xff] }
 0x265   :  { %1958 = vmatmul.mubr.f32.gmra.mrb[2].mxu1 %v6505_v23  ;;  %v1672_v49 = vsub.f32 %v6531_v20, %v7491_v11  ;;  %v1681_v40 = vsub.f32 %v6511_v13, %v7934_v45  ;;  %7935 = vst [vmem:[#allocation29_spill] sm:$0xff] %v6575_v58  ;;  %7936 = vst [vmem:[#allocation30_spill] sm:$0xff] %v6580_v43  ;;  %v7937_v11 = vld [vmem:[#allocation21_spill] sm:$0xff]  ;;  %v4383_v31 = vpack.c.bf16 %v5943_v9, %v7940_v47 }
 0x266   :  { %4378 = vmatpush3.bf16.msra.mxu1 %v4377_v4  ;;  %1963 = vmatprep.mubr.f32.mxu1 %v6513_v30  ;;  %v4381_v45 = vpack.c.bf16 %v7938_v0, %v7937_v11  ;;  %v1687_v23 = vsub.f32 %v6521_v48, %v7939_v50  ;;  %v7941_v4 = vand.u32 4294901760, %v6537_v37  ;;  %v7942_v30 = vand.u32 4294901760, %v6542_v27  ;;  %v6609_v37 = vld [vmem:[%s7238_s4 + $0x130] sm:$0xff] }
 0x267   :  { %4380 = vmatprep.subr.bf16.mxu1 %v4379_v61  ;;  %v1673_v26 = vand.u32 4294901760, %v1672_v49  ;;  %v1682_v49 = vand.u32 4294901760, %v1681_v40  ;;  %v7944_v50 = vand.u32 4294901760, %v6545_v35  ;;  %7945 = vst [vmem:[#allocation33_spill] sm:$0xff] %v6609_v37  ;;  %v7947_v40 = vand.u32 4294901760, %v6575_v58 }
 0x268   :  { %v6597_v6 = vpack.c.bf16 %v7942_v30, %v7941_v4  ;;  %v6614_v30 = vld [vmem:[%s7238_s4 + $0x138] sm:$0xff]  ;;  %v6617_v4 = vsub.f32 %v1479_v19, %v6570_v63  ;;  %v7505_v19 = vand.u32 4294901760, %v6609_v37 }
 0x269   :  { %v1513_v36 = vld [vmem:[#allocation3 + $0x30] sm:$0xff]  ;;  %1674 = vmatmul.mubr.f32.vlgmr.msra.gmra.mrb[8].mxu0 %v1673_v26  ;;  %v1696_v11 = vsub.f32 %v6545_v35, %v7944_v50  ;;  %7946 = vst [vmem:[#allocation35_spill] sm:$0xff] %v6614_v30  ;;  %v4385_v26 = vpack.c.bf16 %v5974_v1, %v5953_v21  ;;  %v1688_v50 = vand.u32 4294901760, %v1687_v23 }
 0x26a   :  { %7943 = vst [vmem:[#allocation32_spill] sm:$0xff] %v6597_v6  ;;  %v6601_v61 = vand.u32 4294901760, %v1513_v36  ;;  %4382 = vmatpush3.bf16.msra.mxu1 %v4381_v45  ;;  %4662 = vmatpush3.bf16.msra.mxu0 %v6455_v41  ;;  %v7504_v45 = vand.u32 4294901760, %v6614_v30  ;;  %v7959_v30 = vpack.c.bf16 %v6208_v12, %v6203_v55 }
 0x26b   :  { %1683 = vmatprep.mubr.f32.mxu0 %v1682_v49  ;;  %4384 = vmatprep.subr.bf16.mxu1 %v4383_v31  ;;  %v1697_v0 = vand.u32 4294901760, %v1696_v11  ;;  %v7948_v49 = vand.u32 4294901760, %v6580_v43  ;;  %v6642_v31 = vld [vmem:[%s7238_s4 + $0x140] sm:$0xff]  ;;  %v7952_v11 = vand.u32 4294901760, %v6586_v2 }
 0x26c   :  { %1965 = vmatmul.mubr.f32.gmra.mrb[4].mxu1 %v6601_v61  ;;  %v6625_v42 = vsub.f32 %v1513_v36, %v6601_v61  ;;  %4664 = vmatprep.subr.bf16.mxu0 %v6597_v6  ;;  %7950 = vst [vmem:[#allocation38_spill] sm:$0xff] %v6642_v31  ;;  %v7953_v36 = vpack.c.bf16 %v6154_v52, %v6149_v56 }
 0x26d   :  { %1970 = vmatprep.mubr.f32.mxu1 %v6552_v29  ;;  %1689 = vmatmul.mubr.f32.gmra.mrb[10].mxu0 %v1688_v50  ;;  %v6635_v27 = vpack.c.bf16 %v7948_v49, %v7947_v40  ;;  %v6647_v50 = vld [vmem:[%s7238_s4 + $0x148] sm:$0xff]  ;;  %v1711_v40 = vsub.f32 %v6586_v2, %v7952_v11  ;;  %v7958_v11 = vpack.c.bf16 %v6164_v60, %v6159_v46 }
 0x26e   :  { %v7501_v23 = vand.u32 4294901760, %v6625_v42  ;;  %7951 = vst [vmem:[#allocation39_spill] sm:$0xff] %v6647_v50  ;;  %4386 = vmatpush3.bf16.msra.mxu1 %v4385_v26  ;;  %4666 = vmatpush3.bf16.msra.mxu0 %v6597_v6  ;;  %v6665_v26 = vpack.c.bf16 %v7504_v45, %v7505_v19  ;;  %v7957_v45 = vand.u32 4294901760, %v6617_v4  ;;  %v7961_v58 = vand.u32 4294901760, %v6647_v50 }
 0x26f   :  { %7949 = vst [vmem:[#allocation36_spill] sm:$0xff] %v6635_v27  ;;  %1698 = vmatprep.mubr.f32.mxu0 %v1697_v0  ;;  %4388 = vmatprep.subr.bf16.mxu1 %v7953_v36  ;;  %v6677_v36 = vld [vmem:[%s7238_s4 + $0x158] sm:$0xff]  ;;  %v1712_v0 = vand.u32 4294901760, %v1711_v40 }
 0x270   :  { %1972 = vmatmul.mubr.f32.gmra.mrb[6].mxu1 %v6570_v63  ;;  %v1702_v49 = vsub.f32 %v6625_v42, %v7501_v23  ;;  %7954 = vst [vmem:[#allocation41_spill] sm:$0xff] %v6665_v26  ;;  %v6672_v23 = vld [vmem:[%s7238_s4 + $0x150] sm:$0xff]  ;;  %7956 = vst [vmem:[#allocation44_spill] sm:$0xff] %v6677_v36  ;;  %4668 = vmatprep.subr.bf16.mxu0 %v6635_v27  ;;  %v1717_v19 = vsub.f32 %v6617_v4, %v7957_v45  ;;  %v7960_v45 = vand.u32 4294901760, %v6642_v31 }
 0x271   :  { %2107 = vmatprep.mubr.f32.mxu1 %v6489_v17  ;;  %7955 = vst [vmem:[#allocation42_spill] sm:$0xff] %v6672_v23  ;;  %v7515_v43 = vand.u32 4294901760, %v6672_v23 }
 0x272   :  { %v1703_v37 = vand.u32 4294901760, %v1702_v49  ;;  %4390 = vmatpush3.bf16.msra.mxu1 %v7958_v11  ;;  %4670 = vmatpush3.bf16.msra.mxu0 %v6635_v27  ;;  %v7514_v49 = vand.u32 4294901760, %v6677_v36  ;;  %v6697_v11 = vpack.c.bf16 %v7961_v58, %v7960_v45  ;;  %v1718_v40 = vand.u32 4294901760, %v1717_v19 }
 0x273   :  { %4392 = vmatprep.subr.bf16.mxu1 %v7959_v30  ;;  %4672 = vmatprep.subr.bf16.mxu0 %v6665_v26  ;;  %v6707_v30 = vld [vmem:[%s7238_s4 + $0x168] sm:$0xff]  ;;  %v6714_v58 = vand.u32 4294901760, %v6502_v7  ;;  %v7967_v45 = vpack.c.bf16 %v6323_v14, %v6318_v24  ;;  %v7993_v7 = vand.u32 4294901760, %v6531_v20 }
 0x274   :  { %1704 = vmatmul.mubr.f32.gmra.mrb[12].mxu0 %v1703_v37  ;;  %7962 = vst [vmem:[#allocation45_spill] sm:$0xff] %v6697_v11  ;;  %v6702_v37 = vld [vmem:[%s7238_s4 + $0x160] sm:$0xff]  ;;  %7964 = vst [vmem:[#allocation48_spill] sm:$0xff] %v6707_v30  ;;  %v6723_v50 = vpack.c.bf16 %v7514_v49, %v7515_v43  ;;  %v7971_v49 = vpack.c.bf16 %v6338_v57, %v6335_v33  ;;  %v7972_v43 = vpack.c.bf16 %v6376_v28, %v6373_v39 }
 0x275   :  { %1713 = vmatprep.mubr.f32.mxu0 %v1712_v0  ;;  %7963 = vst [vmem:[#allocation47_spill] sm:$0xff] %v6702_v37  ;;  %v7965_v0 = vpack.c.bf16 %v6284_v3, %v6279_v32  ;;  %7966 = vst [vmem:[#allocation50_spill] sm:$0xff] %v6714_v58  ;;  %v7525_v19 = vand.u32 4294901760, %v6702_v37  ;;  %v7985_v37 = vld [vmem:[#allocation56_spill] sm:$0xff] }
 0x276   :  { %4674 = vmatpush3.bf16.msra.mxu0 %v6665_v26  ;;  %7968 = vst [vmem:[#allocation51_spill] sm:$0xff] %v6723_v50  ;;  %v7991_v26 = vld [vmem:[#allocation59_spill] sm:$0xff] }
 0x277   :  { %4394 = vmatpush3.bf16.msra.mxu1 %v7965_v0  ;;  %v7524_v0 = vand.u32 4294901760, %v6707_v30  ;;  %4676 = vmatprep.subr.bf16.mxu0 %v6697_v11  ;;  %v7984_v30 = vld [vmem:[#allocation68_spill] sm:$0xff]  ;;  %v7992_v27 = vand.u32 4294901760, %v7991_v26  ;;  %v8007_v26 = vld [vmem:[#allocation22_spill] sm:$0xff] }
 0x278   :  { %1719 = vmatmul.mubr.f32.gmra.mrb[14].mxu0 %v1718_v40  ;;  %4396 = vmatprep.subr.bf16.mxu1 %v7967_v45  ;;  %v6732_v40 = vld [vmem:[%s7238_s4 + $0x170] sm:$0xff]  ;;  %v6737_v45 = vld [vmem:[%s7238_s4 + $0x178] sm:$0xff] }
 0x279   :  { %4013 = vmatprep.mubr.f32.mxu0 %v6714_v58  ;;  %7969 = vst [vmem:[#allocation5_spill] sm:$0xff] %v6732_v40  ;;  %7970 = vst [vmem:[#allocation65_spill] sm:$0xff] %v6737_v45  ;;  %v6751_v36 = vpack.c.bf16 %v7524_v0, %v7525_v19  ;;  %v7523_v23 = vand.u32 4294901760, %v6732_v40  ;;  %v7522_v31 = vand.u32 4294901760, %v6737_v45  ;;  %v7979_v0 = vld [vmem:[#allocation67_spill] sm:$0xff]  ;;  %v7980_v19 = vld [vmem:[#allocation54_spill] sm:$0xff] }
 0x27a   :  { %4678 = vmatpush3.bf16.msra.mxu0 %v6697_v11  ;;  %v7981_v45 = vand.u32 4294901760, %v7980_v19  ;;  %v7994_v19 = vand.u32 4294901760, %v6511_v13 }
 0x27b   :  { %4398 = vmatpush3.bf16.msra.mxu1 %v7971_v49  ;;  %4680 = vmatprep.subr.bf16.mxu0 %v6723_v50  ;;  %7973 = vst [vmem:[#allocation6_spill] sm:$0xff] %v6751_v36  ;;  %v7974_v49 = vpack.c.bf16 %v6409_v18, %v6406_v15 }
 0x27c   :  { %4400 = vmatprep.subr.bf16.mxu1 %v7972_v43  ;;  %v6765_v43 = vpack.c.bf16 %v7522_v31, %v7523_v23  ;;  %v7978_v23 = vand.u32 4294901760, %v6489_v17  ;;  %v7982_v17 = vld [vmem:[#allocation55_spill] sm:$0xff] }
 0x27e   :  { %4682 = vmatpush3.bf16.msra.mxu0 %v6723_v50  ;;  %7975 = vst [vmem:[#allocation7_spill] sm:$0xff] %v6765_v43 }
 0x27f   :  { %4402 = vmatpush3.bf16.msra.mxu1 %v7974_v49  ;;  %4684 = vmatprep.subr.bf16.mxu0 %v6751_v36  ;;  %v6774_v49 = vld [vmem:[#allocation3 + $0x28] sm:$0xff] }
 0x280   :  { %4404 = vmatprep.subr.bf16.mxu1 %v5859_v22  ;;  %7976 = vst [vmem:[#allocation8_spill] sm:$0xff] %v6774_v49  ;;  %v6781_v31 = vand.u32 4294901760, %v6774_v49 }
 0x282   :  { %2110 = vmatmul.mubr.f32.vlgmr.msra.gmra.mrb[8].mxu1 %v6531_v20  ;;  %4686 = vmatpush3.bf16.msra.mxu0 %v6751_v36  ;;  %7977 = vst [vmem:[#allocation77_spill] sm:$0xff] %v6781_v31  ;;  %v7987_v36 = vld [vmem:[#allocation57_spill] sm:$0xff] }
 0x283   :  { %2116 = vmatprep.mubr.f32.mxu1 %v6511_v13  ;;  %4406 = vmatpush3.bf16.msra.mxu1 %v5882_v54  ;;  %v7988_v50 = vand.u32 4294901760, %v7987_v36  ;;  %v8005_v13 = vld [vmem:[#allocation21_spill] sm:$0xff] }
 0x284   :  { %4408 = vmatprep.subr.bf16.mxu1 %v5900_v38  ;;  %4688 = vmatprep.subr.bf16.mxu0 %v6765_v43  ;;  %v8006_v20 = vand.u32 4294901760, %v8005_v13 }
 0x286   :  { %2119 = vmatmul.mubr.f32.gmra.mrb[10].mxu1 %v6521_v48  ;;  %4690 = vmatpush3.bf16.msra.mxu0 %v6765_v43  ;;  %v7986_v43 = vand.u32 4294901760, %v7985_v37 }
 0x287   :  { %2125 = vmatprep.mubr.f32.mxu1 %v6545_v35  ;;  %4410 = vmatpush3.bf16.msra.mxu1 %v5931_v34 }
 0x288   :  { %4412 = vmatprep.subr.bf16.mxu1 %v6243_v5  ;;  %v4437_v49 = vpack.c.bf16 %v7988_v50, %v7986_v43  ;;  %v7999_v50 = vld [vmem:[#allocation64_spill] sm:$0xff] }
 0x289   :  { %4014 = vmatmul.mubr.f32.vlgmr.msra.gmra.mrb[16].mxu0 %v6781_v31  ;;  %v7989_v31 = vld [vmem:[#allocation58_spill] sm:$0xff]  ;;  %v8000_v36 = vand.u32 4294901760, %v7999_v50 }
 0x28a   :  { %2128 = vmatmul.mubr.f32.gmra.mrb[12].mxu1 %v6625_v42  ;;  %v7990_v11 = vand.u32 4294901760, %v7989_v31 }
 0x28b   :  { %2134 = vmatprep.mubr.f32.mxu1 %v6586_v2  ;;  %4414 = vmatpush3.bf16.msra.mxu1 %v6262_v16 }
 0x28c   :  { %4416 = vmatprep.subr.bf16.mxu1 %v6294_v44  ;;  %v4439_v6 = vpack.c.bf16 %v7992_v27, %v7990_v11  ;;  %v8003_v27 = vand.u32 4294901760, %v6521_v48  ;;  %v8008_v11 = vand.u32 4294901760, %v8007_v26  ;;  %v8012_v48 = vand.u32 4294901760, %v6586_v2 }
 0x28d   :  { %v8019_v2 = vand.u32 4294901760, %v6159_v46  ;;  %v8026_v46 = vand.u32 4294901760, %v6323_v14  ;;  %v8033_v14 = vld [vmem:[#allocation46_spill] sm:$0xff] }
 0x28e   :  { %2137 = vmatmul.mubr.f32.gmra.mrb[14].mxu1 %v6617_v4 }
 0x28f   :  { %2241 = vmatprep.mubr.f32.mxu1 %v7978_v23  ;;  %4418 = vmatpush3.bf16.msra.mxu1 %v6313_v53  ;;  %v7983_v23 = vand.u32 4294901760, %v7982_v17 }
 0x290   :  { %4420 = vmatprep.subr.bf16.mxu1 %v6349_v59 }
 0x291   :  { %v4435_v40 = vpack.c.bf16 %v7983_v23, %v7981_v45  ;;  %v7995_v45 = vld [vmem:[#allocation62_spill] sm:$0xff]  ;;  %v7997_v23 = vld [vmem:[#allocation52_spill] sm:$0xff] }
 0x292   :  { %v7996_v17 = vand.u32 4294901760, %v7995_v45  ;;  %v7998_v37 = vand.u32 4294901760, %v7997_v23 }
 0x293   :  { %4422 = vmatpush3.bf16.msra.mxu1 %v6365_v25 }
 0x294   :  { %4424 = vmatprep.subr.bf16.mxu1 %v6389_v62  ;;  %v4441_v58 = vpack.c.bf16 %v7998_v37, %v7996_v17  ;;  %v8011_v17 = vand.u32 4294901760, %v6625_v42  ;;  %v8015_v37 = vand.u32 4294901760, %v6149_v56  ;;  %v8018_v42 = vld [vmem:[#allocation72_spill] sm:$0xff] }
 0x297   :  { %4426 = vmatpush3.bf16.msra.mxu1 %v6397_v51 }
 0x298   :  { %4428 = vmatprep.subr.bf16.mxu1 %v6416_v10 }
 0x29b   :  { %4430 = vmatpush3.bf16.msra.mxu1 %v6421_v8 }
 0x29c   :  { %4432 = vmatprep.subr.bf16.mxu1 %v7979_v0 }
 0x29f   :  { %4434 = vmatpush3.bf16.msra.mxu1 %v7984_v30 }
 0x2a0   :  { %4436 = vmatprep.subr.bf16.mxu1 %v4435_v40  ;;  %v8001_v40 = vld [vmem:[#allocation66_spill] sm:$0xff] }
 0x2a1   :  { %v8002_v31 = vand.u32 4294901760, %v8001_v40  ;;  %v8022_v40 = vand.u32 4294901760, %v6208_v12  ;;  %v8029_v12 = vand.u32 4294901760, %v6373_v39 }
 0x2a2   :  { %2245 = vmatmul.mubr.f32.vlgmr.msra.gmra.mrb[16].mxu1 %v7993_v7  ;;  %v8004_v7 = vand.u32 4294901760, %v6545_v35  ;;  %v8013_v35 = vand.u32 4294901760, %v5953_v21 }
 0x2a3   :  { %2252 = vmatprep.mubr.f32.mxu1 %v7994_v19  ;;  %4438 = vmatpush3.bf16.msra.mxu1 %v4437_v49  ;;  %v4443_v43 = vpack.c.bf16 %v8002_v31, %v8000_v36  ;;  %v4445_v49 = vpack.c.bf16 %v8008_v11, %v8006_v20  ;;  %v8010_v19 = vand.u32 4294901760, %v5943_v9  ;;  %v8017_v9 = vand.u32 4294901760, %v6617_v4  ;;  %v8049_v11 = vld [vmem:[#allocation26_spill] sm:$0xff] }
 0x2a4   :  { %4440 = vmatprep.subr.bf16.mxu1 %v4439_v6  ;;  %v8009_v6 = vand.u32 4294901760, %v7940_v47  ;;  %v8016_v47 = vand.u32 4294901760, %v6154_v52  ;;  %v8020_v36 = vand.u32 4294901760, %v6164_v60  ;;  %v8023_v52 = vand.u32 4294901760, %v6279_v32 }
 0x2a5   :  { %v8024_v4 = vand.u32 4294901760, %v6284_v3  ;;  %v8027_v60 = vand.u32 4294901760, %v6335_v33  ;;  %v8030_v32 = vand.u32 4294901760, %v6376_v28  ;;  %v8031_v3 = vand.u32 4294901760, %v6406_v15  ;;  %v8034_v33 = vld [vmem:[#allocation53_spill] sm:$0xff]  ;;  %v8036_v28 = vld [vmem:[#allocation76_spill] sm:$0xff] }
 0x2a6   :  { %2256 = vmatmul.mubr.f32.gmra.mrb[18].mxu1 %v8003_v27  ;;  %v4447_v45 = vpack.c.bf16 %v8010_v19, %v8009_v6  ;;  %v4451_v50 = vpack.c.bf16 %v8016_v47, %v8015_v37  ;;  %v4453_v21 = vpack.c.bf16 %v8020_v36, %v8019_v2  ;;  %v8045_v15 = vld [vmem:[#allocation41_spill] sm:$0xff]  ;;  %v8054_v37 = vld [vmem:[#allocation51_spill] sm:$0xff]  ;;  %v8057_v36 = vld [vmem:[#allocation30_spill] sm:$0xff] }
 0x2a7   :  { %2263 = vmatprep.mubr.f32.mxu1 %v8004_v7  ;;  %4442 = vmatpush3.bf16.msra.mxu1 %v4441_v58  ;;  %v8014_v58 = vand.u32 4294901760, %v5974_v1  ;;  %v8021_v1 = vand.u32 4294901760, %v6203_v55  ;;  %v4457_v31 = vpack.c.bf16 %v8024_v4, %v8023_v52  ;;  %v8028_v55 = vand.u32 4294901760, %v6338_v57  ;;  %v8035_v57 = vld [vmem:[#allocation61_spill] sm:$0xff] }
 0x2a8   :  { %4444 = vmatprep.subr.bf16.mxu1 %v4443_v43  ;;  %v8025_v43 = vand.u32 4294901760, %v6318_v24  ;;  %v4463_v13 = vpack.c.bf16 %v8030_v32, %v8029_v12  ;;  %v8032_v24 = vand.u32 4294901760, %v6409_v18  ;;  %v8059_v52 = vld [vmem:[#allocation33_spill] sm:$0xff]  ;;  %v8063_v12 = vld [vmem:[#allocation6_spill] sm:$0xff] }
 0x2a9   :  { %v4449_v23 = vpack.c.bf16 %v8014_v58, %v8013_v35  ;;  %v4455_v56 = vpack.c.bf16 %v8022_v40, %v8021_v1  ;;  %v4461_v7 = vpack.c.bf16 %v8028_v55, %v8027_v60  ;;  %v8060_v4 = vand.u32 4294901760, %v8059_v52 }
 0x2aa   :  { %2267 = vmatmul.mubr.f32.gmra.mrb[20].mxu1 %v8011_v17  ;;  %v4459_v27 = vpack.c.bf16 %v8026_v46, %v8025_v43  ;;  %v4465_v20 = vpack.c.bf16 %v8032_v24, %v8031_v3  ;;  %v8053_v17 = vld [vmem:[#allocation8_spill] sm:$0xff]  ;;  %v8061_v43 = vld [vmem:[#allocation35_spill] sm:$0xff] }
 0x2ab   :  { %2274 = vmatprep.mubr.f32.mxu1 %v8012_v48  ;;  %4446 = vmatpush3.bf16.msra.mxu1 %v4445_v49  ;;  %v8050_v49 = vand.u32 4294901760, %v8049_v11  ;;  %v8062_v46 = vand.u32 4294901760, %v8061_v43 }
 0x2ac   :  { %4448 = vmatprep.subr.bf16.mxu1 %v4447_v45  ;;  %v8052_v45 = vld [vmem:[#allocation77_spill] sm:$0xff] }
 0x2ad   :  { %v6947_v6 = vsub.f32 %v8049_v11, %v8050_v49  ;;  %v6954_v48 = vsub.f32 %v8053_v17, %v8052_v45 }
 0x2ae   :  { %2278 = vmatmul.mubr.f32.gmra.mrb[22].mxu1 %v8017_v9  ;;  %v8055_v9 = vld [vmem:[#allocation29_spill] sm:$0xff] }
 0x2af   :  { %4450 = vmatpush3.bf16.msra.mxu1 %v4449_v23  ;;  %2444 = vmatprep.mubr.f32.mxu1 %v8018_v42 }
 0x2b0   :  { %4452 = vmatprep.subr.bf16.mxu1 %v4451_v50  ;;  %v2742_v50 = vand.u32 4294901760, %v6947_v6 }
 0x2b3   :  { %4454 = vmatpush3.bf16.msra.mxu1 %v4453_v21  ;;  %v8058_v21 = vand.u32 4294901760, %v8057_v36 }
 0x2b4   :  { %4456 = vmatprep.subr.bf16.mxu1 %v4455_v56  ;;  %v2690_v56 = vand.u32 4294901760, %v6954_v48 }
 0x2b5   :  { %v6976_v1 = vsub.f32 %v8057_v36, %v8058_v21  ;;  %v8069_v36 = vld [vmem:[#allocation42_spill] sm:$0xff] }
 0x2b6   :  { %v8070_v21 = vand.u32 4294901760, %v8069_v36 }
 0x2b7   :  { %4458 = vmatpush3.bf16.msra.mxu1 %v4457_v31  ;;  %v6986_v31 = vsub.f32 %v8059_v52, %v8060_v4  ;;  %v2756_v24 = vand.u32 4294901760, %v6976_v1  ;;  %v8071_v4 = vld [vmem:[#allocation44_spill] sm:$0xff] }
 0x2b8   :  { %4460 = vmatprep.subr.bf16.mxu1 %v4459_v27  ;;  %v6991_v27 = vsub.f32 %v8061_v43, %v8062_v46  ;;  %v7046_v52 = vsub.f32 %v8069_v36, %v8070_v21  ;;  %v8072_v43 = vand.u32 4294901760, %v8071_v4 }
 0x2b9   :  { %v2757_v49 = vsub.f32 %v6976_v1, %v2756_v24 }
 0x2ba   :  { %v7051_v46 = vsub.f32 %v8071_v4, %v8072_v43  ;;  %v2791_v36 = vand.u32 4294901760, %v7046_v52 }
 0x2bb   :  { %4462 = vmatpush3.bf16.msra.mxu1 %v4461_v7 }
 0x2bc   :  { %4464 = vmatprep.subr.bf16.mxu1 %v4463_v13  ;;  %v2743_v13 = vsub.f32 %v6947_v6, %v2742_v50 }
 0x2bf   :  { %4466 = vmatpush3.bf16.msra.mxu1 %v4465_v20 }
 0x2c0   :  { %4468 = vmatprep.subr.bf16.mxu1 %v5859_v22  ;;  %v8037_v22 = vld [vmem:[#allocation50_spill] sm:$0xff] }
 0x2c2   :  { %2446 = vmatmul.mubr.f32.vlgmr.msra.gmra.mrb[24].mxu1 %v8033_v14 }
 0x2c3   :  { %2451 = vmatprep.mubr.f32.mxu1 %v8034_v33  ;;  %4470 = vmatpush3.bf16.msra.mxu1 %v5882_v54  ;;  %v8038_v54 = vld [vmem:[#allocation9_spill] sm:$0xff] }
 0x2c4   :  { %4472 = vmatprep.subr.bf16.mxu1 %v5900_v38  ;;  %v8039_v38 = vld [vmem:[#allocation32_spill] sm:$0xff] }
 0x2c6   :  { %2453 = vmatmul.mubr.f32.gmra.mrb[26].mxu1 %v8035_v57 }
 0x2c7   :  { %2458 = vmatprep.mubr.f32.mxu1 %v8036_v28  ;;  %4474 = vmatpush3.bf16.msra.mxu1 %v5931_v34  ;;  %v6906_v34 = vsub.f32 %v8038_v54, %v8037_v22 }
 0x2c8   :  { %4476 = vmatprep.subr.bf16.mxu1 %v6243_v5  ;;  %v8040_v5 = vld [vmem:[#allocation36_spill] sm:$0xff] }
 0x2ca   :  { %2460 = vmatmul.mubr.f32.gmra.mrb[28].mxu1 %v6601_v61 }
 0x2cb   :  { %2465 = vmatprep.mubr.f32.mxu1 %v6552_v29  ;;  %4478 = vmatpush3.bf16.msra.mxu1 %v6262_v16 }
 0x2cc   :  { %4480 = vmatprep.subr.bf16.mxu1 %v6294_v44  ;;  %v8041_v44 = vld [vmem:[#allocation69_spill] sm:$0xff] }
 0x2ce   :  { %2467 = vmatmul.mubr.f32.gmra.mrb[30].mxu1 %v6570_v63 }
 0x2cf   :  { %4482 = vmatpush3.bf16.msra.mxu1 %v6313_v53  ;;  %2569 = vmatprep.mubr.f32.mxu1 %v8018_v42  ;;  %v8042_v53 = vand.u32 4294901760, %v8041_v44  ;;  %v8056_v42 = vand.u32 4294901760, %v8055_v9 }
 0x2d0   :  { %4484 = vmatprep.subr.bf16.mxu1 %v6349_v59  ;;  %v2680_v59 = vand.u32 4294901760, %v6906_v34 }
 0x2d1   :  { %v6971_v2 = vsub.f32 %v8055_v9, %v8056_v42 }
 0x2d2   :  { %v2681_v16 = vsub.f32 %v6906_v34, %v2680_v59 }
 0x2d3   :  { %4486 = vmatpush3.bf16.msra.mxu1 %v6365_v25  ;;  %v6926_v25 = vsub.f32 %v8041_v44, %v8042_v53  ;;  %v2749_v3 = vand.u32 4294901760, %v6971_v2 }
 0x2d4   :  { %4488 = vmatprep.subr.bf16.mxu1 %v6389_v62  ;;  %v2682_v18 = vand.u32 4294901760, %v2681_v16  ;;  %v8064_v16 = vld [vmem:[#allocation38_spill] sm:$0xff] }
 0x2d5   :  { %v8065_v44 = vand.u32 4294901760, %v8064_v16  ;;  %v2750_v11 = vsub.f32 %v6971_v2, %v2749_v3 }
 0x2d7   :  { %4490 = vmatpush3.bf16.msra.mxu1 %v6397_v51  ;;  %v8043_v51 = vld [vmem:[#allocation70_spill] sm:$0xff]  ;;  %v7017_v53 = vsub.f32 %v8064_v16, %v8065_v44 }
 0x2d8   :  { %4492 = vmatprep.subr.bf16.mxu1 %v6416_v10  ;;  %v8044_v39 = vand.u32 4294901760, %v8043_v51  ;;  %v2721_v10 = vand.u32 4294901760, %v6926_v25 }
 0x2d9   :  { %v2777_v9 = vand.u32 4294901760, %v7017_v53 }
 0x2da   :  { %v6931_v62 = vsub.f32 %v8043_v51, %v8044_v39  ;;  %v2722_v35 = vsub.f32 %v6926_v25, %v2721_v10  ;;  %v8066_v51 = vld [vmem:[#allocation39_spill] sm:$0xff] }
 0x2db   :  { %4494 = vmatpush3.bf16.msra.mxu1 %v6421_v8  ;;  %v8067_v39 = vand.u32 4294901760, %v8066_v51 }
 0x2dc   :  { %4496 = vmatprep.subr.bf16.mxu1 %v7979_v0  ;;  %v2728_v8 = vand.u32 4294901760, %v6931_v62  ;;  %v2723_v60 = vand.u32 4294901760, %v2722_v35 }
 0x2de   :  { %v2729_v58 = vsub.f32 %v6931_v62, %v2728_v8 }
 0x2df   :  { %4498 = vmatpush3.bf16.msra.mxu1 %v7984_v30  ;;  %v8047_v30 = vld [vmem:[#allocation49_spill] sm:$0xff] }
 0x2e0   :  { %4500 = vmatprep.subr.bf16.mxu1 %v6455_v41  ;;  %v8048_v0 = vand.u32 4294901760, %v8047_v30  ;;  %v2730_v55 = vand.u32 4294901760, %v2729_v58 }
 0x2e2   :  { %2571 = vmatmul.mubr.f32.vlgmr.msra.gmra.mrb[32].mxu1 %v8033_v14  ;;  %v6942_v26 = vsub.f32 %v8047_v30, %v8048_v0  ;;  %v2691_v14 = vsub.f32 %v6954_v48, %v2690_v56  ;;  %v2744_v0 = vand.u32 4294901760, %v2743_v13  ;;  %v2758_v13 = vand.u32 4294901760, %v2757_v49  ;;  %v8073_v49 = vld [vmem:[#allocation47_spill] sm:$0xff] }
 0x2e3   :  { %2576 = vmatprep.mubr.f32.mxu1 %v8034_v33  ;;  %4502 = vmatpush3.bf16.msra.mxu1 %v6455_v41  ;;  %v2763_v33 = vand.u32 4294901760, %v6986_v31 }
 0x2e4   :  { %4504 = vmatprep.subr.bf16.mxu1 %v8039_v38  ;;  %v2735_v47 = vand.u32 4294901760, %v6942_v26  ;;  %v2692_v17 = vand.u32 4294901760, %v2691_v14 }
 0x2e5   :  { %v2764_v35 = vsub.f32 %v6986_v31, %v2763_v33 }
 0x2e6   :  { %2578 = vmatmul.mubr.f32.gmra.mrb[34].mxu1 %v8035_v57  ;;  %v2736_v32 = vsub.f32 %v6942_v26, %v2735_v47  ;;  %v2770_v57 = vand.u32 4294901760, %v6991_v27 }
 0x2e7   :  { %2583 = vmatprep.mubr.f32.mxu1 %v8036_v28  ;;  %4506 = vmatpush3.bf16.msra.mxu1 %v8039_v38  ;;  %v4531_v28 = vpack.c.bf16 %v2730_v55, %v2723_v60  ;;  %v2765_v16 = vand.u32 4294901760, %v2764_v35 }
 0x2e8   :  { %4508 = vmatprep.subr.bf16.mxu1 %v8040_v5  ;;  %v2737_v30 = vand.u32 4294901760, %v2736_v32  ;;  %v2771_v58 = vsub.f32 %v6991_v27, %v2770_v57  ;;  %v2751_v32 = vand.u32 4294901760, %v2750_v11 }
 0x2ea   :  { %2585 = vmatmul.mubr.f32.gmra.mrb[36].mxu1 %v6601_v61  ;;  %v1518_v61 = vld [vmem:[#allocation3 + $0x58] sm:$0xff]  ;;  %v4535_v55 = vpack.c.bf16 %v2744_v0, %v2737_v30  ;;  %v2772_v44 = vand.u32 4294901760, %v2771_v58  ;;  %v7554_v30 = vand.u32 4294901760, %v7051_v46  ;;  %v4539_v11 = vpack.c.bf16 %v2758_v13, %v2751_v32 }
 0x2eb   :  { %2590 = vmatprep.mubr.f32.mxu1 %v6552_v29  ;;  %4510 = vmatpush3.bf16.msra.mxu1 %v8040_v5  ;;  %v8046_v29 = vld [vmem:[#allocation45_spill] sm:$0xff]  ;;  %v6963_v23 = vand.u32 4294901760, %v1518_v61 }
 0x2ec   :  { %4512 = vmatprep.subr.bf16.mxu1 %v8045_v15  ;;  %v4543_v21 = vpack.c.bf16 %v2772_v44, %v2765_v16  ;;  %v2799_v32 = vsub.f32 %v7051_v46, %v7554_v30  ;;  %v8079_v44 = vld [vmem:[#allocation65_spill] sm:$0xff] }
 0x2ed   :  { %v6995_v7 = vsub.f32 %v1518_v61, %v6963_v23  ;;  %v8068_v61 = vld [vmem:[#allocation7_spill] sm:$0xff] }
 0x2ee   :  { %2592 = vmatmul.mubr.f32.gmra.mrb[38].mxu1 %v6570_v63  ;;  %v8051_v63 = vld [vmem:[#allocation27_spill] sm:$0xff] }
 0x2ef   :  { %4514 = vmatpush3.bf16.msra.mxu1 %v8045_v15  ;;  %3823 = vmatprep.mubr.f32.mxu1 %v2682_v18  ;;  %v6950_v19 = vand.u32 4294901760, %v8051_v63  ;;  %v2710_v54 = vand.u32 4294901760, %v6995_v7  ;;  %v7022_v18 = vsub.f32 %v8066_v51, %v8067_v39  ;;  %v2778_v51 = vsub.f32 %v7017_v53, %v2777_v9 }
 0x2f0   :  { %4516 = vmatprep.subr.bf16.mxu1 %v8046_v29 }
 0x2f1   :  { %v6980_v40 = vsub.f32 %v8051_v63, %v6950_v19  ;;  %v2784_v42 = vand.u32 4294901760, %v7022_v18  ;;  %v2711_v60 = vsub.f32 %v6995_v7, %v2710_v54  ;;  %v2779_v4 = vand.u32 4294901760, %v2778_v51 }
 0x2f2   :  { %v8080_v51 = vand.u32 4294901760, %v8079_v44 }
 0x2f3   :  { %4518 = vmatpush3.bf16.msra.mxu1 %v8046_v29  ;;  %v2700_v20 = vand.u32 4294901760, %v6980_v40  ;;  %v2785_v39 = vsub.f32 %v7022_v18, %v2784_v42  ;;  %v2712_v0 = vand.u32 4294901760, %v2711_v60  ;;  %v2792_v60 = vsub.f32 %v7046_v52, %v2791_v36 }
 0x2f4   :  { %4520 = vmatprep.subr.bf16.mxu1 %v8054_v37 }
 0x2f5   :  { %v2701_v63 = vsub.f32 %v6980_v40, %v2700_v20  ;;  %v2786_v43 = vand.u32 4294901760, %v2785_v39  ;;  %v7091_v39 = vsub.f32 %v8079_v44, %v8080_v51 }
 0x2f7   :  { %4522 = vmatpush3.bf16.msra.mxu1 %v8054_v37  ;;  %v2702_v14 = vand.u32 4294901760, %v2701_v63  ;;  %v8074_v63 = vand.u32 4294901760, %v8073_v49 }
 0x2f8   :  { %4524 = vmatprep.subr.bf16.mxu1 %v8063_v12 }
 0x2fb   :  { %4526 = vmatpush3.bf16.msra.mxu1 %v8063_v12 }
 0x2fc   :  { %4528 = vmatprep.subr.bf16.mxu1 %v8068_v61 }
 0x2ff   :  { %4530 = vmatpush3.bf16.msra.mxu1 %v8068_v61 }
 0x300   :  { %4532 = vmatprep.subr.bf16.mxu1 %v4531_v28 }
 0x302   :  { %3824 = vmatmul.mubr.f32.vlgmr.msra.gmra.mrb[40].mxu1 %v2692_v17  ;;  %v7067_v17 = vsub.f32 %v8073_v49, %v8074_v63  ;;  %v4547_v49 = vpack.c.bf16 %v2786_v43, %v2779_v4  ;;  %v2793_v63 = vand.u32 4294901760, %v2792_v60 }
 0x303   :  { %3826 = vmatprep.mubr.f32.mxu1 %v2702_v14  ;;  %4534 = vmatpush3.bf16.msra.mxu1 %v4531_v28  ;;  %v8075_v28 = vld [vmem:[#allocation48_spill] sm:$0xff] }
 0x304   :  { %4536 = vmatprep.subr.bf16.mxu1 %v4535_v55  ;;  %v8076_v35 = vand.u32 4294901760, %v8075_v28  ;;  %v7558_v13 = vand.u32 4294901760, %v7067_v17 }
 0x306   :  { %v7072_v58 = vsub.f32 %v8075_v28, %v8076_v35  ;;  %3827 = vmatmul.mubr.f32.gmra.mrb[42].mxu1 %v2712_v0  ;;  %v8077_v0 = vld [vmem:[#allocation5_spill] sm:$0xff]  ;;  %v2800_v28 = vand.u32 4294901760, %v2799_v32  ;;  %v2806_v35 = vsub.f32 %v7067_v17, %v7558_v13 }
 0x307   :  { %4538 = vmatpush3.bf16.msra.mxu1 %v4535_v55  ;;  %3861 = vmatprep.mubr.f32.mxu1 %v8037_v22  ;;  %v8078_v16 = vand.u32 4294901760, %v8077_v0 }
 0x308   :  { %4540 = vmatprep.subr.bf16.mxu1 %v4539_v11  ;;  %v7555_v14 = vand.u32 4294901760, %v7072_v58  ;;  %v4551_v44 = vpack.c.bf16 %v2800_v28, %v2793_v63  ;;  %v4567_v63 = vpack.c.bf16 %v6947_v6, %v6942_v26  ;;  %v4579_v28 = vpack.c.bf16 %v7022_v18, %v7017_v53 }
 0x309   :  { %v7086_v55 = vsub.f32 %v8077_v0, %v8078_v16  ;;  %v7556_v16 = vand.u32 4294901760, %v7091_v39  ;;  %v4643_v26 = vpack.c.bf16 %v2784_v42, %v2777_v9  ;;  %v8081_v6 = vand.u32 4294901760, %v7051_v46 }
 0x30a   :  { %v2813_v30 = vsub.f32 %v7072_v58, %v7555_v14 }
 0x30b   :  { %4542 = vmatpush3.bf16.msra.mxu1 %v4539_v11  ;;  %v7557_v0 = vand.u32 4294901760, %v7086_v55  ;;  %v2807_v11 = vand.u32 4294901760, %v2806_v35  ;;  %v2827_v60 = vsub.f32 %v7091_v39, %v7556_v16  ;;  %v4583_v35 = vpack.c.bf16 %v7051_v46, %v7046_v52 }
 0x30c   :  { %4544 = vmatprep.subr.bf16.mxu1 %v4543_v21  ;;  %v2814_v4 = vand.u32 4294901760, %v2813_v30  ;;  %v4563_v30 = vpack.c.bf16 %v6931_v62, %v6926_v25 }
 0x30d   :  { %v2820_v43 = vsub.f32 %v7086_v55, %v7557_v0  ;;  %v2828_v14 = vand.u32 4294901760, %v2827_v60 }
 0x30e   :  { %v4555_v32 = vpack.c.bf16 %v2814_v4, %v2807_v11  ;;  %v4587_v11 = vpack.c.bf16 %v7072_v58, %v7067_v17 }
 0x30f   :  { %4546 = vmatpush3.bf16.msra.mxu1 %v4543_v21  ;;  %v2821_v51 = vand.u32 4294901760, %v2820_v43 }
 0x310   :  { %4548 = vmatprep.subr.bf16.mxu1 %v4547_v49 }
 0x311   :  { %v4559_v21 = vpack.c.bf16 %v2828_v14, %v2821_v51  ;;  %v4575_v14 = vpack.c.bf16 %v6991_v27, %v6986_v31  ;;  %v8085_v31 = vand.u32 4294901760, %v7091_v39 }
 0x313   :  { %4550 = vmatpush3.bf16.msra.mxu1 %v4547_v49  ;;  %v4571_v49 = vpack.c.bf16 %v6976_v1, %v6971_v2 }
 0x314   :  { %4552 = vmatprep.subr.bf16.mxu1 %v4551_v44 }
 0x317   :  { %4554 = vmatpush3.bf16.msra.mxu1 %v4551_v44 }
 0x318   :  { %4556 = vmatprep.subr.bf16.mxu1 %v4555_v32 }
 0x31b   :  { %4558 = vmatpush3.bf16.msra.mxu1 %v4555_v32  ;;  %v4591_v32 = vpack.c.bf16 %v7091_v39, %v7086_v55 }
 0x31c   :  { %4560 = vmatprep.subr.bf16.mxu1 %v4559_v21 }
 0x31f   :  { %4562 = vmatpush3.bf16.msra.mxu1 %v4559_v21 }
 0x320   :  { %4564 = vmatprep.subr.bf16.mxu1 %v4563_v30 }
 0x322   :  { %3862 = vmatmul.mubr.f32.vlgmr.msra.gmra.mrb[40].mxu1 %v8052_v45 }
 0x323   :  { %3864 = vmatprep.mubr.f32.mxu1 %v6950_v19  ;;  %4566 = vmatpush3.bf16.msra.mxu1 %v4563_v30 }
 0x324   :  { %4568 = vmatprep.subr.bf16.mxu1 %v4567_v63 }
 0x326   :  { %3865 = vmatmul.mubr.f32.gmra.mrb[42].mxu1 %v6963_v23 }
 0x327   :  { %4570 = vmatpush3.bf16.msra.mxu1 %v4567_v63  ;;  %3899 = vmatprep.mubr.f32.mxu1 %v6906_v34 }
 0x328   :  { %4572 = vmatprep.subr.bf16.mxu1 %v4571_v49 }
 0x32b   :  { %4574 = vmatpush3.bf16.msra.mxu1 %v4571_v49 }
 0x32c   :  { %4576 = vmatprep.subr.bf16.mxu1 %v4575_v14 }
 0x32f   :  { %4578 = vmatpush3.bf16.msra.mxu1 %v4575_v14 }
 0x330   :  { %4580 = vmatprep.subr.bf16.mxu1 %v4579_v28 }
 0x333   :  { %4582 = vmatpush3.bf16.msra.mxu1 %v4579_v28 }
 0x334   :  { %v3483_v44 = vpop.f32.mrb[0].mxu1  ;;  %4584 = vmatprep.subr.bf16.mxu1 %v4583_v35 }
 0x335   :  { %v3484_v4 = vpop.f32.mrb[1].mxu1 }
 0x336   :  { %v3485_v43 = vadd.f32 %v3484_v4, %v3483_v44 }
 0x337   :  { %4586 = vmatpush3.bf16.msra.mxu1 %v4583_v35 }
 0x338   :  { %4588 = vmatprep.subr.bf16.mxu1 %v4587_v11  ;;  %v3486_v60 = vpop.f32.mrb[2].mxu1 }
 0x339   :  { %v3487_v51 = vpop.f32.mrb[3].mxu1 }
 0x33a   :  { %v3488_v21 = vadd.f32 %v3487_v51, %v3486_v60 }
 0x33b   :  { %4590 = vmatpush3.bf16.msra.mxu1 %v4587_v11 }
 0x33c   :  { %v3439_v30 = vpop.f32.mrb[8].mxu0  ;;  %4592 = vmatprep.subr.bf16.mxu1 %v4591_v32 }
 0x33d   :  { %v3440_v63 = vpop.f32.mrb[9].mxu0 }
 0x33e   :  { %v3441_v49 = vadd.f32 %v3440_v63, %v3439_v30 }
 0x33f   :  { %v3489_v14 = vpop.f32.mrb[4].mxu1  ;;  %4594 = vmatpush3.bf16.msra.mxu1 %v4591_v32 }
 0x340   :  { %v3490_v28 = vpop.f32.mrb[5].mxu1  ;;  %v1953_v16 = vadd.f32 %v3485_v43, %v3441_v49  ;;  %4596 = vmatprep.subr.bf16.mxu1 %v6455_v41  ;;  %v3442_v35 = vpop.f32.mrb[10].mxu0 }
 0x341   :  { %v3491_v0 = vadd.f32 %v3490_v28, %v3489_v14  ;;  %v3443_v44 = vpop.f32.mrb[11].mxu0 }
 0x342   :  { %3900 = vmatmul.mubr.f32.vlgmr.msra.gmra.mrb[40].mxu1 %v6954_v48  ;;  %v3444_v4 = vadd.f32 %v3443_v44, %v3442_v35  ;;  %v8082_v48 = vand.u32 4294901760, %v7067_v17 }
 0x343   :  { %v3492_v13 = vpop.f32.mrb[6].mxu1  ;;  %3902 = vmatprep.mubr.f32.mxu1 %v6980_v40  ;;  %4598 = vmatpush3.bf16.msra.mxu1 %v6455_v41 }
 0x344   :  { %v3493_v11 = vpop.f32.mrb[7].mxu1  ;;  %v1960_v60 = vadd.f32 %v3488_v21, %v3444_v4  ;;  %4600 = vmatprep.subr.bf16.mxu1 %v8039_v38 }
 0x345   :  { %v3494_v51 = vadd.f32 %v3493_v11, %v3492_v13 }
 0x346   :  { %3903 = vmatmul.mubr.f32.gmra.mrb[42].mxu1 %v6995_v7 }
 0x347   :  { %v3445_v43 = vpop.f32.mrb[12].mxu0  ;;  %4602 = vmatpush3.bf16.msra.mxu1 %v8039_v38  ;;  %3937 = vmatprep.mubr.f32.mxu1 %v2680_v59 }
 0x348   :  { %v3446_v32 = vpop.f32.mrb[13].mxu0  ;;  %4604 = vmatprep.subr.bf16.mxu1 %v8040_v5 }
 0x349   :  { %v3447_v30 = vadd.f32 %v3446_v32, %v3445_v43  ;;  %v4627_v43 = vpack.c.bf16 %v2728_v8, %v2721_v10  ;;  %v4635_v10 = vpack.c.bf16 %v2756_v24, %v2749_v3  ;;  %v4639_v8 = vpack.c.bf16 %v2770_v57, %v2763_v33 }
 0x34b   :  { %v1967_v63 = vadd.f32 %v3491_v0, %v3447_v30  ;;  %v3448_v49 = vpop.f32.mrb[14].mxu0  ;;  %4606 = vmatpush3.bf16.msra.mxu1 %v8040_v5 }
 0x34c   :  { %v3449_v21 = vpop.f32.mrb[15].mxu0  ;;  %4608 = vmatprep.subr.bf16.mxu1 %v8045_v15 }
 0x34d   :  { %v3450_v13 = vadd.f32 %v3449_v21, %v3448_v49 }
 0x34f   :  { %v1974_v14 = vadd.f32 %v3494_v51, %v3450_v13  ;;  %4610 = vmatpush3.bf16.msra.mxu1 %v8045_v15 }
 0x350   :  { %4612 = vmatprep.subr.bf16.mxu1 %v8046_v29 }
 0x353   :  { %4614 = vmatpush3.bf16.msra.mxu1 %v8046_v29 }
 0x354   :  { %4616 = vmatprep.subr.bf16.mxu1 %v8054_v37 }
 0x355   :  { %v3527_v34 = vpop.f32.mrb[8].mxu1 }
 0x356   :  { %v3528_v59 = vpop.f32.mrb[9].mxu1 }
 0x357   :  { %v3529_v28 = vadd.f32 %v3528_v59, %v3527_v34  ;;  %4618 = vmatpush3.bf16.msra.mxu1 %v8054_v37 }
 0x358   :  { %4620 = vmatprep.subr.bf16.mxu1 %v8063_v12 }
 0x359   :  { %v2112_v0 = vadd.f32 %v3529_v28, %v1953_v16  ;;  %v3530_v35 = vpop.f32.mrb[10].mxu1 }
 0x35a   :  { %v3531_v44 = vpop.f32.mrb[11].mxu1 }
 0x35b   :  { %v3532_v4 = vadd.f32 %v3531_v44, %v3530_v35  ;;  %4622 = vmatpush3.bf16.msra.mxu1 %v8063_v12 }
 0x35c   :  { %4624 = vmatprep.subr.bf16.mxu1 %v8068_v61  ;;  %v7151_v32 = vpop.f32.mrb[16].mxu0 }
 0x35d   :  { %v2121_v11 = vadd.f32 %v3532_v4, %v1960_v60  ;;  %v3533_v51 = vpop.f32.mrb[12].mxu1  ;;  %v7153_v49 = vpop.f32.mrb[17].mxu0  ;;  %v4631_v60 = vpack.c.bf16 %v2742_v50, %v2735_v47  ;;  %v8083_v47 = vand.u32 4294901760, %v7072_v58 }
 0x35e   :  { %v3534_v30 = vpop.f32.mrb[13].mxu1 }
 0x35f   :  { %v3535_v16 = vadd.f32 %v3534_v30, %v3533_v51  ;;  %4626 = vmatpush3.bf16.msra.mxu1 %v8068_v61  ;;  %v4651_v50 = vpack.c.bf16 %v8083_v47, %v8082_v48 }
 0x360   :  { %4628 = vmatprep.subr.bf16.mxu1 %v4627_v43 }
 0x361   :  { %v2130_v21 = vadd.f32 %v3535_v16, %v1967_v63  ;;  %v3536_v13 = vpop.f32.mrb[14].mxu1 }
 0x362   :  { %v3537_v25 = vpop.f32.mrb[15].mxu1  ;;  %3938 = vmatmul.mubr.f32.vlgmr.msra.gmra.mrb[40].mxu1 %v2690_v56  ;;  %v8084_v56 = vand.u32 4294901760, %v7086_v55 }
 0x363   :  { %v3538_v34 = vadd.f32 %v3537_v25, %v3536_v13  ;;  %3940 = vmatprep.mubr.f32.mxu1 %v2700_v20  ;;  %4630 = vmatpush3.bf16.msra.mxu1 %v4627_v43 }
 0x364   :  { %4632 = vmatprep.subr.bf16.mxu1 %v4631_v60  ;;  %v4655_v27 = vpack.c.bf16 %v8085_v31, %v8084_v56  ;;  %v8087_v56 = vld [vmem:[#allocation71_spill] sm:$0xff] }
 0x365   :  { %v2139_v62 = vadd.f32 %v3538_v34, %v1974_v14 }
 0x366   :  { %3941 = vmatmul.mubr.f32.gmra.mrb[42].mxu1 %v2710_v54 }
 0x367   :  { %4634 = vmatpush3.bf16.msra.mxu1 %v4631_v60  ;;  %3975 = vmatprep.mubr.f32.mxu1 %v8037_v22  ;;  %v4647_v22 = vpack.c.bf16 %v8081_v6, %v2791_v36  ;;  %v3406_v6 = vld [vmem:[%s7242_s6] ss:$0 sm:$0xff] }
 0x368   :  { %4636 = vmatprep.subr.bf16.mxu1 %v4635_v10 }
 0x36b   :  { %4638 = vmatpush3.bf16.msra.mxu1 %v4635_v10  ;;  %v3405_v10 = vld [vmem:[%s7241_s5] ss:$0 sm:$0xff] }
 0x36c   :  { %4640 = vmatprep.subr.bf16.mxu1 %v4639_v8 }
 0x36f   :  { %4642 = vmatpush3.bf16.msra.mxu1 %v4639_v8 }
 0x370   :  { %4644 = vmatprep.subr.bf16.mxu1 %v4643_v26 }
 0x373   :  { %4646 = vmatpush3.bf16.msra.mxu1 %v4643_v26 }
 0x374   :  { %4648 = vmatprep.subr.bf16.mxu1 %v4647_v22 }
 0x375   :  { %v3571_v2 = vpop.f32.mrb[16].mxu1 }
 0x376   :  { %v3572_v1 = vpop.f32.mrb[17].mxu1 }
 0x377   :  { %v3573_v40 = vadd.f32 %v3572_v1, %v3571_v2  ;;  %4650 = vmatpush3.bf16.msra.mxu1 %v4647_v22  ;;  %v8086_v1 = vld [vmem:[#allocation73_spill] sm:$0xff] }
 0x378   :  { %4652 = vmatprep.subr.bf16.mxu1 %v4651_v50 }
 0x379   :  { %v2247_v7 = vadd.f32 %v3573_v40, %v2112_v0  ;;  %v3574_v3 = vpop.f32.mrb[18].mxu1 }
 0x37a   :  { %v3575_v24 = vpop.f32.mrb[19].mxu1 }
 0x37b   :  { %v3576_v20 = vadd.f32 %v3575_v24, %v3574_v3  ;;  %4654 = vmatpush3.bf16.msra.mxu1 %v4651_v50 }
 0x37c   :  { %4656 = vmatprep.subr.bf16.mxu1 %v4655_v27 }
 0x37d   :  { %v2258_v33 = vadd.f32 %v3576_v20, %v2121_v11  ;;  %v3577_v57 = vpop.f32.mrb[20].mxu1 }
 0x37e   :  { %v3578_v54 = vpop.f32.mrb[21].mxu1 }
 0x37f   :  { %v3579_v53 = vadd.f32 %v3578_v54, %v3577_v57  ;;  %4658 = vmatpush3.bf16.msra.mxu1 %v4655_v27 }
 0x380   :  { %4691 = vmatprep.subr.bf16.mxu1 %v6455_v41 }
 0x381   :  { %v2269_v18 = vadd.f32 %v3579_v53, %v2130_v21  ;;  %v3580_v9 = vpop.f32.mrb[22].mxu1  ;;  %v8088_v53 = vld [vmem:[#allocation43_spill] sm:$0xff] }
 0x382   :  { %v3581_v42 = vpop.f32.mrb[23].mxu1  ;;  %3976 = vmatmul.mubr.f32.vlgmr.msra.gmra.mrb[40].mxu1 %v8052_v45 }
 0x383   :  { %v3582_v52 = vadd.f32 %v3581_v42, %v3580_v9  ;;  %3978 = vmatprep.mubr.f32.mxu1 %v6950_v19  ;;  %4699 = vmatpush3.bf16.msra.mxu1 %v6455_v41  ;;  %v8089_v9 = vld [vmem:[#allocation75_spill] sm:$0xff] }
 0x384   :  { %4692 = vmatprep.subr.bf16.mxu1 %v8039_v38 }
 0x385   :  { %v2280_v46 = vadd.f32 %v3582_v52, %v2139_v62 }
 0x386   :  { %3979 = vmatmul.mubr.f32.gmra.mrb[42].mxu1 %v6963_v23 }
 0x387   :  { %4700 = vmatpush3.bf16.msra.mxu1 %v8039_v38  ;;  %4016 = vmatprep.mubr.f32.mxu1 %v6950_v19 }
 0x388   :  { %4693 = vmatprep.subr.bf16.mxu1 %v8040_v5 }
 0x38b   :  { %4701 = vmatpush3.bf16.msra.mxu1 %v8040_v5 }
 0x38c   :  { %4694 = vmatprep.subr.bf16.mxu1 %v8045_v15 }
 0x38f   :  { %4702 = vmatpush3.bf16.msra.mxu1 %v8045_v15 }
 0x390   :  { %4695 = vmatprep.subr.bf16.mxu1 %v8046_v29 }
 0x393   :  { %4703 = vmatpush3.bf16.msra.mxu1 %v8046_v29 }
 0x394   :  { %4696 = vmatprep.subr.bf16.mxu1 %v8054_v37 }
 0x395   :  { %v3615_v41 = vpop.f32.mrb[24].mxu1 }
 0x396   :  { %v3616_v45 = vpop.f32.mrb[25].mxu1 }
 0x397   :  { %v3617_v36 = vadd.f32 %v3616_v45, %v3615_v41  ;;  %4704 = vmatpush3.bf16.msra.mxu1 %v8054_v37 }
 0x398   :  { %4697 = vmatprep.subr.bf16.mxu1 %v8063_v12 }
 0x399   :  { %v2448_v38 = vadd.f32 %v3617_v36, %v2247_v7  ;;  %v3618_v19 = vpop.f32.mrb[26].mxu1 }
 0x39a   :  { %v3619_v5 = vpop.f32.mrb[27].mxu1 }
 0x39b   :  { %v3620_v17 = vadd.f32 %v3619_v5, %v3618_v19  ;;  %4705 = vmatpush3.bf16.msra.mxu1 %v8063_v12 }
 0x39c   :  { %4698 = vmatprep.subr.bf16.mxu1 %v8068_v61 }
 0x39d   :  { %v2455_v15 = vadd.f32 %v3620_v17, %v2258_v33  ;;  %v3621_v58 = vpop.f32.mrb[28].mxu1 }
 0x39e   :  { %v3622_v29 = vpop.f32.mrb[29].mxu1 }
 0x39f   :  { %v3623_v55 = vadd.f32 %v3622_v29, %v3621_v58  ;;  %4706 = vmatpush3.bf16.msra.mxu1 %v8068_v61 }
 0x3a1   :  { %v2462_v39 = vadd.f32 %v3623_v55, %v2269_v18  ;;  %v3624_v63 = vpop.f32.mrb[30].mxu1 }
 0x3a2   :  { %v3625_v14 = vpop.f32.mrb[31].mxu1  ;;  %4017 = vmatmul.mubr.f32.vlgmr.msra.gmra.mrb[42].mxu1 %v6963_v23 }
 0x3a3   :  { %v3626_v37 = vadd.f32 %v3625_v14, %v3624_v63 }
 0x3a5   :  { %v2469_v59 = vadd.f32 %v3626_v37, %v2280_v46 }
 0x3b5   :  { %v3659_v28 = vpop.f32.mrb[32].mxu1 }
 0x3b6   :  { %v3660_v0 = vpop.f32.mrb[33].mxu1 }
 0x3b7   :  { %v3661_v35 = vadd.f32 %v3660_v0, %v3659_v28 }
 0x3b9   :  { %v3662_v44 = vpop.f32.mrb[34].mxu1  ;;  %v2573_v12 = vadd.f32 %v3661_v35, %v2448_v38 }
 0x3ba   :  { %v3663_v4 = vpop.f32.mrb[35].mxu1 }
 0x3bb   :  { %v3664_v11 = vadd.f32 %v3663_v4, %v3662_v44 }
 0x3bd   :  { %v3665_v51 = vpop.f32.mrb[36].mxu1  ;;  %v2580_v43 = vadd.f32 %v3664_v11, %v2455_v15 }
 0x3be   :  { %v3666_v30 = vpop.f32.mrb[37].mxu1 }
 0x3bf   :  { %v3667_v16 = vadd.f32 %v3666_v30, %v3665_v51 }
 0x3c1   :  { %v3668_v21 = vpop.f32.mrb[38].mxu1  ;;  %v2587_v61 = vadd.f32 %v3667_v16, %v2462_v39 }
 0x3c2   :  { %v3669_v13 = vpop.f32.mrb[39].mxu1 }
 0x3c3   :  { %v3670_v60 = vadd.f32 %v3669_v13, %v3668_v21 }
 0x3c5   :  { %v2594_v25 = vadd.f32 %v3670_v60, %v2469_v59 }
 0x455   :  { %v3977_v34 = vpop.f32.mrb[40].mxu1 }
 0x456   :  { %v4707_v23 = vadd.f32 %v3977_v34, %v2580_v43  ;;  %v3240_v62 = vpop.f32.mrb[41].mxu1 }
 0x457   :  { %v4709_v8 = vadd.f32 %v3240_v62, %v2573_v12 }
 0x458   :  { %v4708_v26 = vadd.f32 %v4707_v23, %v7151_v32 }
 0x459   :  { %v4710_v22 = vadd.f32 %v4709_v8, %v7153_v49 }
 0x45a   :  { %v3375_v48 = vmul.f32 %v4708_v26, %v3405_v10 }
 0x45b   :  { %v3374_v47 = vmul.f32 %v4710_v22, %v3405_v10 }
 0x45c   :  { %v3386_v50 = vadd.f32 %v3406_v6, %v3375_v48 }
 0x45d   :  { %v3385_v2 = vadd.f32 %v3406_v6, %v3374_v47 }
 0x45e   :  { %v3390_v40 = vadd.f32 %v3386_v50, %v8086_v1 }
 0x45f   :  { %v3389_v31 = vadd.f32 %v3385_v2, %v8087_v56 }
 0x460   :  { %v3394_v27 = vmax.f32 %v3390_v40, 0.0 }
 0x461   :  { %v3393_v7 = vmax.f32 %v3389_v31, 0.0 }
 0x462   :  { %3398 = vst [vmem:[%s7243_s7 + $0x8] sm:$0xff] %v3394_v27 }
 0x463   :  { %3397 = vst [vmem:[%s7243_s7] sm:$0xff] %v3393_v7 }
 0x475   :  { %v4018_v32 = vpop.f32.mrb[42].mxu1 }
 0x476   :  { %v4711_v49 = vadd.f32 %v4018_v32, %v2594_v25  ;;  %v3357_v3 = vpop.f32.mrb[43].mxu1 }
 0x477   :  { %v4712_v24 = vadd.f32 %v3357_v3, %v2587_v61 }
 0x478   :  { %v3377_v20 = vmul.f32 %v4711_v49, %v3405_v10 }
 0x479   :  { %v3376_v33 = vmul.f32 %v4712_v24, %v3405_v10 }
 0x47a   :  { %v3388_v57 = vadd.f32 %v3406_v6, %v3377_v20 }
 0x47b   :  { %v3387_v54 = vadd.f32 %v3406_v6, %v3376_v33 }
 0x47c   :  { %v3392_v18 = vadd.f32 %v3388_v57, %v8088_v53 }
 0x47d   :  { %v3391_v42 = vadd.f32 %v3387_v54, %v8089_v9 }
 0x47e   :  { %v3396_v52 = vmax.f32 %v3392_v18, 0.0 }
 0x47f   :  { %v3395_v46 = vmax.f32 %v3391_v42, 0.0 }
 0x480   :  { %3400 = vst [vmem:[%s7243_s7 + $0x18] sm:$0xff] %v3396_v52 }
 0x481   :  { %3399 = vst [vmem:[%s7243_s7 + $0x10] sm:$0xff] %v3395_v46 }

</bundles_post_ra>
